<compile_context>
chip_gen: v7x
topology: tpu7x:2x2x1
jax: 0.10.0
libtpu: 0.0.40
codegen_flags: <defaults>
</compile_context>

<pallas_src>
import jax
import jax.numpy as jnp
import numpy as np
from jax.experimental import pallas as pl
from jax.experimental.pallas import tpu as pltpu

BN_EPS = 1e-5


# ----------------------- static structure matrices (numpy) -----------------------

def _width_placement(kw, w_in, ow):
    """(KW, W_in, OW) one-hot placement used to build the width-Toeplitz weights."""
    m = np.zeros((kw, w_in, ow), np.float32)
    for kj in range(kw):
        for j in range(ow):
            m[kj, j + kj, j] = 1.0
    return m


def _col_pool(cout, ow):
    """(2, Cout*OW, Cout*OW//2) even/odd column selectors for 2x2 max-pool."""
    owp = ow // 2
    sel = np.zeros((2, cout * ow, cout * owp), np.float32)
    for c in range(cout):
        for j in range(owp):
            sel[0, c * ow + 2 * j, c * owp + j] = 1.0
            sel[1, c * ow + 2 * j + 1, c * owp + j] = 1.0
    return sel


_PLACE1 = _width_placement(5, 32, 28)   # conv1: 32 -> 28 along width
_PLACE2 = _width_placement(5, 14, 10)   # conv2: 14 -> 10 along width
_CPOOL1 = _col_pool(6, 28)              # (2, 168, 84)
_CPOOL2 = _col_pool(12, 10)             # (2, 120, 60)


# --------------------------------- Pallas kernel ----------------------------------

def _make_kernel(tb):
    f32, bf16 = jnp.float32, jnp.bfloat16

    def kernel(x_ref, t1_ref, sh1_ref, cp1_ref,
               t2_ref, sh2_ref, cp2_ref,
               wf1_ref, bf1_ref, wf2_ref, bf2_ref, wf3_ref, bf3_ref,
               out_ref):
        # ---- layer1: conv(1->6,5x5) [+ folded BN] + ReLU, single K=160 matmul ----
        # x_ref: (28, tb, 160) bf16, lanes = (ki, w); rows (oh, b) after reshape.
        xm = x_ref[...].reshape(28 * tb, 160)
        h1 = jnp.dot(xm, t1_ref[...], preferred_element_type=f32)   # (28*tb, 168)
        h1 = jnp.maximum(h1 + sh1_ref[...], 0.0).astype(bf16)

        # ---- pool1: columns via exact 0/1 selection matmuls (bf16, f32 acc),
        #             rows via short unrolled elementwise max ---------------------
        hc = jnp.maximum(
            jnp.dot(h1, cp1_ref[0], preferred_element_type=f32),
            jnp.dot(h1, cp1_ref[1], preferred_element_type=f32))    # (28*tb, 84)
        hc = hc.reshape(28, tb, 84)
        p1 = jnp.stack(
            [jnp.maximum(hc[2 * r], hc[2 * r + 1]).astype(bf16) for r in range(14)],
            axis=0)                                                 # (14, tb, 84)

        # ---- layer2: conv(6->12,5x5) [+ folded BN] + ReLU; 5 taps, M=10*tb ------
        acc2 = jnp.dot(p1[0:10].reshape(10 * tb, 84), t2_ref[0],
                       preferred_element_type=f32)
        for ki in range(1, 5):
            acc2 = acc2 + jnp.dot(p1[ki:ki + 10].reshape(10 * tb, 84), t2_ref[ki],
                                  preferred_element_type=f32)
        h2 = jnp.maximum(acc2 + sh2_ref[...], 0.0).astype(bf16)     # (10*tb, 120)

        # ---- pool2 columns --------------------------------------------------------
        hc2 = jnp.maximum(
            jnp.dot(h2, cp2_ref[0], preferred_element_type=f32),
            jnp.dot(h2, cp2_ref[1], preferred_element_type=f32))    # (10*tb, 60)
        hc2 = hc2.reshape(10, tb, 60)

        # ---- pool2 rows fused with fc1 (each matmul M=tb, K=60, N=120) -----------
        f1 = bf1_ref[...]                                           # (1, 120)
        for h in range(5):
            row = jnp.maximum(hc2[2 * h], hc2[2 * h + 1])           # (tb, 60) f32
            f1 = f1 + jnp.dot(row, wf1_ref[h], preferred_element_type=f32)

        # Dropout2d(0.25) is identity in eval mode.
        f2 = jnp.dot(f1, wf2_ref[...], preferred_element_type=f32) + bf2_ref[...]
        f3 = jnp.dot(f2, wf3_ref[...], preferred_element_type=f32) + bf3_ref[...]
        out_ref[...] = f3.astype(out_ref.dtype)                     # (tb, 128) lane-dense

    return kernel


# ------------------------------ wrapper (weight prep) ------------------------------

def _conv_toeplitz(w_scaled, placement):
    """(Cout,Cin,KH,KW) weights -> (KH, Cin*W_in, Cout*OW) width-Toeplitz matrices."""
    cout, cin, kh, kw = w_scaled.shape
    w_in, ow = placement.shape[1], placement.shape[2]
    t = jnp.einsum('ocKk,kwv->Kcwov', w_scaled, placement)
    return t.reshape(kh, cin * w_in, cout * ow)


def cnn_forward(x_nchw, p):
    n = x_nchw.shape[0]
    x = x_nchw[:, 0, :, :].astype(jnp.float32)            # (N, 32, 32); Cin = 1

    # Adaptive batch tile: multiple of 16 (bf16 sublane tile), up to 128.
    # For large batches (>=256) the grid has >=2 steps so v7x can use both TCs.
    tb = 128 if n >= 128 else max(16, -(-n // 16) * 16)
    n_pad = -(-n // tb) * tb
    if n_pad != n:
        x = jnp.pad(x, ((0, n_pad - n), (0, 0), (0, 0)))

    # H-only im2col in the wrapper (width handled by the Toeplitz weight):
    # xcat[oh, b, ki*32 + w] = x[b, oh+ki, w];  bf16 streaming input.
    xcat = jnp.concatenate([x[:, ki:ki + 28, :] for ki in range(5)], axis=-1)
    xcat = jnp.transpose(xcat, (1, 0, 2)).astype(jnp.bfloat16)      # (28, n_pad, 160)

    # Eval-mode BatchNorm (running_mean=0, running_var=1) folded into conv weights.
    scale1 = p["g1"] / jnp.sqrt(1.0 + BN_EPS)
    scale2 = p["g2"] / jnp.sqrt(1.0 + BN_EPS)
    t1 = _conv_toeplitz(p["w1"] * scale1[:, None, None, None], jnp.asarray(_PLACE1))
    t1 = t1.reshape(160, 168).astype(jnp.bfloat16)                  # fused-K conv1
    t2 = _conv_toeplitz(p["w2"] * scale2[:, None, None, None], jnp.asarray(_PLACE2))
    t2 = t2.astype(jnp.bfloat16)                                    # (5, 84, 120)
    sh1 = jnp.repeat(p["b1"] * scale1 + p["be1"], 28).reshape(1, 168)
    sh2 = jnp.repeat(p["b2"] * scale2 + p["be2"], 10).reshape(1, 120)
    cp1 = jnp.asarray(_CPOOL1, jnp.bfloat16)                        # (2, 168, 84)
    cp2 = jnp.asarray(_CPOOL2, jnp.bfloat16)                        # (2, 120, 60)

    # fc1 weight permuted so the kernel's (h, c, w) order matches PyTorch's NCHW
    # flatten (c, h, w); fc2/fc3 transposed to (in, out); fc3 lane-padded to 128.
    wf1 = p["wfc1"].reshape(120, 12, 5, 5).transpose(2, 1, 3, 0).reshape(5, 60, 120)
    bf1 = p["bfc1"].reshape(1, 120)
    wf2 = p["wfc2"].T                                               # (120, 60)
    bf2 = p["bfc2"].reshape(1, 60)
    wf3 = jnp.pad(p["wfc3"].T, ((0, 0), (0, 118)))                  # (60, 128)
    bf3 = jnp.pad(p["bfc3"], (0, 118)).reshape(1, 128)

    def resident(shape):
        nd = len(shape)
        return pl.BlockSpec(shape, lambda i: (0,) * nd)

    out = pl.pallas_call(
        _make_kernel(tb),
        out_shape=jax.ShapeDtypeStruct((n_pad, 128), jnp.float32),
        grid_spec=pltpu.PrefetchScalarGridSpec(
            num_scalar_prefetch=0,
            grid=(n_pad // tb,),
            in_specs=[
                pl.BlockSpec((28, tb, 160), lambda i: (0, i, 0)),  # im2col'd input
                resident((160, 168)),    # conv1 fused-K Toeplitz (BN-scaled, bf16)
                resident((1, 168)),      # conv1 shift (b*scale + beta)
                resident((2, 168, 84)),  # pool1 column selectors (bf16)
                resident((5, 84, 120)),  # conv2 Toeplitz taps (BN-scaled, bf16)
                resident((1, 120)),      # conv2 shift
                resident((2, 120, 60)),  # pool2 column selectors (bf16)
                resident((5, 60, 120)),  # fc1 weight (flatten-order permuted)
                resident((1, 120)),      # fc1 bias
                resident((120, 60)),     # fc2 weight
                resident((1, 60)),       # fc2 bias
                resident((60, 128)),     # fc3 weight (lane-padded)
                resident((1, 128)),      # fc3 bias (lane-padded)
            ],
            out_specs=pl.BlockSpec((tb, 128), lambda i: (i, 0)),
        ),
        compiler_params=pltpu.CompilerParams(
            dimension_semantics=("parallel",)),
    )(xcat, t1, sh1, cp1, t2, sh2, cp2, wf1, bf1, wf2, bf2, wf3, bf3)
    return out[:n, :10]


# ------------------------------ pure-JAX reference --------------------------------

def cnn_reference(x, p):
    def conv(x, w, b):
        y = jax.lax.conv_general_dilated(
            x, w, (1, 1), "VALID", dimension_numbers=("NCHW", "OIHW", "NCHW"))
        return y + b.reshape(1, -1, 1, 1)

    def bn(x, g, be):
        return x * (g / jnp.sqrt(1.0 + BN_EPS)).reshape(1, -1, 1, 1) + be.reshape(1, -1, 1, 1)

    def pool(x):
        return jax.lax.reduce_window(
            x, -jnp.inf, jax.lax.max, (1, 1, 2, 2), (1, 1, 2, 2), "VALID")

    h = pool(jnp.maximum(bn(conv(x, p["w1"], p["b1"]), p["g1"], p["be1"]), 0.0))
    h = pool(jnp.maximum(bn(conv(h, p["w2"], p["b2"]), p["g2"], p["be2"]), 0.0))
    h = h.reshape(x.shape[0], -1)
    h = h @ p["wfc1"].T + p["bfc1"]
    h = h @ p["wfc2"].T + p["bfc2"]
    h = h @ p["wfc3"].T + p["bfc3"]
    return h


# ------------------------------------- main ----------------------------------------

def init_params(key):
    ks = jax.random.split(key, 14)

    def conv_w(k, cout, cin, kh, kw):
        return jax.random.normal(k, (cout, cin, kh, kw), jnp.float32) / np.sqrt(cin * kh * kw)

    def lin_w(k, fout, fin):
        return jax.random.normal(k, (fout, fin), jnp.float32) / np.sqrt(fin)

    return {
        "w1": conv_w(ks[0], 6, 1, 5, 5),
        "b1": 0.1 * jax.random.normal(ks[1], (6,), jnp.float32),
        "g1": 1.0 + 0.1 * jax.random.normal(ks[2], (6,), jnp.float32),
        "be1": 0.1 * jax.random.normal(ks[3], (6,), jnp.float32),
        "w2": conv_w(ks[4], 12, 6, 5, 5),
        "b2": 0.1 * jax.random.normal(ks[5], (12,), jnp.float32),
        "g2": 1.0 + 0.1 * jax.random.normal(ks[6], (12,), jnp.float32),
        "be2": 0.1 * jax.random.normal(ks[7], (12,), jnp.float32),
        "wfc1": lin_w(ks[8], 120, 300),
        "bfc1": 0.1 * jax.random.normal(ks[9], (120,), jnp.float32),
        "wfc2": lin_w(ks[10], 60, 120),
        "bfc2": 0.1 * jax.random.normal(ks[11], (60,), jnp.float32),
        "wfc3": lin_w(ks[12], 10, 60),
        "bfc3": 0.1 * jax.random.normal(ks[13], (10,), jnp.float32),
    }


if __name__ == "__main__":
    root = jax.random.PRNGKey(0)
    kx, kp = jax.random.split(root)

    # nn.Conv2d(1,6,5) -> pool -> Conv2d(6,12,5) -> pool -> 5*5*12 flatten
    # implies a 32x32 single-channel input.
    x = jax.random.normal(kx, (2, 1, 32, 32), jnp.float32)
    params = init_params(kp)

    fwd = jax.jit(cnn_forward)
    out = jax.block_until_ready(fwd(x, params))
    ref = jax.block_until_ready(cnn_reference(x, params))

    assert out.shape == (2, 10), out.shape
    assert np.all(np.isfinite(np.asarray(out)))
    np.testing.assert_allclose(np.asarray(out), np.asarray(ref), rtol=2e-2, atol=2e-2)

    print("KERNEL_OK")
</pallas_src>

<mosaic_0001>
module attributes {stable_mosaic.version = 11 : i64} {
  func.func @kernel(%arg0: i32, %arg1: memref<28x16x160xbf16, #tpu.memory_space<vmem>>, %arg2: memref<160x168xbf16, #tpu.memory_space<vmem>>, %arg3: memref<1x168xf32, #tpu.memory_space<vmem>>, %arg4: memref<2x168x84xbf16, #tpu.memory_space<vmem>>, %arg5: memref<5x84x120xbf16, #tpu.memory_space<vmem>>, %arg6: memref<1x120xf32, #tpu.memory_space<vmem>>, %arg7: memref<2x120x60xbf16, #tpu.memory_space<vmem>>, %arg8: memref<5x60x120xf32, #tpu.memory_space<vmem>>, %arg9: memref<1x120xf32, #tpu.memory_space<vmem>>, %arg10: memref<120x60xf32, #tpu.memory_space<vmem>>, %arg11: memref<1x60xf32, #tpu.memory_space<vmem>>, %arg12: memref<60x128xf32, #tpu.memory_space<vmem>>, %arg13: memref<1x128xf32, #tpu.memory_space<vmem>>, %arg14: memref<16x128xf32, #tpu.memory_space<vmem>>) attributes {dimension_semantics = [#tpu.dimension_semantics<parallel>], iteration_bounds = array<i64: 1>, scalar_prefetch = 0 : i64, scratch_operands = 0 : i64, tpu.core_type = #tpu.core_type<tc>, window_params = [{transform_indices = @transform_0, window_bounds = array<i64: 28, 16, 160>}, {pipeline_mode = #tpu.pipeline_mode<synchronous>, transform_indices = @transform_1, window_bounds = array<i64: 160, 168>}, {pipeline_mode = #tpu.pipeline_mode<synchronous>, transform_indices = @transform_2, window_bounds = array<i64: 1, 168>}, {pipeline_mode = #tpu.pipeline_mode<synchronous>, transform_indices = @transform_3, window_bounds = array<i64: 2, 168, 84>}, {pipeline_mode = #tpu.pipeline_mode<synchronous>, transform_indices = @transform_4, window_bounds = array<i64: 5, 84, 120>}, {pipeline_mode = #tpu.pipeline_mode<synchronous>, transform_indices = @transform_5, window_bounds = array<i64: 1, 120>}, {pipeline_mode = #tpu.pipeline_mode<synchronous>, transform_indices = @transform_6, window_bounds = array<i64: 2, 120, 60>}, {pipeline_mode = #tpu.pipeline_mode<synchronous>, transform_indices = @transform_7, window_bounds = array<i64: 5, 60, 120>}, {pipeline_mode = #tpu.pipeline_mode<synchronous>, transform_indices = @transform_8, window_bounds = array<i64: 1, 120>}, {pipeline_mode = #tpu.pipeline_mode<synchronous>, transform_indices = @transform_9, window_bounds = array<i64: 120, 60>}, {pipeline_mode = #tpu.pipeline_mode<synchronous>, transform_indices = @transform_10, window_bounds = array<i64: 1, 60>}, {pipeline_mode = #tpu.pipeline_mode<synchronous>, transform_indices = @transform_11, window_bounds = array<i64: 60, 128>}, {pipeline_mode = #tpu.pipeline_mode<synchronous>, transform_indices = @transform_12, window_bounds = array<i64: 1, 128>}, {transform_indices = @transform_13, window_bounds = array<i64: 16, 128>}]} {
    %c0 = arith.constant 0 : index
    %c0_0 = arith.constant 0 : index
    %c0_1 = arith.constant 0 : index
    %0 = vector.load %arg1[%c0, %c0_0, %c0_1] : memref<28x16x160xbf16, #tpu.memory_space<vmem>>, vector<28x16x160xbf16>
    %1 = vector.shape_cast %0 : vector<28x16x160xbf16> to vector<448x160xbf16>
    %c0_2 = arith.constant 0 : index
    %c0_3 = arith.constant 0 : index
    %2 = vector.load %arg2[%c0_2, %c0_3] : memref<160x168xbf16, #tpu.memory_space<vmem>>, vector<160x168xbf16>
    %cst = arith.constant dense<0.000000e+00> : vector<448x168xf32>
    %3 = tpu.matmul %1, %2, %cst {dimension_numbers = #tpu.dot_dimension_numbers<[1], [0], [0], [1], [0, 0, 1, 1], [], []>} : vector<448x160xbf16>, vector<160x168xbf16>, vector<448x168xf32> -> vector<448x168xf32>
    %c0_4 = arith.constant 0 : index
    %c0_5 = arith.constant 0 : index
    %4 = vector.load %arg3[%c0_4, %c0_5] : memref<1x168xf32, #tpu.memory_space<vmem>>, vector<1x168xf32>
    %5 = vector.broadcast %4 : vector<1x168xf32> to vector<448x168xf32>
    %6 = arith.addf %3, %5 : vector<448x168xf32>
    %cst_6 = arith.constant 0.000000e+00 : f32
    %7 = vector.broadcast %cst_6 : f32 to vector<448x168xf32>
    %8 = arith.maximumf %6, %7 : vector<448x168xf32>
    %9 = arith.truncf %8 : vector<448x168xf32> to vector<448x168xbf16>
    %c0_7 = arith.constant 0 : index
    %c0_8 = arith.constant 0 : index
    %c0_9 = arith.constant 0 : index
    %10 = vector.load %arg4[%c0_7, %c0_8, %c0_9] : memref<2x168x84xbf16, #tpu.memory_space<vmem>>, vector<1x168x84xbf16>
    %11 = vector.shape_cast %10 : vector<1x168x84xbf16> to vector<168x84xbf16>
    %cst_10 = arith.constant dense<0.000000e+00> : vector<448x84xf32>
    %12 = tpu.matmul %9, %11, %cst_10 {dimension_numbers = #tpu.dot_dimension_numbers<[1], [0], [0], [1], [0, 0, 1, 1], [], []>} : vector<448x168xbf16>, vector<168x84xbf16>, vector<448x84xf32> -> vector<448x84xf32>
    %c1 = arith.constant 1 : index
    %c0_11 = arith.constant 0 : index
    %c0_12 = arith.constant 0 : index
    %13 = vector.load %arg4[%c1, %c0_11, %c0_12] : memref<2x168x84xbf16, #tpu.memory_space<vmem>>, vector<1x168x84xbf16>
    %14 = vector.shape_cast %13 : vector<1x168x84xbf16> to vector<168x84xbf16>
    %cst_13 = arith.constant dense<0.000000e+00> : vector<448x84xf32>
    %15 = tpu.matmul %9, %14, %cst_13 {dimension_numbers = #tpu.dot_dimension_numbers<[1], [0], [0], [1], [0, 0, 1, 1], [], []>} : vector<448x168xbf16>, vector<168x84xbf16>, vector<448x84xf32> -> vector<448x84xf32>
    %16 = arith.maximumf %12, %15 : vector<448x84xf32>
    %17 = vector.shape_cast %16 : vector<448x84xf32> to vector<28x16x84xf32>
    %18 = vector.extract_strided_slice %17 {offsets = [0, 0, 0], sizes = [1, 16, 84], strides = [1, 1, 1]} : vector<28x16x84xf32> to vector<1x16x84xf32>
    %19 = vector.shape_cast %18 : vector<1x16x84xf32> to vector<16x84xf32>
    %20 = vector.extract_strided_slice %17 {offsets = [1, 0, 0], sizes = [1, 16, 84], strides = [1, 1, 1]} : vector<28x16x84xf32> to vector<1x16x84xf32>
    %21 = vector.shape_cast %20 : vector<1x16x84xf32> to vector<16x84xf32>
    %22 = arith.maximumf %19, %21 : vector<16x84xf32>
    %23 = arith.truncf %22 : vector<16x84xf32> to vector<16x84xbf16>
    %24 = vector.extract_strided_slice %17 {offsets = [2, 0, 0], sizes = [1, 16, 84], strides = [1, 1, 1]} : vector<28x16x84xf32> to vector<1x16x84xf32>
    %25 = vector.shape_cast %24 : vector<1x16x84xf32> to vector<16x84xf32>
    %26 = vector.extract_strided_slice %17 {offsets = [3, 0, 0], sizes = [1, 16, 84], strides = [1, 1, 1]} : vector<28x16x84xf32> to vector<1x16x84xf32>
    %27 = vector.shape_cast %26 : vector<1x16x84xf32> to vector<16x84xf32>
    %28 = arith.maximumf %25, %27 : vector<16x84xf32>
    %29 = arith.truncf %28 : vector<16x84xf32> to vector<16x84xbf16>
    %30 = vector.extract_strided_slice %17 {offsets = [4, 0, 0], sizes = [1, 16, 84], strides = [1, 1, 1]} : vector<28x16x84xf32> to vector<1x16x84xf32>
    %31 = vector.shape_cast %30 : vector<1x16x84xf32> to vector<16x84xf32>
    %32 = vector.extract_strided_slice %17 {offsets = [5, 0, 0], sizes = [1, 16, 84], strides = [1, 1, 1]} : vector<28x16x84xf32> to vector<1x16x84xf32>
    %33 = vector.shape_cast %32 : vector<1x16x84xf32> to vector<16x84xf32>
    %34 = arith.maximumf %31, %33 : vector<16x84xf32>
    %35 = arith.truncf %34 : vector<16x84xf32> to vector<16x84xbf16>
    %36 = vector.extract_strided_slice %17 {offsets = [6, 0, 0], sizes = [1, 16, 84], strides = [1, 1, 1]} : vector<28x16x84xf32> to vector<1x16x84xf32>
    %37 = vector.shape_cast %36 : vector<1x16x84xf32> to vector<16x84xf32>
    %38 = vector.extract_strided_slice %17 {offsets = [7, 0, 0], sizes = [1, 16, 84], strides = [1, 1, 1]} : vector<28x16x84xf32> to vector<1x16x84xf32>
    %39 = vector.shape_cast %38 : vector<1x16x84xf32> to vector<16x84xf32>
    %40 = arith.maximumf %37, %39 : vector<16x84xf32>
    %41 = arith.truncf %40 : vector<16x84xf32> to vector<16x84xbf16>
    %42 = vector.extract_strided_slice %17 {offsets = [8, 0, 0], sizes = [1, 16, 84], strides = [1, 1, 1]} : vector<28x16x84xf32> to vector<1x16x84xf32>
    %43 = vector.shape_cast %42 : vector<1x16x84xf32> to vector<16x84xf32>
    %44 = vector.extract_strided_slice %17 {offsets = [9, 0, 0], sizes = [1, 16, 84], strides = [1, 1, 1]} : vector<28x16x84xf32> to vector<1x16x84xf32>
    %45 = vector.shape_cast %44 : vector<1x16x84xf32> to vector<16x84xf32>
    %46 = arith.maximumf %43, %45 : vector<16x84xf32>
    %47 = arith.truncf %46 : vector<16x84xf32> to vector<16x84xbf16>
    %48 = vector.extract_strided_slice %17 {offsets = [10, 0, 0], sizes = [1, 16, 84], strides = [1, 1, 1]} : vector<28x16x84xf32> to vector<1x16x84xf32>
    %49 = vector.shape_cast %48 : vector<1x16x84xf32> to vector<16x84xf32>
    %50 = vector.extract_strided_slice %17 {offsets = [11, 0, 0], sizes = [1, 16, 84], strides = [1, 1, 1]} : vector<28x16x84xf32> to vector<1x16x84xf32>
    %51 = vector.shape_cast %50 : vector<1x16x84xf32> to vector<16x84xf32>
    %52 = arith.maximumf %49, %51 : vector<16x84xf32>
    %53 = arith.truncf %52 : vector<16x84xf32> to vector<16x84xbf16>
    %54 = vector.extract_strided_slice %17 {offsets = [12, 0, 0], sizes = [1, 16, 84], strides = [1, 1, 1]} : vector<28x16x84xf32> to vector<1x16x84xf32>
    %55 = vector.shape_cast %54 : vector<1x16x84xf32> to vector<16x84xf32>
    %56 = vector.extract_strided_slice %17 {offsets = [13, 0, 0], sizes = [1, 16, 84], strides = [1, 1, 1]} : vector<28x16x84xf32> to vector<1x16x84xf32>
    %57 = vector.shape_cast %56 : vector<1x16x84xf32> to vector<16x84xf32>
    %58 = arith.maximumf %55, %57 : vector<16x84xf32>
    %59 = arith.truncf %58 : vector<16x84xf32> to vector<16x84xbf16>
    %60 = vector.extract_strided_slice %17 {offsets = [14, 0, 0], sizes = [1, 16, 84], strides = [1, 1, 1]} : vector<28x16x84xf32> to vector<1x16x84xf32>
    %61 = vector.shape_cast %60 : vector<1x16x84xf32> to vector<16x84xf32>
    %62 = vector.extract_strided_slice %17 {offsets = [15, 0, 0], sizes = [1, 16, 84], strides = [1, 1, 1]} : vector<28x16x84xf32> to vector<1x16x84xf32>
    %63 = vector.shape_cast %62 : vector<1x16x84xf32> to vector<16x84xf32>
    %64 = arith.maximumf %61, %63 : vector<16x84xf32>
    %65 = arith.truncf %64 : vector<16x84xf32> to vector<16x84xbf16>
    %66 = vector.extract_strided_slice %17 {offsets = [16, 0, 0], sizes = [1, 16, 84], strides = [1, 1, 1]} : vector<28x16x84xf32> to vector<1x16x84xf32>
    %67 = vector.shape_cast %66 : vector<1x16x84xf32> to vector<16x84xf32>
    %68 = vector.extract_strided_slice %17 {offsets = [17, 0, 0], sizes = [1, 16, 84], strides = [1, 1, 1]} : vector<28x16x84xf32> to vector<1x16x84xf32>
    %69 = vector.shape_cast %68 : vector<1x16x84xf32> to vector<16x84xf32>
    %70 = arith.maximumf %67, %69 : vector<16x84xf32>
    %71 = arith.truncf %70 : vector<16x84xf32> to vector<16x84xbf16>
    %72 = vector.extract_strided_slice %17 {offsets = [18, 0, 0], sizes = [1, 16, 84], strides = [1, 1, 1]} : vector<28x16x84xf32> to vector<1x16x84xf32>
    %73 = vector.shape_cast %72 : vector<1x16x84xf32> to vector<16x84xf32>
    %74 = vector.extract_strided_slice %17 {offsets = [19, 0, 0], sizes = [1, 16, 84], strides = [1, 1, 1]} : vector<28x16x84xf32> to vector<1x16x84xf32>
    %75 = vector.shape_cast %74 : vector<1x16x84xf32> to vector<16x84xf32>
    %76 = arith.maximumf %73, %75 : vector<16x84xf32>
    %77 = arith.truncf %76 : vector<16x84xf32> to vector<16x84xbf16>
    %78 = vector.extract_strided_slice %17 {offsets = [20, 0, 0], sizes = [1, 16, 84], strides = [1, 1, 1]} : vector<28x16x84xf32> to vector<1x16x84xf32>
    %79 = vector.shape_cast %78 : vector<1x16x84xf32> to vector<16x84xf32>
    %80 = vector.extract_strided_slice %17 {offsets = [21, 0, 0], sizes = [1, 16, 84], strides = [1, 1, 1]} : vector<28x16x84xf32> to vector<1x16x84xf32>
    %81 = vector.shape_cast %80 : vector<1x16x84xf32> to vector<16x84xf32>
    %82 = arith.maximumf %79, %81 : vector<16x84xf32>
    %83 = arith.truncf %82 : vector<16x84xf32> to vector<16x84xbf16>
    %84 = vector.extract_strided_slice %17 {offsets = [22, 0, 0], sizes = [1, 16, 84], strides = [1, 1, 1]} : vector<28x16x84xf32> to vector<1x16x84xf32>
    %85 = vector.shape_cast %84 : vector<1x16x84xf32> to vector<16x84xf32>
    %86 = vector.extract_strided_slice %17 {offsets = [23, 0, 0], sizes = [1, 16, 84], strides = [1, 1, 1]} : vector<28x16x84xf32> to vector<1x16x84xf32>
    %87 = vector.shape_cast %86 : vector<1x16x84xf32> to vector<16x84xf32>
    %88 = arith.maximumf %85, %87 : vector<16x84xf32>
    %89 = arith.truncf %88 : vector<16x84xf32> to vector<16x84xbf16>
    %90 = vector.extract_strided_slice %17 {offsets = [24, 0, 0], sizes = [1, 16, 84], strides = [1, 1, 1]} : vector<28x16x84xf32> to vector<1x16x84xf32>
    %91 = vector.shape_cast %90 : vector<1x16x84xf32> to vector<16x84xf32>
    %92 = vector.extract_strided_slice %17 {offsets = [25, 0, 0], sizes = [1, 16, 84], strides = [1, 1, 1]} : vector<28x16x84xf32> to vector<1x16x84xf32>
    %93 = vector.shape_cast %92 : vector<1x16x84xf32> to vector<16x84xf32>
    %94 = arith.maximumf %91, %93 : vector<16x84xf32>
    %95 = arith.truncf %94 : vector<16x84xf32> to vector<16x84xbf16>
    %96 = vector.extract_strided_slice %17 {offsets = [26, 0, 0], sizes = [1, 16, 84], strides = [1, 1, 1]} : vector<28x16x84xf32> to vector<1x16x84xf32>
    %97 = vector.shape_cast %96 : vector<1x16x84xf32> to vector<16x84xf32>
    %98 = vector.extract_strided_slice %17 {offsets = [27, 0, 0], sizes = [1, 16, 84], strides = [1, 1, 1]} : vector<28x16x84xf32> to vector<1x16x84xf32>
    %99 = vector.shape_cast %98 : vector<1x16x84xf32> to vector<16x84xf32>
    %100 = arith.maximumf %97, %99 : vector<16x84xf32>
    %101 = arith.truncf %100 : vector<16x84xf32> to vector<16x84xbf16>
    %102 = vector.shape_cast %23 : vector<16x84xbf16> to vector<1x16x84xbf16>
    %103 = vector.shape_cast %29 : vector<16x84xbf16> to vector<1x16x84xbf16>
    %104 = vector.shape_cast %35 : vector<16x84xbf16> to vector<1x16x84xbf16>
    %105 = vector.shape_cast %41 : vector<16x84xbf16> to vector<1x16x84xbf16>
    %106 = vector.shape_cast %47 : vector<16x84xbf16> to vector<1x16x84xbf16>
    %107 = vector.shape_cast %53 : vector<16x84xbf16> to vector<1x16x84xbf16>
    %108 = vector.shape_cast %59 : vector<16x84xbf16> to vector<1x16x84xbf16>
    %109 = vector.shape_cast %65 : vector<16x84xbf16> to vector<1x16x84xbf16>
    %110 = vector.shape_cast %71 : vector<16x84xbf16> to vector<1x16x84xbf16>
    %111 = vector.shape_cast %77 : vector<16x84xbf16> to vector<1x16x84xbf16>
    %112 = vector.shape_cast %83 : vector<16x84xbf16> to vector<1x16x84xbf16>
    %113 = vector.shape_cast %89 : vector<16x84xbf16> to vector<1x16x84xbf16>
    %114 = vector.shape_cast %95 : vector<16x84xbf16> to vector<1x16x84xbf16>
    %115 = vector.shape_cast %101 : vector<16x84xbf16> to vector<1x16x84xbf16>
    %116 = tpu.concatenate %102, %103, %104, %105, %106, %107, %108, %109, %110, %111, %112, %113, %114, %115 in 0 : vector<1x16x84xbf16>, vector<1x16x84xbf16>, vector<1x16x84xbf16>, vector<1x16x84xbf16>, vector<1x16x84xbf16>, vector<1x16x84xbf16>, vector<1x16x84xbf16>, vector<1x16x84xbf16>, vector<1x16x84xbf16>, vector<1x16x84xbf16>, vector<1x16x84xbf16>, vector<1x16x84xbf16>, vector<1x16x84xbf16>, vector<1x16x84xbf16> -> vector<14x16x84xbf16>
    %117 = vector.extract_strided_slice %116 {offsets = [0, 0, 0], sizes = [10, 16, 84], strides = [1, 1, 1]} : vector<14x16x84xbf16> to vector<10x16x84xbf16>
    %118 = vector.shape_cast %117 : vector<10x16x84xbf16> to vector<160x84xbf16>
    %c0_14 = arith.constant 0 : index
    %c0_15 = arith.constant 0 : index
    %c0_16 = arith.constant 0 : index
    %119 = vector.load %arg5[%c0_14, %c0_15, %c0_16] : memref<5x84x120xbf16, #tpu.memory_space<vmem>>, vector<1x84x120xbf16>
    %120 = vector.shape_cast %119 : vector<1x84x120xbf16> to vector<84x120xbf16>
    %cst_17 = arith.constant dense<0.000000e+00> : vector<160x120xf32>
    %121 = tpu.matmul %118, %120, %cst_17 {dimension_numbers = #tpu.dot_dimension_numbers<[1], [0], [0], [1], [0, 0, 1, 1], [], []>} : vector<160x84xbf16>, vector<84x120xbf16>, vector<160x120xf32> -> vector<160x120xf32>
    %122 = vector.extract_strided_slice %116 {offsets = [1, 0, 0], sizes = [10, 16, 84], strides = [1, 1, 1]} : vector<14x16x84xbf16> to vector<10x16x84xbf16>
    %123 = vector.shape_cast %122 : vector<10x16x84xbf16> to vector<160x84xbf16>
    %c1_18 = arith.constant 1 : index
    %c0_19 = arith.constant 0 : index
    %c0_20 = arith.constant 0 : index
    %124 = vector.load %arg5[%c1_18, %c0_19, %c0_20] : memref<5x84x120xbf16, #tpu.memory_space<vmem>>, vector<1x84x120xbf16>
    %125 = vector.shape_cast %124 : vector<1x84x120xbf16> to vector<84x120xbf16>
    %cst_21 = arith.constant dense<0.000000e+00> : vector<160x120xf32>
    %126 = tpu.matmul %123, %125, %cst_21 {dimension_numbers = #tpu.dot_dimension_numbers<[1], [0], [0], [1], [0, 0, 1, 1], [], []>} : vector<160x84xbf16>, vector<84x120xbf16>, vector<160x120xf32> -> vector<160x120xf32>
    %127 = arith.addf %121, %126 : vector<160x120xf32>
    %128 = vector.extract_strided_slice %116 {offsets = [2, 0, 0], sizes = [10, 16, 84], strides = [1, 1, 1]} : vector<14x16x84xbf16> to vector<10x16x84xbf16>
    %129 = vector.shape_cast %128 : vector<10x16x84xbf16> to vector<160x84xbf16>
    %c2 = arith.constant 2 : index
    %c0_22 = arith.constant 0 : index
    %c0_23 = arith.constant 0 : index
    %130 = vector.load %arg5[%c2, %c0_22, %c0_23] : memref<5x84x120xbf16, #tpu.memory_space<vmem>>, vector<1x84x120xbf16>
    %131 = vector.shape_cast %130 : vector<1x84x120xbf16> to vector<84x120xbf16>
    %cst_24 = arith.constant dense<0.000000e+00> : vector<160x120xf32>
    %132 = tpu.matmul %129, %131, %cst_24 {dimension_numbers = #tpu.dot_dimension_numbers<[1], [0], [0], [1], [0, 0, 1, 1], [], []>} : vector<160x84xbf16>, vector<84x120xbf16>, vector<160x120xf32> -> vector<160x120xf32>
    %133 = arith.addf %127, %132 : vector<160x120xf32>
    %134 = vector.extract_strided_slice %116 {offsets = [3, 0, 0], sizes = [10, 16, 84], strides = [1, 1, 1]} : vector<14x16x84xbf16> to vector<10x16x84xbf16>
    %135 = vector.shape_cast %134 : vector<10x16x84xbf16> to vector<160x84xbf16>
    %c3 = arith.constant 3 : index
    %c0_25 = arith.constant 0 : index
    %c0_26 = arith.constant 0 : index
    %136 = vector.load %arg5[%c3, %c0_25, %c0_26] : memref<5x84x120xbf16, #tpu.memory_space<vmem>>, vector<1x84x120xbf16>
    %137 = vector.shape_cast %136 : vector<1x84x120xbf16> to vector<84x120xbf16>
    %cst_27 = arith.constant dense<0.000000e+00> : vector<160x120xf32>
    %138 = tpu.matmul %135, %137, %cst_27 {dimension_numbers = #tpu.dot_dimension_numbers<[1], [0], [0], [1], [0, 0, 1, 1], [], []>} : vector<160x84xbf16>, vector<84x120xbf16>, vector<160x120xf32> -> vector<160x120xf32>
    %139 = arith.addf %133, %138 : vector<160x120xf32>
    %140 = vector.extract_strided_slice %116 {offsets = [4, 0, 0], sizes = [10, 16, 84], strides = [1, 1, 1]} : vector<14x16x84xbf16> to vector<10x16x84xbf16>
    %141 = vector.shape_cast %140 : vector<10x16x84xbf16> to vector<160x84xbf16>
    %c4 = arith.constant 4 : index
    %c0_28 = arith.constant 0 : index
    %c0_29 = arith.constant 0 : index
    %142 = vector.load %arg5[%c4, %c0_28, %c0_29] : memref<5x84x120xbf16, #tpu.memory_space<vmem>>, vector<1x84x120xbf16>
    %143 = vector.shape_cast %142 : vector<1x84x120xbf16> to vector<84x120xbf16>
    %cst_30 = arith.constant dense<0.000000e+00> : vector<160x120xf32>
    %144 = tpu.matmul %141, %143, %cst_30 {dimension_numbers = #tpu.dot_dimension_numbers<[1], [0], [0], [1], [0, 0, 1, 1], [], []>} : vector<160x84xbf16>, vector<84x120xbf16>, vector<160x120xf32> -> vector<160x120xf32>
    %145 = arith.addf %139, %144 : vector<160x120xf32>
    %c0_31 = arith.constant 0 : index
    %c0_32 = arith.constant 0 : index
    %146 = vector.load %arg6[%c0_31, %c0_32] : memref<1x120xf32, #tpu.memory_space<vmem>>, vector<1x120xf32>
    %147 = vector.broadcast %146 : vector<1x120xf32> to vector<160x120xf32>
    %148 = arith.addf %145, %147 : vector<160x120xf32>
    %cst_33 = arith.constant 0.000000e+00 : f32
    %149 = vector.broadcast %cst_33 : f32 to vector<160x120xf32>
    %150 = arith.maximumf %148, %149 : vector<160x120xf32>
    %151 = arith.truncf %150 : vector<160x120xf32> to vector<160x120xbf16>
    %c0_34 = arith.constant 0 : index
    %c0_35 = arith.constant 0 : index
    %c0_36 = arith.constant 0 : index
    %152 = vector.load %arg7[%c0_34, %c0_35, %c0_36] : memref<2x120x60xbf16, #tpu.memory_space<vmem>>, vector<1x120x60xbf16>
    %153 = vector.shape_cast %152 : vector<1x120x60xbf16> to vector<120x60xbf16>
    %cst_37 = arith.constant dense<0.000000e+00> : vector<160x60xf32>
    %154 = tpu.matmul %151, %153, %cst_37 {dimension_numbers = #tpu.dot_dimension_numbers<[1], [0], [0], [1], [0, 0, 1, 1], [], []>} : vector<160x120xbf16>, vector<120x60xbf16>, vector<160x60xf32> -> vector<160x60xf32>
    %c1_38 = arith.constant 1 : index
    %c0_39 = arith.constant 0 : index
    %c0_40 = arith.constant 0 : index
    %155 = vector.load %arg7[%c1_38, %c0_39, %c0_40] : memref<2x120x60xbf16, #tpu.memory_space<vmem>>, vector<1x120x60xbf16>
    %156 = vector.shape_cast %155 : vector<1x120x60xbf16> to vector<120x60xbf16>
    %cst_41 = arith.constant dense<0.000000e+00> : vector<160x60xf32>
    %157 = tpu.matmul %151, %156, %cst_41 {dimension_numbers = #tpu.dot_dimension_numbers<[1], [0], [0], [1], [0, 0, 1, 1], [], []>} : vector<160x120xbf16>, vector<120x60xbf16>, vector<160x60xf32> -> vector<160x60xf32>
    %158 = arith.maximumf %154, %157 : vector<160x60xf32>
    %159 = vector.shape_cast %158 : vector<160x60xf32> to vector<10x16x60xf32>
    %c0_42 = arith.constant 0 : index
    %c0_43 = arith.constant 0 : index
    %160 = vector.load %arg9[%c0_42, %c0_43] : memref<1x120xf32, #tpu.memory_space<vmem>>, vector<1x120xf32>
    %161 = vector.extract_strided_slice %159 {offsets = [0, 0, 0], sizes = [1, 16, 60], strides = [1, 1, 1]} : vector<10x16x60xf32> to vector<1x16x60xf32>
    %162 = vector.shape_cast %161 : vector<1x16x60xf32> to vector<16x60xf32>
    %163 = vector.extract_strided_slice %159 {offsets = [1, 0, 0], sizes = [1, 16, 60], strides = [1, 1, 1]} : vector<10x16x60xf32> to vector<1x16x60xf32>
    %164 = vector.shape_cast %163 : vector<1x16x60xf32> to vector<16x60xf32>
    %165 = arith.maximumf %162, %164 : vector<16x60xf32>
    %c0_44 = arith.constant 0 : index
    %c0_45 = arith.constant 0 : index
    %c0_46 = arith.constant 0 : index
    %166 = vector.load %arg8[%c0_44, %c0_45, %c0_46] : memref<5x60x120xf32, #tpu.memory_space<vmem>>, vector<1x60x120xf32>
    %167 = vector.shape_cast %166 : vector<1x60x120xf32> to vector<60x120xf32>
    %cst_47 = arith.constant dense<0.000000e+00> : vector<16x120xf32>
    %168 = tpu.matmul %165, %167, %cst_47 {dimension_numbers = #tpu.dot_dimension_numbers<[1], [0], [0], [1], [0, 0, 1, 1], [], []>} : vector<16x60xf32>, vector<60x120xf32>, vector<16x120xf32> -> vector<16x120xf32>
    %169 = vector.broadcast %160 : vector<1x120xf32> to vector<16x120xf32>
    %170 = arith.addf %169, %168 : vector<16x120xf32>
    %171 = vector.extract_strided_slice %159 {offsets = [2, 0, 0], sizes = [1, 16, 60], strides = [1, 1, 1]} : vector<10x16x60xf32> to vector<1x16x60xf32>
    %172 = vector.shape_cast %171 : vector<1x16x60xf32> to vector<16x60xf32>
    %173 = vector.extract_strided_slice %159 {offsets = [3, 0, 0], sizes = [1, 16, 60], strides = [1, 1, 1]} : vector<10x16x60xf32> to vector<1x16x60xf32>
    %174 = vector.shape_cast %173 : vector<1x16x60xf32> to vector<16x60xf32>
    %175 = arith.maximumf %172, %174 : vector<16x60xf32>
    %c1_48 = arith.constant 1 : index
    %c0_49 = arith.constant 0 : index
    %c0_50 = arith.constant 0 : index
    %176 = vector.load %arg8[%c1_48, %c0_49, %c0_50] : memref<5x60x120xf32, #tpu.memory_space<vmem>>, vector<1x60x120xf32>
    %177 = vector.shape_cast %176 : vector<1x60x120xf32> to vector<60x120xf32>
    %cst_51 = arith.constant dense<0.000000e+00> : vector<16x120xf32>
    %178 = tpu.matmul %175, %177, %cst_51 {dimension_numbers = #tpu.dot_dimension_numbers<[1], [0], [0], [1], [0, 0, 1, 1], [], []>} : vector<16x60xf32>, vector<60x120xf32>, vector<16x120xf32> -> vector<16x120xf32>
    %179 = arith.addf %170, %178 : vector<16x120xf32>
    %180 = vector.extract_strided_slice %159 {offsets = [4, 0, 0], sizes = [1, 16, 60], strides = [1, 1, 1]} : vector<10x16x60xf32> to vector<1x16x60xf32>
    %181 = vector.shape_cast %180 : vector<1x16x60xf32> to vector<16x60xf32>
    %182 = vector.extract_strided_slice %159 {offsets = [5, 0, 0], sizes = [1, 16, 60], strides = [1, 1, 1]} : vector<10x16x60xf32> to vector<1x16x60xf32>
    %183 = vector.shape_cast %182 : vector<1x16x60xf32> to vector<16x60xf32>
    %184 = arith.maximumf %181, %183 : vector<16x60xf32>
    %c2_52 = arith.constant 2 : index
    %c0_53 = arith.constant 0 : index
    %c0_54 = arith.constant 0 : index
    %185 = vector.load %arg8[%c2_52, %c0_53, %c0_54] : memref<5x60x120xf32, #tpu.memory_space<vmem>>, vector<1x60x120xf32>
    %186 = vector.shape_cast %185 : vector<1x60x120xf32> to vector<60x120xf32>
    %cst_55 = arith.constant dense<0.000000e+00> : vector<16x120xf32>
    %187 = tpu.matmul %184, %186, %cst_55 {dimension_numbers = #tpu.dot_dimension_numbers<[1], [0], [0], [1], [0, 0, 1, 1], [], []>} : vector<16x60xf32>, vector<60x120xf32>, vector<16x120xf32> -> vector<16x120xf32>
    %188 = arith.addf %179, %187 : vector<16x120xf32>
    %189 = vector.extract_strided_slice %159 {offsets = [6, 0, 0], sizes = [1, 16, 60], strides = [1, 1, 1]} : vector<10x16x60xf32> to vector<1x16x60xf32>
    %190 = vector.shape_cast %189 : vector<1x16x60xf32> to vector<16x60xf32>
    %191 = vector.extract_strided_slice %159 {offsets = [7, 0, 0], sizes = [1, 16, 60], strides = [1, 1, 1]} : vector<10x16x60xf32> to vector<1x16x60xf32>
    %192 = vector.shape_cast %191 : vector<1x16x60xf32> to vector<16x60xf32>
    %193 = arith.maximumf %190, %192 : vector<16x60xf32>
    %c3_56 = arith.constant 3 : index
    %c0_57 = arith.constant 0 : index
    %c0_58 = arith.constant 0 : index
    %194 = vector.load %arg8[%c3_56, %c0_57, %c0_58] : memref<5x60x120xf32, #tpu.memory_space<vmem>>, vector<1x60x120xf32>
    %195 = vector.shape_cast %194 : vector<1x60x120xf32> to vector<60x120xf32>
    %cst_59 = arith.constant dense<0.000000e+00> : vector<16x120xf32>
    %196 = tpu.matmul %193, %195, %cst_59 {dimension_numbers = #tpu.dot_dimension_numbers<[1], [0], [0], [1], [0, 0, 1, 1], [], []>} : vector<16x60xf32>, vector<60x120xf32>, vector<16x120xf32> -> vector<16x120xf32>
    %197 = arith.addf %188, %196 : vector<16x120xf32>
    %198 = vector.extract_strided_slice %159 {offsets = [8, 0, 0], sizes = [1, 16, 60], strides = [1, 1, 1]} : vector<10x16x60xf32> to vector<1x16x60xf32>
    %199 = vector.shape_cast %198 : vector<1x16x60xf32> to vector<16x60xf32>
    %200 = vector.extract_strided_slice %159 {offsets = [9, 0, 0], sizes = [1, 16, 60], strides = [1, 1, 1]} : vector<10x16x60xf32> to vector<1x16x60xf32>
    %201 = vector.shape_cast %200 : vector<1x16x60xf32> to vector<16x60xf32>
    %202 = arith.maximumf %199, %201 : vector<16x60xf32>
    %c4_60 = arith.constant 4 : index
    %c0_61 = arith.constant 0 : index
    %c0_62 = arith.constant 0 : index
    %203 = vector.load %arg8[%c4_60, %c0_61, %c0_62] : memref<5x60x120xf32, #tpu.memory_space<vmem>>, vector<1x60x120xf32>
    %204 = vector.shape_cast %203 : vector<1x60x120xf32> to vector<60x120xf32>
    %cst_63 = arith.constant dense<0.000000e+00> : vector<16x120xf32>
    %205 = tpu.matmul %202, %204, %cst_63 {dimension_numbers = #tpu.dot_dimension_numbers<[1], [0], [0], [1], [0, 0, 1, 1], [], []>} : vector<16x60xf32>, vector<60x120xf32>, vector<16x120xf32> -> vector<16x120xf32>
    %206 = arith.addf %197, %205 : vector<16x120xf32>
    %c0_64 = arith.constant 0 : index
    %c0_65 = arith.constant 0 : index
    %207 = vector.load %arg10[%c0_64, %c0_65] : memref<120x60xf32, #tpu.memory_space<vmem>>, vector<120x60xf32>
    %cst_66 = arith.constant dense<0.000000e+00> : vector<16x60xf32>
    %208 = tpu.matmul %206, %207, %cst_66 {dimension_numbers = #tpu.dot_dimension_numbers<[1], [0], [0], [1], [0, 0, 1, 1], [], []>} : vector<16x120xf32>, vector<120x60xf32>, vector<16x60xf32> -> vector<16x60xf32>
    %c0_67 = arith.constant 0 : index
    %c0_68 = arith.constant 0 : index
    %209 = vector.load %arg11[%c0_67, %c0_68] : memref<1x60xf32, #tpu.memory_space<vmem>>, vector<1x60xf32>
    %210 = vector.broadcast %209 : vector<1x60xf32> to vector<16x60xf32>
    %211 = arith.addf %208, %210 : vector<16x60xf32>
    %c0_69 = arith.constant 0 : index
    %c0_70 = arith.constant 0 : index
    %212 = vector.load %arg12[%c0_69, %c0_70] : memref<60x128xf32, #tpu.memory_space<vmem>>, vector<60x128xf32>
    %cst_71 = arith.constant dense<0.000000e+00> : vector<16x128xf32>
    %213 = tpu.matmul %211, %212, %cst_71 {dimension_numbers = #tpu.dot_dimension_numbers<[1], [0], [0], [1], [0, 0, 1, 1], [], []>} : vector<16x60xf32>, vector<60x128xf32>, vector<16x128xf32> -> vector<16x128xf32>
    %c0_72 = arith.constant 0 : index
    %c0_73 = arith.constant 0 : index
    %214 = vector.load %arg13[%c0_72, %c0_73] : memref<1x128xf32, #tpu.memory_space<vmem>>, vector<1x128xf32>
    %215 = vector.broadcast %214 : vector<1x128xf32> to vector<16x128xf32>
    %216 = arith.addf %213, %215 : vector<16x128xf32>
    %c0_74 = arith.constant 0 : index
    %c0_75 = arith.constant 0 : index
    %217 = vector.load %arg14[%c0_74, %c0_75] : memref<16x128xf32, #tpu.memory_space<vmem>>, vector<16x128xf32>
    tpu.vector_store %arg14[%c0_74, %c0_75], %216 {strides = array<i32>} : memref<16x128xf32, #tpu.memory_space<vmem>>, vector<16x128xf32>,
    return
  }
  func.func @transform_0(%arg0: i32) -> (i32, i32, i32) {
    %c0_i32 = arith.constant 0 : i32
    %c0_i32_0 = arith.constant 0 : i32
    %c0_i32_1 = arith.constant 0 : i32
    return %c0_i32, %arg0, %c0_i32_0 : i32, i32, i32
  }
  func.func @transform_1(%arg0: i32) -> (i32, i32) {
    %c0_i32 = arith.constant 0 : i32
    %c0_i32_0 = arith.constant 0 : i32
    %c0_i32_1 = arith.constant 0 : i32
    return %c0_i32, %c0_i32_0 : i32, i32
  }
  func.func @transform_2(%arg0: i32) -> (i32, i32) {
    %c0_i32 = arith.constant 0 : i32
    %c0_i32_0 = arith.constant 0 : i32
    %c0_i32_1 = arith.constant 0 : i32
    return %c0_i32, %c0_i32_0 : i32, i32
  }
  func.func @transform_3(%arg0: i32) -> (i32, i32, i32) {
    %c0_i32 = arith.constant 0 : i32
    %c0_i32_0 = arith.constant 0 : i32
    %c0_i32_1 = arith.constant 0 : i32
    %c0_i32_2 = arith.constant 0 : i32
    return %c0_i32, %c0_i32_0, %c0_i32_1 : i32, i32, i32
  }
  func.func @transform_4(%arg0: i32) -> (i32, i32, i32) {
    %c0_i32 = arith.constant 0 : i32
    %c0_i32_0 = arith.constant 0 : i32
    %c0_i32_1 = arith.constant 0 : i32
    %c0_i32_2 = arith.constant 0 : i32
    return %c0_i32, %c0_i32_0, %c0_i32_1 : i32, i32, i32
  }
  func.func @transform_5(%arg0: i32) -> (i32, i32) {
    %c0_i32 = arith.constant 0 : i32
    %c0_i32_0 = arith.constant 0 : i32
    %c0_i32_1 = arith.constant 0 : i32
    return %c0_i32, %c0_i32_0 : i32, i32
  }
  func.func @transform_6(%arg0: i32) -> (i32, i32, i32) {
    %c0_i32 = arith.constant 0 : i32
    %c0_i32_0 = arith.constant 0 : i32
    %c0_i32_1 = arith.constant 0 : i32
    %c0_i32_2 = arith.constant 0 : i32
    return %c0_i32, %c0_i32_0, %c0_i32_1 : i32, i32, i32
  }
  func.func @transform_7(%arg0: i32) -> (i32, i32, i32) {
    %c0_i32 = arith.constant 0 : i32
    %c0_i32_0 = arith.constant 0 : i32
    %c0_i32_1 = arith.constant 0 : i32
    %c0_i32_2 = arith.constant 0 : i32
    return %c0_i32, %c0_i32_0, %c0_i32_1 : i32, i32, i32
  }
  func.func @transform_8(%arg0: i32) -> (i32, i32) {
    %c0_i32 = arith.constant 0 : i32
    %c0_i32_0 = arith.constant 0 : i32
    %c0_i32_1 = arith.constant 0 : i32
    return %c0_i32, %c0_i32_0 : i32, i32
  }
  func.func @transform_9(%arg0: i32) -> (i32, i32) {
    %c0_i32 = arith.constant 0 : i32
    %c0_i32_0 = arith.constant 0 : i32
    %c0_i32_1 = arith.constant 0 : i32
    return %c0_i32, %c0_i32_0 : i32, i32
  }
  func.func @transform_10(%arg0: i32) -> (i32, i32) {
    %c0_i32 = arith.constant 0 : i32
    %c0_i32_0 = arith.constant 0 : i32
    %c0_i32_1 = arith.constant 0 : i32
    return %c0_i32, %c0_i32_0 : i32, i32
  }
  func.func @transform_11(%arg0: i32) -> (i32, i32) {
    %c0_i32 = arith.constant 0 : i32
    %c0_i32_0 = arith.constant 0 : i32
    %c0_i32_1 = arith.constant 0 : i32
    return %c0_i32, %c0_i32_0 : i32, i32
  }
  func.func @transform_12(%arg0: i32) -> (i32, i32) {
    %c0_i32 = arith.constant 0 : i32
    %c0_i32_0 = arith.constant 0 : i32
    %c0_i32_1 = arith.constant 0 : i32
    return %c0_i32, %c0_i32_0 : i32, i32
  }
  func.func @transform_13(%arg0: i32) -> (i32, i32) {
    %c0_i32 = arith.constant 0 : i32
    %c0_i32_0 = arith.constant 0 : i32
    return %arg0, %c0_i32 : i32, i32
  }
}

</mosaic_0001>

<bundles_post_ra>
// kernel: cnn_forward.1
= control target key start
LH: loop header
LB: loop body
LE: loop exit
PB: predicated region body
PF: predicated region fallthrough
CT: control target
= control target key end

     0   :  { %v5416_v1 = vmov 0   ;;  %vm485_vm0 = vcmask 261120   ;;  %vm1220_vm1 = vcmask 1043456   ;;  %vm1135_vm2 = vcmask 326656   ;;  %s6601_s1 = inlined_call_operand.vmem [shape: bf16[160,168], index: 1, kind: input, shape index: {}]   ;;  %s6602_s0 = inlined_call_operand.vmem [shape: bf16[28,16,160], index: 0, kind: input, shape index: {}]   ;;  %s6603_s3 = inlined_call_operand.vmem [shape: bf16[2,168,84], index: 3, kind: input, shape index: {}]   ;;  %s6604_s2 = inlined_call_operand.vmem [shape: f32[1,168], index: 2, kind: input, shape index: {}]   ;;  %s6605_s4 = inlined_call_operand.vmem [shape: bf16[5,84,120], index: 4, kind: input, shape index: {}]   ;;  %s6606_s6 = inlined_call_operand.vmem [shape: bf16[2,120,60], index: 6, kind: input, shape index: {}]   ;;  %s6607_s7 = inlined_call_operand.vmem [shape: f32[5,60,120], index: 7, kind: input, shape index: {}]   ;;  %s6608_s5 = inlined_call_operand.vmem [shape: f32[1,120], index: 5, kind: input, shape index: {}]   ;;  %s6609_s9 = inlined_call_operand.vmem [shape: f32[120,60], index: 9, kind: input, shape index: {}]   ;;  %s6610_s11 = inlined_call_operand.vmem [shape: f32[60,128], index: 11, kind: input, shape index: {}]   ;;  %s6611_s8 = inlined_call_operand.vmem [shape: f32[1,120], index: 8, kind: input, shape index: {}]   ;;  %s6612_s10 = inlined_call_operand.vmem [shape: f32[1,60], index: 10, kind: input, shape index: {}]   ;;  %s6613_s12 = inlined_call_operand.vmem [shape: f32[1,128], index: 12, kind: input, shape index: {}]   ;;  %s6614_s13 = inlined_call_operand.vmem [shape: f32[16,128], index: 13, kind: output, shape index: {}]  }
   0x1   :  { %v5234_v0 = vld [vmem:[%s6601_s1 + $0x4] ss:$8 sps:$4 sm:$0xff]   ;;  %1224 = vmatprep.subr.bf16.mxu1 %v5416_v1  ;;  %v5236_v2 = vld [vmem:[%s6601_s1] ss:$8 sps:$4 sm:$0xff]   ;;  %v5237_v3 = vld [vmem:[%s6601_s1 + $0x14] ss:$8 sps:$4 sm:$0xff]  }
   0x2   :  { %570 = vmatprep.subr.bf16.mxu0 %v5234_v0  ;;  %v5239_v4 = vld [vmem:[%s6601_s1 + $0x10] ss:$8 sps:$4 sm:$0xff]   ;;  %v5240_v5 = vld [vmem:[%s6601_s1 + $0x24] ss:$8 sps:$4 sm:$0xff]   ;;  %v5242_v6 = vld [vmem:[%s6601_s1 + $0x20] ss:$8 sps:$4 sm:$0xff]  }
   0x3   :  { %571 = vmatpush1.bf16.msra.mxu0 %v5236_v2  ;;  %v5243_v7 = vld [vmem:[%s6601_s1 + $0x34] ss:$8 sps:$4 sm:$0xff]   ;;  %v5245_v8 = vld [vmem:[%s6601_s1 + $0x30] ss:$8 sps:$4 sm:$0xff]   ;;  %v5246_v9 = vld [vmem:[%s6601_s1 + $0x44] ss:$8 sps:$4 sm:$0xff]  }
   0x4   :  { %572 = vmatprep.subr.bf16.mxu0 %v5237_v3  ;;  %v5266_v10 = vld [vmem:[%s6602_s0 + $0x4] ss:$8 sps:$4 sm:$0xff]   ;;  %v5248_v11 = vld [vmem:[%s6601_s1 + $0x40] ss:$8 sps:$4 sm:$0xff]   ;;  %v5249_v12 = vld [vmem:[%s6601_s1 + $0x54] ss:$8 sps:$4 sm:$0xff]  }
   0x5   :  { %4069 = vmatprep.mubr.msk.bf16.mxu0 %vm485_vm0, %v5266_v10  ;;  %v5251_v13 = vld [vmem:[%s6601_s1 + $0x50] ss:$8 sps:$4 sm:$0xff]   ;;  %v5252_v14 = vld [vmem:[%s6601_s1 + $0x64] ss:$8 sps:$4 sm:$0xff]   ;;  %v5254_v15 = vld [vmem:[%s6601_s1 + $0x60] ss:$8 sps:$4 sm:$0xff]  }
   0x6   :  { %v5255_v16 = vld [vmem:[%s6601_s1 + $0x74] ss:$8 sps:$4 sm:$0xff]   ;;  %v5257_v17 = vld [vmem:[%s6601_s1 + $0x70] ss:$8 sps:$4 sm:$0xff]   ;;  %v5258_v18 = vld [vmem:[%s6601_s1 + $0x84] ss:$8 sps:$4 sm:$0xff]  }
   0x7   :  { %573 = vmatpush1.bf16.msra.mxu0 %v5239_v4  ;;  %v5260_v19 = vld [vmem:[%s6601_s1 + $0x80] ss:$8 sps:$4 sm:$0xff]   ;;  %v5261_v20 = vld [vmem:[%s6601_s1 + $0x94] ss:$8 sps:$4 sm:$0xff]   ;;  %v5263_v21 = vld [vmem:[%s6601_s1 + $0x90] ss:$8 sps:$4 sm:$0xff]  }
   0x8   :  { %574 = vmatprep.subr.bf16.mxu0 %v5240_v5  ;;  %v5264_v22 = vld [vmem:[%s6602_s0] ss:$8 sps:$4 sm:$0xff]   ;;  %v5267_v23 = vld [vmem:[%s6603_s3 + $0x54] sm:$0xff]   ;;  %v5271_v27 = vld [vmem:[%s6602_s0 + $0x24] ss:$8 sps:$4 sm:$0xff]   ;;  %vm2011_vm3 = vcmask 1041408  }
   0x9   :  { %v5268_v24 = vld [vmem:[%s6602_s0 + $0x14] ss:$8 sps:$4 sm:$0xff]   ;;  %v5270_v26 = vld [vmem:[%s6602_s0 + $0x10] ss:$8 sps:$4 sm:$0xff]   ;;  %v5284_v28 = vld [vmem:[%s6603_s3 + $0x64] sm:$0xff]   ;;  %vm1980_vm4 = vcmask 687104  }
   0xa   :  { %v5274_v25 = vld [vmem:[%s6603_s3 + $0x5c] sm:$0xff]   ;;  %v5293_v29 = vld [vmem:[%s6603_s3 + $0x6c] sm:$0xff]   ;;  %v5301_v32 = vld [vmem:[%s6603_s3 + $0x74] sm:$0xff]   ;;  %vm2949_vm5 = vcmask 982016   ;;  %vm5417_vm6 = vmmov 1   ;;  %vm3304_vm8 = vcmask 490496  }
   0xb   :  { %575 = vmatpush1.bf16.msra.mxu0 %v5242_v6  ;;  %v5273_v30 = vld [vmem:[%s6602_s0 + $0x20] ss:$8 sps:$4 sm:$0xff]   ;;  %v5275_v31 = vld [vmem:[%s6602_s0 + $0x34] ss:$8 sps:$4 sm:$0xff]   ;;  %v5277_v34 = vld [vmem:[%s6602_s0 + $0x30] ss:$8 sps:$4 sm:$0xff]  }
   0xc   :  { %576 = vmatprep.subr.bf16.mxu0 %v5243_v7  ;;  %v5310_v33 = vld [vmem:[%s6603_s3 + $0x7c] sm:$0xff]   ;;  %v5278_v35 = vld [vmem:[%s6602_s0 + $0x44] ss:$8 sps:$4 sm:$0xff]   ;;  %v5335_v40 = vld [vmem:[%s6603_s3 + $0x94] sm:$0xff]  }
   0xd   :  { %v5318_v36 = vld [vmem:[%s6603_s3 + $0x84] sm:$0xff]   ;;  %v5328_v37 = vld [vmem:[%s6603_s3 + $0x8c] sm:$0xff]   ;;  %v5281_v39 = vld [vmem:[%s6602_s0 + $0x54] ss:$8 sps:$4 sm:$0xff]  }
   0xe   :  { %v5280_v38 = vld [vmem:[%s6602_s0 + $0x40] ss:$8 sps:$4 sm:$0xff]   ;;  %v5283_v41 = vld [vmem:[%s6602_s0 + $0x50] ss:$8 sps:$4 sm:$0xff]   ;;  %v5285_v42 = vld [vmem:[%s6602_s0 + $0x64] ss:$8 sps:$4 sm:$0xff]  }
   0xf   :  { %577 = vmatpush1.bf16.msra.mxu0 %v5245_v8  ;;  %v5287_v43 = vld [vmem:[%s6602_s0 + $0x60] ss:$8 sps:$4 sm:$0xff]   ;;  %v5288_v44 = vld [vmem:[%s6602_s0 + $0x74] ss:$8 sps:$4 sm:$0xff]   ;;  %v5290_v47 = vld [vmem:[%s6602_s0 + $0x70] ss:$8 sps:$4 sm:$0xff]  }
  0x10   :  { %578 = vmatprep.subr.bf16.mxu0 %v5246_v9  ;;  %v5342_v45 = vld [vmem:[%s6603_s3] sm:$0xff]   ;;  %v5345_v46 = vld [vmem:[%s6603_s3 + $0x8] sm:$0xff]   ;;  %v5348_v50 = vld [vmem:[%s6603_s3 + $0x10] sm:$0xff]  }
  0x11   :  { %1225 = vmatpush1.bf16.msra.mxu1 %v5342_v45  ;;  %v5291_v48 = vld [vmem:[%s6602_s0 + $0x84] ss:$8 sps:$4 sm:$0xff]   ;;  %v5347_v49 = vld [vmem:[%s6603_s3 + $0x9c] sm:$0xff]   ;;  %v5297_v56 = vld [vmem:[%s6602_s0 + $0x90] ss:$8 sps:$4 sm:$0xff]  }
  0x12   :  { %1226 = vmatprep.subr.bf16.mxu1 %v5416_v1  ;;  %v5351_v51 = vld [vmem:[%s6603_s3 + $0x18] sm:$0xff]   ;;  %v5294_v52 = vld [vmem:[%s6602_s0 + $0x80] ss:$8 sps:$4 sm:$0xff]   ;;  %v5298_v57 = vld [vmem:[%s6602_s0 + $0xa4] ss:$8 sps:$4 sm:$0xff]  }
  0x13   :  { %579 = vmatpush1.bf16.msra.mxu0 %v5248_v11  ;;  %v5295_v53 = vld [vmem:[%s6602_s0 + $0x94] ss:$8 sps:$4 sm:$0xff]   ;;  %v5353_v54 = vld [vmem:[%s6603_s3 + $0x20] sm:$0xff]   ;;  %v5356_v55 = vld [vmem:[%s6603_s3 + $0x28] sm:$0xff]  }
  0x14   :  { %580 = vmatprep.subr.bf16.mxu0 %v5249_v12  ;;  %v5358_v58 = vld [vmem:[%s6603_s3 + $0x30] sm:$0xff]   ;;  %v5359_v59 = vld [vmem:[%s6603_s3 + $0xa4] ss:$0 sps:$4 sm:$0xff]   ;;  %v5362_v61 = vld [vmem:[%s6603_s3 + $0x38] sm:$0xff]  }
  0x15   :  { %1227 = vmatpush1.bf16.msra.mxu1 %v5345_v46  ;;  %v1567_v60 = vsel %vm1220_vm1, %v5359_v59, 0  ;;  %v5300_v62 = vld [vmem:[%s6602_s0 + $0xa0] ss:$8 sps:$4 sm:$0xff]   ;;  %v5302_v63 = vld [vmem:[%s6602_s0 + $0xb4] ss:$8 sps:$4 sm:$0xff]   ;;  %vm6348_vm7 = vmpackc.low %vm1220_vm1, %vm5417_vm6 }
  0x16   :  { %1228 = vmatprep.subr.bf16.mxu1 %v5416_v1  ;;  %v5364_v0 = vld [vmem:[%s6603_s3 + $0x40] sm:$0xff]   ;;  %v5304_v2 = vld [vmem:[%s6602_s0 + $0xb0] ss:$8 sps:$4 sm:$0xff]   ;;  %v5367_v4 = vld [vmem:[%s6603_s3 + $0x48] sm:$0xff]  }
  0x17   :  { %581 = vmatpush1.bf16.msra.mxu0 %v5251_v13  ;;  %v5305_v3 = vld [vmem:[%s6602_s0 + $0xc4] ss:$8 sps:$4 sm:$0xff]   ;;  %v5369_v5 = vld [vmem:[%s6603_s3 + $0x50] ss:$0 sps:$4 sm:$0xff]   ;;  %v5307_v7 = vld [vmem:[%s6602_s0 + $0xc0] ss:$8 sps:$4 sm:$0xff]  }
  0x18   :  { %582 = vmatprep.subr.bf16.mxu0 %v5252_v14  ;;  %v1222_v6 = vsel %vm1220_vm1, %v5369_v5, 0  ;;  %v5308_v8 = vld [vmem:[%s6602_s0 + $0xd4] ss:$8 sps:$4 sm:$0xff]   ;;  %v5312_v9 = vld [vmem:[%s6602_s0 + $0xe4] ss:$8 sps:$4 sm:$0xff]  }
  0x19   :  { %1229 = vmatpush1.bf16.msra.mxu1 %v5348_v50  ;;  %v5314_v10 = vld [vmem:[%s6602_s0 + $0xe0] ss:$8 sps:$4 sm:$0xff]   ;;  %v5315_v11 = vld [vmem:[%s6602_s0 + $0xf4] ss:$8 sps:$4 sm:$0xff]   ;;  %v5317_v12 = vld [vmem:[%s6602_s0 + $0xf0] ss:$8 sps:$4 sm:$0xff]  }
  0x1a   :  { %1230 = vmatprep.subr.bf16.mxu1 %v5416_v1  ;;  %v5319_v13 = vld [vmem:[%s6602_s0 + $0x104] ss:$8 sps:$4 sm:$0xff]   ;;  %v5321_v14 = vld [vmem:[%s6602_s0 + $0x100] ss:$8 sps:$4 sm:$0xff]   ;;  %v5368_v46 = vld [vmem:[%s6602_s0 + $0x1b0] ss:$8 sps:$4 sm:$0xff]  }
  0x1b   :  { %583 = vmatpush1.bf16.msra.mxu0 %v5254_v15  ;;  %v5322_v15 = vld [vmem:[%s6602_s0 + $0x114] ss:$8 sps:$4 sm:$0xff]  }
  0x1c   :  { %584 = vmatprep.subr.bf16.mxu0 %v5255_v16  ;;  %v5324_v16 = vld [vmem:[%s6602_s0 + $0x110] ss:$8 sps:$4 sm:$0xff]  }
  0x1d   :  { %1231 = vmatpush1.bf16.msra.mxu1 %v5351_v51 }
  0x1e   :  { %1232 = vmatprep.subr.bf16.mxu1 %v5416_v1 }
  0x1f   :  { %585 = vmatpush1.bf16.msra.mxu0 %v5257_v17  ;;  %v5325_v17 = vld [vmem:[%s6602_s0 + $0x124] ss:$8 sps:$4 sm:$0xff]  }
  0x20   :  { %586 = vmatprep.subr.bf16.mxu0 %v5258_v18  ;;  %v5327_v18 = vld [vmem:[%s6602_s0 + $0x120] ss:$8 sps:$4 sm:$0xff]  }
  0x21   :  { %1233 = vmatpush1.bf16.msra.mxu1 %v5353_v54 }
  0x22   :  { %1234 = vmatprep.subr.bf16.mxu1 %v5416_v1 }
  0x23   :  { %587 = vmatpush1.bf16.msra.mxu0 %v5260_v19  ;;  %v5329_v19 = vld [vmem:[%s6602_s0 + $0x134] ss:$8 sps:$4 sm:$0xff]  }
  0x24   :  { %588 = vmatprep.subr.bf16.mxu0 %v5261_v20  ;;  %v5331_v20 = vld [vmem:[%s6602_s0 + $0x130] ss:$8 sps:$4 sm:$0xff]  }
  0x25   :  { %1235 = vmatpush1.bf16.msra.mxu1 %v5356_v55 }
  0x26   :  { %1236 = vmatprep.subr.bf16.mxu1 %v5416_v1 }
  0x27   :  { %589 = vmatpush1.bf16.msra.mxu0 %v5263_v21  ;;  %v5332_v21 = vld [vmem:[%s6602_s0 + $0x144] ss:$8 sps:$4 sm:$0xff]  }
  0x28   :  { %1569 = vmatprep.subr.bf16.mxu0 %v5416_v1 }
  0x29   :  { %1237 = vmatpush1.bf16.msra.mxu1 %v5358_v58 }
  0x2a   :  { %603 = vmatmul.mubr.bf16.vlgmr.msra.gmra.mrb[0].mxu0 %v5264_v22  ;;  %1238 = vmatprep.subr.bf16.mxu1 %v5416_v1  ;;  %v5334_v22 = vld [vmem:[%s6602_s0 + $0x140] ss:$8 sps:$4 sm:$0xff]  }
  0x2b   :  { %1570 = vmatpush1.bf16.msra.mxu0 %v5267_v23  ;;  %4070 = vmatprep.mubr.msk.bf16.mxu0 %vm485_vm0, %v5268_v24  ;;  %v5336_v23 = vld [vmem:[%s6602_s0 + $0x154] ss:$8 sps:$4 sm:$0xff]   ;;  %v5338_v24 = vld [vmem:[%s6602_s0 + $0x150] ss:$8 sps:$4 sm:$0xff]  }
  0x2c   :  { %1571 = vmatprep.subr.bf16.mxu0 %v5416_v1 }
  0x2d   :  { %1239 = vmatpush1.bf16.msra.mxu1 %v5362_v61 }
  0x2e   :  { %1240 = vmatprep.subr.bf16.mxu1 %v5416_v1 }
  0x2f   :  { %1572 = vmatpush1.bf16.msra.mxu0 %v5274_v25  ;;  %v5339_v25 = vld [vmem:[%s6602_s0 + $0x164] ss:$8 sps:$4 sm:$0xff]  }
  0x30   :  { %1573 = vmatprep.subr.bf16.mxu0 %v5416_v1 }
  0x31   :  { %1241 = vmatpush1.bf16.msra.mxu1 %v5364_v0 }
  0x32   :  { %613 = vmatmul.mubr.bf16.gmra.mrb[4].mxu0 %v5270_v26  ;;  %1242 = vmatprep.subr.bf16.mxu1 %v5416_v1  ;;  %v5341_v26 = vld [vmem:[%s6602_s0 + $0x160] ss:$8 sps:$4 sm:$0xff]  }
  0x33   :  { %4071 = vmatprep.mubr.msk.bf16.mxu0 %vm485_vm0, %v5271_v27  ;;  %1574 = vmatpush1.bf16.msra.mxu0 %v5284_v28  ;;  %v5343_v27 = vld [vmem:[%s6602_s0 + $0x174] ss:$8 sps:$4 sm:$0xff]   ;;  %v5346_v28 = vld [vmem:[%s6602_s0 + $0x170] ss:$8 sps:$4 sm:$0xff]  }
  0x34   :  { %1575 = vmatprep.subr.bf16.mxu0 %v5416_v1 }
  0x35   :  { %1243 = vmatpush1.bf16.msra.mxu1 %v5367_v4 }
  0x36   :  { %1244 = vmatprep.subr.bf16.mxu1 %v5416_v1 }
  0x37   :  { %1576 = vmatpush1.bf16.msra.mxu0 %v5293_v29  ;;  %v5349_v29 = vld [vmem:[%s6602_s0 + $0x184] ss:$8 sps:$4 sm:$0xff]  }
  0x38   :  { %1577 = vmatprep.subr.bf16.mxu0 %v5416_v1 }
  0x39   :  { %1245 = vmatpush1.bf16.msra.mxu1 %v1222_v6 }
  0x3a   :  { %623 = vmatmul.mubr.bf16.gmra.mrb[8].mxu0 %v5273_v30  ;;  %v5352_v30 = vld [vmem:[%s6602_s0 + $0x180] ss:$8 sps:$4 sm:$0xff]  }
  0x3b   :  { %4072 = vmatprep.mubr.msk.bf16.mxu0 %vm485_vm0, %v5275_v31  ;;  %1578 = vmatpush1.bf16.msra.mxu0 %v5301_v32  ;;  %v5354_v31 = vld [vmem:[%s6602_s0 + $0x194] ss:$8 sps:$4 sm:$0xff]   ;;  %v5357_v32 = vld [vmem:[%s6602_s0 + $0x190] ss:$8 sps:$4 sm:$0xff]  }
  0x3c   :  { %1579 = vmatprep.subr.bf16.mxu0 %v5416_v1 }
  0x3f   :  { %1580 = vmatpush1.bf16.msra.mxu0 %v5310_v33  ;;  %v123_v33 = vlaneseq }
  0x40   :  { %1581 = vmatprep.subr.bf16.mxu0 %v5416_v1 }
  0x42   :  { %633 = vmatmul.mubr.bf16.gmra.mrb[12].mxu0 %v5277_v34  ;;  %v5360_v34 = vld [vmem:[%s6602_s0 + $0x1a4] ss:$8 sps:$4 sm:$0xff]  }
  0x43   :  { %4073 = vmatprep.mubr.msk.bf16.mxu0 %vm485_vm0, %v5278_v35  ;;  %1582 = vmatpush1.bf16.msra.mxu0 %v5318_v36  ;;  %v124_v35 = vshrl.u32 %v123_v33, 7  ;;  %v5363_v36 = vld [vmem:[%s6602_s0 + $0x1a0] ss:$8 sps:$4 sm:$0xff]  }
  0x44   :  { %1583 = vmatprep.subr.bf16.mxu0 %v5416_v1 }
  0x47   :  { %1584 = vmatpush1.bf16.msra.mxu0 %v5328_v37  ;;  %v125_v37 = vsub.s32 0, %v124_v35 }
  0x48   :  { %1585 = vmatprep.subr.bf16.mxu0 %v5416_v1 }
  0x4a   :  { %643 = vmatmul.mubr.bf16.gmra.mrb[16].mxu0 %v5280_v38  ;;  %v121_v38 = vld [vmem:[%s6604_s2] sm:$0x3] }
  0x4b   :  { %4074 = vmatprep.mubr.msk.bf16.mxu0 %vm485_vm0, %v5281_v39  ;;  %1586 = vmatpush1.bf16.msra.mxu0 %v5335_v40  ;;  %v129_v39 = vsub.s32 1, %v124_v35  ;;  %v5365_v40 = vld [vmem:[%s6602_s0 + $0x1b4] ss:$8 sps:$4 sm:$0xff]  }
  0x4c   :  { %1587 = vmatprep.subr.bf16.mxu0 %v5416_v1 }
  0x4f   :  { %1588 = vmatpush1.bf16.msra.mxu0 %v5347_v49 }
  0x50   :  { %1589 = vmatprep.subr.bf16.mxu0 %v5416_v1  ;;  %v5311_v1 = vld [vmem:[%s6602_s0 + $0xd0] ss:$8 sps:$4 sm:$0xff]  }
  0x52   :  { %653 = vmatmul.mubr.bf16.gmra.mrb[20].mxu0 %v5283_v41  ;;  %v5833_v41 = vrot.slane %v121_v38, %v125_v37 }
  0x53   :  { %4075 = vmatprep.mubr.msk.bf16.mxu0 %vm485_vm0, %v5285_v42  ;;  %1590 = vmatpush1.bf16.msra.mxu0 %v1567_v60  ;;  %v5835_v42 = vrot.slane %v121_v38, %v129_v39 }
  0x5a   :  { %663 = vmatmul.mubr.bf16.gmra.mrb[24].mxu0 %v5287_v43 }
  0x5b   :  { %4076 = vmatprep.mubr.msk.bf16.mxu0 %vm485_vm0, %v5288_v44 }
  0x62   :  { %673 = vmatmul.mubr.bf16.gmra.mrb[28].mxu0 %v5290_v47 }
  0x63   :  { %4077 = vmatprep.mubr.msk.bf16.mxu0 %vm485_vm0, %v5291_v48 }
  0x6a   :  { %683 = vmatmul.mubr.bf16.gmra.mrb[32].mxu0 %v5294_v52 }
  0x6b   :  { %4078 = vmatprep.mubr.msk.bf16.mxu0 %vm485_vm0, %v5295_v53 }
  0x72   :  { %693 = vmatmul.mubr.bf16.gmra.mrb[36].mxu0 %v5297_v56 }
  0x73   :  { %4079 = vmatprep.mubr.msk.bf16.mxu0 %vm485_vm0, %v5298_v57 }
  0x7a   :  { %703 = vmatmul.mubr.bf16.gmra.mrb[40].mxu0 %v5300_v62 }
  0x7b   :  { %4080 = vmatprep.mubr.msk.bf16.mxu0 %vm485_vm0, %v5302_v63 }
  0x82   :  { %713 = vmatmul.mubr.bf16.gmra.mrb[44].mxu0 %v5304_v2 }
  0x83   :  { %4081 = vmatprep.mubr.msk.bf16.mxu0 %vm485_vm0, %v5305_v3 }
  0x8a   :  { %723 = vmatmul.mubr.bf16.gmra.mrb[48].mxu0 %v5307_v7 }
  0x8b   :  { %4082 = vmatprep.mubr.msk.bf16.mxu0 %vm485_vm0, %v5308_v8 }
  0x92   :  { %733 = vmatmul.mubr.bf16.gmra.mrb[52].mxu0 %v5311_v1 }
  0x93   :  { %4083 = vmatprep.mubr.msk.bf16.mxu0 %vm485_vm0, %v5312_v9 }
  0x9a   :  { %743 = vmatmul.mubr.bf16.gmra.mrb[56].mxu0 %v5314_v10 }
  0x9b   :  { %4084 = vmatprep.mubr.msk.bf16.mxu0 %vm485_vm0, %v5315_v11 }
  0xa2   :  { %753 = vmatmul.mubr.bf16.gmra.mrb[60].mxu0 %v5317_v12 }
  0xa3   :  { %4085 = vmatprep.mubr.msk.bf16.mxu0 %vm485_vm0, %v5319_v13 }
  0xaa   :  { %763 = vmatmul.mubr.bf16.gmra.mrb[64].mxu0 %v5321_v14 }
  0xab   :  { %4086 = vmatprep.mubr.msk.bf16.mxu0 %vm485_vm0, %v5322_v15 }
  0xb2   :  { %773 = vmatmul.mubr.bf16.gmra.mrb[68].mxu0 %v5324_v16 }
  0xb3   :  { %4087 = vmatprep.mubr.msk.bf16.mxu0 %vm485_vm0, %v5325_v17 }
  0xba   :  { %783 = vmatmul.mubr.bf16.gmra.mrb[72].mxu0 %v5327_v18  ;;  %v5370_v18 = vld [vmem:[%s6605_s4 + $0x2c] sm:$0xff]  }
  0xbb   :  { %4088 = vmatprep.mubr.msk.bf16.mxu0 %vm485_vm0, %v5329_v19  ;;  %4620 = vmatprep.subr.bf16.mxu1 %v5370_v18 }
  0xc2   :  { %793 = vmatmul.mubr.bf16.gmra.mrb[76].mxu0 %v5331_v20 }
  0xc3   :  { %4089 = vmatprep.mubr.msk.bf16.mxu0 %vm485_vm0, %v5332_v21 }
  0xca   :  { %803 = vmatmul.mubr.bf16.gmra.mrb[80].mxu0 %v5334_v22 }
  0xcb   :  { %4090 = vmatprep.mubr.msk.bf16.mxu0 %vm485_vm0, %v5336_v23 }
  0xd2   :  { %813 = vmatmul.mubr.bf16.gmra.mrb[84].mxu0 %v5338_v24 }
  0xd3   :  { %4091 = vmatprep.mubr.msk.bf16.mxu0 %vm485_vm0, %v5339_v25 }
  0xda   :  { %823 = vmatmul.mubr.bf16.gmra.mrb[88].mxu0 %v5341_v26 }
  0xdb   :  { %4092 = vmatprep.mubr.msk.bf16.mxu0 %vm485_vm0, %v5343_v27 }
  0xe2   :  { %833 = vmatmul.mubr.bf16.gmra.mrb[92].mxu0 %v5346_v28 }
  0xe3   :  { %4093 = vmatprep.mubr.msk.bf16.mxu0 %vm485_vm0, %v5349_v29 }
  0xea   :  { %843 = vmatmul.mubr.bf16.gmra.mrb[96].mxu0 %v5352_v30 }
  0xeb   :  { %4094 = vmatprep.mubr.msk.bf16.mxu0 %vm485_vm0, %v5354_v31 }
  0xf2   :  { %853 = vmatmul.mubr.bf16.gmra.mrb[100].mxu0 %v5357_v32 }
  0xf3   :  { %4095 = vmatprep.mubr.msk.bf16.mxu0 %vm485_vm0, %v5360_v34 }
  0xfa   :  { %863 = vmatmul.mubr.bf16.gmra.mrb[104].mxu0 %v5363_v36 }
  0xfb   :  { %4096 = vmatprep.mubr.msk.bf16.mxu0 %vm485_vm0, %v5365_v40 }
  0xfd   :  { %v604_v43 = vpop.f32.mrb[0].mxu0 }
  0xfe   :  { %v605_v44 = vadd.f32 %v604_v43, %v5833_v41  ;;  %v606_v45 = vpop.f32.mrb[1].mxu0 }
  0xff   :  { %v607_v47 = vadd.f32 %v606_v45, %v5835_v42  ;;  %v608_v48 = vpop.f32.mrb[2].mxu0 }
 0x100   :  { %v609_v49 = vadd.f32 %v608_v48, %v5833_v41  ;;  %v610_v50 = vpop.f32.mrb[3].mxu0  ;;  %v883_v52 = vmax.f32 %v605_v44, 0.0 }
 0x101   :  { %v611_v51 = vadd.f32 %v610_v50, %v5835_v42  ;;  %v884_v54 = vmax.f32 %v607_v47, 0.0 }
 0x102   :  { %v885_v53 = vmax.f32 %v609_v49, 0.0  ;;  %873 = vmatmul.mubr.bf16.gmra.mrb[108].mxu0 %v5368_v46 }
 0x103   :  { %v886_v55 = vmax.f32 %v611_v51, 0.0 }
 0x104   :  { %v995_v56 = vpack.c.bf16 %v885_v53, %v883_v52 }
 0x105   :  { %v614_v57 = vpop.f32.mrb[4].mxu0  ;;  %v996_v58 = vpack.c.bf16 %v886_v55, %v884_v54 }
 0x106   :  { %v615_v59 = vadd.f32 %v614_v57, %v5833_v41  ;;  %v616_v60 = vpop.f32.mrb[5].mxu0 }
 0x107   :  { %v617_v61 = vadd.f32 %v616_v60, %v5835_v42  ;;  %v618_v62 = vpop.f32.mrb[6].mxu0  ;;  %4108 = vmatprep.mubr.msk.bf16.mxu1 %vm1135_vm2, %v996_v58  ;;  %4168 = vmatprep.mubr.msk.bf16.mxu0 %vm1135_vm2, %v996_v58 }
 0x108   :  { %v619_v63 = vadd.f32 %v618_v62, %v5833_v41  ;;  %v620_v0 = vpop.f32.mrb[7].mxu0  ;;  %1257 = vmatmul.mubr.bf16.vlgmr.msra.gmra.mrb[0].mxu1 %v995_v56  ;;  %v887_v3 = vmax.f32 %v615_v59, 0.0 }
 0x109   :  { %v621_v2 = vadd.f32 %v620_v0, %v5835_v42  ;;  %v888_v5 = vmax.f32 %v617_v61, 0.0  ;;  %4621 = vmatpush3.bf16.msra.mxu1 %v5370_v18  ;;  %v5371_v18 = vld [vmem:[%s6605_s4 + $0x34] sm:$0xff]  }
 0x10a   :  { %v889_v4 = vmax.f32 %v619_v63, 0.0  ;;  %1602 = vmatmul.mubr.bf16.vlgmr.msra.gmra.mrb[112].mxu0 %v995_v56  ;;  %4622 = vmatprep.subr.bf16.mxu1 %v5371_v18 }
 0x10b   :  { %v890_v6 = vmax.f32 %v621_v2, 0.0 }
 0x10c   :  { %v997_v7 = vpack.c.bf16 %v889_v4, %v887_v3 }
 0x10d   :  { %v998_v8 = vpack.c.bf16 %v890_v6, %v888_v5  ;;  %v624_v1 = vpop.f32.mrb[8].mxu0  ;;  %4623 = vmatpush3.bf16.msra.mxu1 %v5371_v18 }
 0x10e   :  { %v625_v9 = vadd.f32 %v624_v1, %v5833_v41  ;;  %v626_v10 = vpop.f32.mrb[9].mxu0 }
 0x10f   :  { %v627_v11 = vadd.f32 %v626_v10, %v5835_v42  ;;  %v628_v12 = vpop.f32.mrb[10].mxu0  ;;  %4109 = vmatprep.mubr.msk.bf16.mxu1 %vm1135_vm2, %v998_v8  ;;  %4169 = vmatprep.mubr.msk.bf16.mxu0 %vm1135_vm2, %v998_v8 }
 0x110   :  { %v629_v13 = vadd.f32 %v628_v12, %v5833_v41  ;;  %v630_v14 = vpop.f32.mrb[11].mxu0  ;;  %1265 = vmatmul.mubr.bf16.gmra.mrb[4].mxu1 %v997_v7  ;;  %v891_v15 = vmax.f32 %v625_v9, 0.0 }
 0x111   :  { %v631_v16 = vadd.f32 %v630_v14, %v5835_v42  ;;  %v892_v19 = vmax.f32 %v627_v11, 0.0 }
 0x112   :  { %v893_v17 = vmax.f32 %v629_v13, 0.0  ;;  %1610 = vmatmul.mubr.bf16.gmra.mrb[116].mxu0 %v997_v7 }
 0x113   :  { %v894_v20 = vmax.f32 %v631_v16, 0.0 }
 0x114   :  { %v999_v21 = vpack.c.bf16 %v893_v17, %v891_v15 }
 0x115   :  { %v1000_v22 = vpack.c.bf16 %v894_v20, %v892_v19  ;;  %v634_v23 = vpop.f32.mrb[12].mxu0 }
 0x116   :  { %v635_v24 = vadd.f32 %v634_v23, %v5833_v41  ;;  %v636_v25 = vpop.f32.mrb[13].mxu0 }
 0x117   :  { %v637_v26 = vadd.f32 %v636_v25, %v5835_v42  ;;  %v638_v27 = vpop.f32.mrb[14].mxu0  ;;  %4110 = vmatprep.mubr.msk.bf16.mxu1 %vm1135_vm2, %v1000_v22  ;;  %4170 = vmatprep.mubr.msk.bf16.mxu0 %vm1135_vm2, %v1000_v22 }
 0x118   :  { %v639_v28 = vadd.f32 %v638_v27, %v5833_v41  ;;  %v640_v29 = vpop.f32.mrb[15].mxu0  ;;  %1273 = vmatmul.mubr.bf16.gmra.mrb[8].mxu1 %v999_v21  ;;  %v895_v31 = vmax.f32 %v635_v24, 0.0 }
 0x119   :  { %v641_v30 = vadd.f32 %v640_v29, %v5835_v42  ;;  %v896_v33 = vmax.f32 %v637_v26, 0.0 }
 0x11a   :  { %v897_v32 = vmax.f32 %v639_v28, 0.0  ;;  %1618 = vmatmul.mubr.bf16.gmra.mrb[120].mxu0 %v999_v21 }
 0x11b   :  { %v898_v34 = vmax.f32 %v641_v30, 0.0 }
 0x11c   :  { %v1001_v35 = vpack.c.bf16 %v897_v32, %v895_v31 }
 0x11d   :  { %v1002_v36 = vpack.c.bf16 %v898_v34, %v896_v33  ;;  %v644_v37 = vpop.f32.mrb[16].mxu0 }
 0x11e   :  { %v645_v38 = vadd.f32 %v644_v37, %v5833_v41  ;;  %v646_v39 = vpop.f32.mrb[17].mxu0 }
 0x11f   :  { %v647_v40 = vadd.f32 %v646_v39, %v5835_v42  ;;  %v648_v43 = vpop.f32.mrb[18].mxu0  ;;  %4111 = vmatprep.mubr.msk.bf16.mxu1 %vm1135_vm2, %v1002_v36  ;;  %4171 = vmatprep.mubr.msk.bf16.mxu0 %vm1135_vm2, %v1002_v36 }
 0x120   :  { %v649_v44 = vadd.f32 %v648_v43, %v5833_v41  ;;  %v650_v45 = vpop.f32.mrb[19].mxu0  ;;  %1281 = vmatmul.mubr.bf16.gmra.mrb[12].mxu1 %v1001_v35  ;;  %v899_v47 = vmax.f32 %v645_v38, 0.0 }
 0x121   :  { %v651_v46 = vadd.f32 %v650_v45, %v5835_v42  ;;  %v900_v49 = vmax.f32 %v647_v40, 0.0 }
 0x122   :  { %v901_v48 = vmax.f32 %v649_v44, 0.0  ;;  %1626 = vmatmul.mubr.bf16.gmra.mrb[124].mxu0 %v1001_v35 }
 0x123   :  { %v902_v50 = vmax.f32 %v651_v46, 0.0 }
 0x124   :  { %v1003_v51 = vpack.c.bf16 %v901_v48, %v899_v47 }
 0x125   :  { %v1004_v52 = vpack.c.bf16 %v902_v50, %v900_v49  ;;  %v654_v53 = vpop.f32.mrb[20].mxu0 }
 0x126   :  { %v655_v54 = vadd.f32 %v654_v53, %v5833_v41  ;;  %v656_v55 = vpop.f32.mrb[21].mxu0 }
 0x127   :  { %v657_v56 = vadd.f32 %v656_v55, %v5835_v42  ;;  %v658_v57 = vpop.f32.mrb[22].mxu0  ;;  %4112 = vmatprep.mubr.msk.bf16.mxu1 %vm1135_vm2, %v1004_v52  ;;  %4172 = vmatprep.mubr.msk.bf16.mxu0 %vm1135_vm2, %v1004_v52 }
 0x128   :  { %v659_v58 = vadd.f32 %v658_v57, %v5833_v41  ;;  %v660_v59 = vpop.f32.mrb[23].mxu0  ;;  %1289 = vmatmul.mubr.bf16.gmra.mrb[16].mxu1 %v1003_v51  ;;  %v903_v61 = vmax.f32 %v655_v54, 0.0 }
 0x129   :  { %v661_v60 = vadd.f32 %v660_v59, %v5835_v42  ;;  %v904_v63 = vmax.f32 %v657_v56, 0.0 }
 0x12a   :  { %v905_v62 = vmax.f32 %v659_v58, 0.0  ;;  %1634 = vmatmul.mubr.bf16.gmra.mrb[128].mxu0 %v1003_v51 }
 0x12b   :  { %v906_v0 = vmax.f32 %v661_v60, 0.0 }
 0x12c   :  { %v1005_v2 = vpack.c.bf16 %v905_v62, %v903_v61 }
 0x12d   :  { %v1006_v3 = vpack.c.bf16 %v906_v0, %v904_v63  ;;  %v664_v4 = vpop.f32.mrb[24].mxu0 }
 0x12e   :  { %v665_v5 = vadd.f32 %v664_v4, %v5833_v41  ;;  %v666_v6 = vpop.f32.mrb[25].mxu0 }
 0x12f   :  { %v667_v7 = vadd.f32 %v666_v6, %v5835_v42  ;;  %v668_v8 = vpop.f32.mrb[26].mxu0  ;;  %4113 = vmatprep.mubr.msk.bf16.mxu1 %vm1135_vm2, %v1006_v3  ;;  %4173 = vmatprep.mubr.msk.bf16.mxu0 %vm1135_vm2, %v1006_v3 }
 0x130   :  { %v669_v1 = vadd.f32 %v668_v8, %v5833_v41  ;;  %v670_v9 = vpop.f32.mrb[27].mxu0  ;;  %1297 = vmatmul.mubr.bf16.gmra.mrb[20].mxu1 %v1005_v2  ;;  %v907_v11 = vmax.f32 %v665_v5, 0.0 }
 0x131   :  { %v671_v10 = vadd.f32 %v670_v9, %v5835_v42  ;;  %v908_v13 = vmax.f32 %v667_v7, 0.0 }
 0x132   :  { %v909_v12 = vmax.f32 %v669_v1, 0.0  ;;  %1642 = vmatmul.mubr.bf16.gmra.mrb[132].mxu0 %v1005_v2 }
 0x133   :  { %v910_v14 = vmax.f32 %v671_v10, 0.0 }
 0x134   :  { %v1007_v15 = vpack.c.bf16 %v909_v12, %v907_v11 }
 0x135   :  { %v1008_v16 = vpack.c.bf16 %v910_v14, %v908_v13  ;;  %v674_v17 = vpop.f32.mrb[28].mxu0 }
 0x136   :  { %v675_v19 = vadd.f32 %v674_v17, %v5833_v41  ;;  %v676_v20 = vpop.f32.mrb[29].mxu0 }
 0x137   :  { %v677_v21 = vadd.f32 %v676_v20, %v5835_v42  ;;  %v678_v22 = vpop.f32.mrb[30].mxu0  ;;  %4114 = vmatprep.mubr.msk.bf16.mxu1 %vm1135_vm2, %v1008_v16  ;;  %4174 = vmatprep.mubr.msk.bf16.mxu0 %vm1135_vm2, %v1008_v16 }
 0x138   :  { %v679_v23 = vadd.f32 %v678_v22, %v5833_v41  ;;  %v680_v24 = vpop.f32.mrb[31].mxu0  ;;  %1305 = vmatmul.mubr.bf16.gmra.mrb[24].mxu1 %v1007_v15  ;;  %v911_v26 = vmax.f32 %v675_v19, 0.0 }
 0x139   :  { %v681_v25 = vadd.f32 %v680_v24, %v5835_v42  ;;  %v912_v28 = vmax.f32 %v677_v21, 0.0 }
 0x13a   :  { %v913_v27 = vmax.f32 %v679_v23, 0.0  ;;  %1650 = vmatmul.mubr.bf16.gmra.mrb[136].mxu0 %v1007_v15 }
 0x13b   :  { %v914_v29 = vmax.f32 %v681_v25, 0.0 }
 0x13c   :  { %v1009_v30 = vpack.c.bf16 %v913_v27, %v911_v26  ;;  %v5372_v27 = vld [vmem:[%s6605_s4 + $0x3c] sm:$0xff]  }
 0x13d   :  { %v1010_v31 = vpack.c.bf16 %v914_v29, %v912_v28  ;;  %v684_v32 = vpop.f32.mrb[32].mxu0  ;;  %4624 = vmatprep.subr.bf16.mxu1 %v5372_v27 }
 0x13e   :  { %v685_v33 = vadd.f32 %v684_v32, %v5833_v41  ;;  %v686_v34 = vpop.f32.mrb[33].mxu0  ;;  %4625 = vmatpush3.bf16.msra.mxu1 %v5372_v27 }
 0x13f   :  { %v687_v35 = vadd.f32 %v686_v34, %v5835_v42  ;;  %v688_v36 = vpop.f32.mrb[34].mxu0  ;;  %4115 = vmatprep.mubr.msk.bf16.mxu1 %vm1135_vm2, %v1010_v31  ;;  %4175 = vmatprep.mubr.msk.bf16.mxu0 %vm1135_vm2, %v1010_v31 }
 0x140   :  { %v689_v37 = vadd.f32 %v688_v36, %v5833_v41  ;;  %v690_v38 = vpop.f32.mrb[35].mxu0  ;;  %1313 = vmatmul.mubr.bf16.gmra.mrb[28].mxu1 %v1009_v30  ;;  %v915_v40 = vmax.f32 %v685_v33, 0.0 }
 0x141   :  { %v691_v39 = vadd.f32 %v690_v38, %v5835_v42  ;;  %v916_v44 = vmax.f32 %v687_v35, 0.0 }
 0x142   :  { %v917_v43 = vmax.f32 %v689_v37, 0.0  ;;  %1658 = vmatmul.mubr.bf16.gmra.mrb[140].mxu0 %v1009_v30 }
 0x143   :  { %v918_v45 = vmax.f32 %v691_v39, 0.0 }
 0x144   :  { %v1011_v46 = vpack.c.bf16 %v917_v43, %v915_v40 }
 0x145   :  { %v1012_v47 = vpack.c.bf16 %v918_v45, %v916_v44  ;;  %v694_v48 = vpop.f32.mrb[36].mxu0 }
 0x146   :  { %v695_v49 = vadd.f32 %v694_v48, %v5833_v41  ;;  %v696_v50 = vpop.f32.mrb[37].mxu0 }
 0x147   :  { %v697_v51 = vadd.f32 %v696_v50, %v5835_v42  ;;  %v698_v52 = vpop.f32.mrb[38].mxu0  ;;  %4116 = vmatprep.mubr.msk.bf16.mxu1 %vm1135_vm2, %v1012_v47  ;;  %4176 = vmatprep.mubr.msk.bf16.mxu0 %vm1135_vm2, %v1012_v47 }
 0x148   :  { %v699_v53 = vadd.f32 %v698_v52, %v5833_v41  ;;  %v700_v54 = vpop.f32.mrb[39].mxu0  ;;  %1321 = vmatmul.mubr.bf16.gmra.mrb[32].mxu1 %v1011_v46  ;;  %v919_v56 = vmax.f32 %v695_v49, 0.0 }
 0x149   :  { %v701_v55 = vadd.f32 %v700_v54, %v5835_v42  ;;  %v920_v58 = vmax.f32 %v697_v51, 0.0 }
 0x14a   :  { %v921_v57 = vmax.f32 %v699_v53, 0.0  ;;  %1666 = vmatmul.mubr.bf16.gmra.mrb[144].mxu0 %v1011_v46 }
 0x14b   :  { %v922_v59 = vmax.f32 %v701_v55, 0.0 }
 0x14c   :  { %v1013_v60 = vpack.c.bf16 %v921_v57, %v919_v56 }
 0x14d   :  { %v1014_v61 = vpack.c.bf16 %v922_v59, %v920_v58  ;;  %v704_v62 = vpop.f32.mrb[40].mxu0 }
 0x14e   :  { %v705_v63 = vadd.f32 %v704_v62, %v5833_v41  ;;  %v706_v0 = vpop.f32.mrb[41].mxu0 }
 0x14f   :  { %v707_v2 = vadd.f32 %v706_v0, %v5835_v42  ;;  %v708_v3 = vpop.f32.mrb[42].mxu0  ;;  %4117 = vmatprep.mubr.msk.bf16.mxu1 %vm1135_vm2, %v1014_v61  ;;  %4177 = vmatprep.mubr.msk.bf16.mxu0 %vm1135_vm2, %v1014_v61 }
 0x150   :  { %v709_v4 = vadd.f32 %v708_v3, %v5833_v41  ;;  %v710_v5 = vpop.f32.mrb[43].mxu0  ;;  %1329 = vmatmul.mubr.bf16.gmra.mrb[36].mxu1 %v1013_v60  ;;  %v923_v7 = vmax.f32 %v705_v63, 0.0 }
 0x151   :  { %v711_v6 = vadd.f32 %v710_v5, %v5835_v42  ;;  %v924_v1 = vmax.f32 %v707_v2, 0.0 }
 0x152   :  { %v925_v8 = vmax.f32 %v709_v4, 0.0  ;;  %1674 = vmatmul.mubr.bf16.gmra.mrb[148].mxu0 %v1013_v60 }
 0x153   :  { %v926_v9 = vmax.f32 %v711_v6, 0.0 }
 0x154   :  { %v1015_v10 = vpack.c.bf16 %v925_v8, %v923_v7 }
 0x155   :  { %v1016_v11 = vpack.c.bf16 %v926_v9, %v924_v1  ;;  %v714_v12 = vpop.f32.mrb[44].mxu0 }
 0x156   :  { %v715_v13 = vadd.f32 %v714_v12, %v5833_v41  ;;  %v716_v14 = vpop.f32.mrb[45].mxu0 }
 0x157   :  { %v717_v15 = vadd.f32 %v716_v14, %v5835_v42  ;;  %v718_v16 = vpop.f32.mrb[46].mxu0  ;;  %4118 = vmatprep.mubr.msk.bf16.mxu1 %vm1135_vm2, %v1016_v11  ;;  %4178 = vmatprep.mubr.msk.bf16.mxu0 %vm1135_vm2, %v1016_v11 }
 0x158   :  { %v719_v17 = vadd.f32 %v718_v16, %v5833_v41  ;;  %v720_v18 = vpop.f32.mrb[47].mxu0  ;;  %1337 = vmatmul.mubr.bf16.gmra.mrb[40].mxu1 %v1015_v10  ;;  %v927_v20 = vmax.f32 %v715_v13, 0.0 }
 0x159   :  { %v721_v19 = vadd.f32 %v720_v18, %v5835_v42  ;;  %v928_v22 = vmax.f32 %v717_v15, 0.0 }
 0x15a   :  { %v929_v21 = vmax.f32 %v719_v17, 0.0  ;;  %1682 = vmatmul.mubr.bf16.gmra.mrb[152].mxu0 %v1015_v10 }
 0x15b   :  { %v930_v23 = vmax.f32 %v721_v19, 0.0 }
 0x15c   :  { %v1017_v24 = vpack.c.bf16 %v929_v21, %v927_v20 }
 0x15d   :  { %v1018_v25 = vpack.c.bf16 %v930_v23, %v928_v22  ;;  %v724_v26 = vpop.f32.mrb[48].mxu0 }
 0x15e   :  { %v725_v28 = vadd.f32 %v724_v26, %v5833_v41  ;;  %v726_v29 = vpop.f32.mrb[49].mxu0 }
 0x15f   :  { %v727_v30 = vadd.f32 %v726_v29, %v5835_v42  ;;  %v728_v31 = vpop.f32.mrb[50].mxu0  ;;  %4119 = vmatprep.mubr.msk.bf16.mxu1 %vm1135_vm2, %v1018_v25  ;;  %4179 = vmatprep.mubr.msk.bf16.mxu0 %vm1135_vm2, %v1018_v25 }
 0x160   :  { %v729_v32 = vadd.f32 %v728_v31, %v5833_v41  ;;  %v730_v33 = vpop.f32.mrb[51].mxu0  ;;  %1345 = vmatmul.mubr.bf16.gmra.mrb[44].mxu1 %v1017_v24  ;;  %v931_v35 = vmax.f32 %v725_v28, 0.0 }
 0x161   :  { %v731_v34 = vadd.f32 %v730_v33, %v5835_v42  ;;  %v932_v37 = vmax.f32 %v727_v30, 0.0 }
 0x162   :  { %v933_v36 = vmax.f32 %v729_v32, 0.0  ;;  %1690 = vmatmul.mubr.bf16.gmra.mrb[156].mxu0 %v1017_v24  ;;  %v5373_v24 = vld [vmem:[%s6605_s4 + $0x44] sm:$0xff]  }
 0x163   :  { %v934_v38 = vmax.f32 %v731_v34, 0.0  ;;  %4626 = vmatprep.subr.bf16.mxu1 %v5373_v24 }
 0x164   :  { %v1019_v39 = vpack.c.bf16 %v933_v36, %v931_v35  ;;  %4627 = vmatpush3.bf16.msra.mxu1 %v5373_v24  ;;  %v5374_v35 = vld [vmem:[%s6605_s4 + $0x4c] sm:$0xff]  }
 0x165   :  { %v1020_v40 = vpack.c.bf16 %v934_v38, %v932_v37  ;;  %v734_v43 = vpop.f32.mrb[52].mxu0  ;;  %4628 = vmatprep.subr.bf16.mxu1 %v5374_v35 }
 0x166   :  { %v735_v44 = vadd.f32 %v734_v43, %v5833_v41  ;;  %v736_v45 = vpop.f32.mrb[53].mxu0 }
 0x167   :  { %v737_v46 = vadd.f32 %v736_v45, %v5835_v42  ;;  %v738_v47 = vpop.f32.mrb[54].mxu0  ;;  %4120 = vmatprep.mubr.msk.bf16.mxu1 %vm1135_vm2, %v1020_v40  ;;  %4180 = vmatprep.mubr.msk.bf16.mxu0 %vm1135_vm2, %v1020_v40 }
 0x168   :  { %v739_v48 = vadd.f32 %v738_v47, %v5833_v41  ;;  %v740_v49 = vpop.f32.mrb[55].mxu0  ;;  %1353 = vmatmul.mubr.bf16.gmra.mrb[48].mxu1 %v1019_v39  ;;  %v935_v51 = vmax.f32 %v735_v44, 0.0 }
 0x169   :  { %v741_v50 = vadd.f32 %v740_v49, %v5835_v42  ;;  %v936_v53 = vmax.f32 %v737_v46, 0.0  ;;  %v5375_v46 = vld [vmem:[%s6605_s4 + $0x54] ss:$0 sps:$4 sm:$0x33]   ;;  %4629 = vmatpush3.bf16.msra.mxu1 %v5374_v35 }
 0x16a   :  { %v937_v52 = vmax.f32 %v739_v48, 0.0  ;;  %1698 = vmatmul.mubr.bf16.gmra.mrb[160].mxu0 %v1019_v39  ;;  %5225 = vmatprep.subr.msk.bf16.mxu1 %vm2011_vm3, %v5375_v46 }
 0x16b   :  { %v938_v54 = vmax.f32 %v741_v50, 0.0  ;;  %v2013_v50 = vsel %vm2011_vm3, %v5375_v46, 0 }
 0x16c   :  { %v1021_v55 = vpack.c.bf16 %v937_v52, %v935_v51 }
 0x16d   :  { %v1022_v56 = vpack.c.bf16 %v938_v54, %v936_v53  ;;  %v744_v57 = vpop.f32.mrb[56].mxu0  ;;  %4631 = vmatpush3.bf16.msra.mxu1 %v2013_v50 }
 0x16e   :  { %v745_v58 = vadd.f32 %v744_v57, %v5833_v41  ;;  %v746_v59 = vpop.f32.mrb[57].mxu0 }
 0x16f   :  { %v747_v60 = vadd.f32 %v746_v59, %v5835_v42  ;;  %v748_v61 = vpop.f32.mrb[58].mxu0  ;;  %4121 = vmatprep.mubr.msk.bf16.mxu1 %vm1135_vm2, %v1022_v56  ;;  %4181 = vmatprep.mubr.msk.bf16.mxu0 %vm1135_vm2, %v1022_v56 }
 0x170   :  { %v749_v62 = vadd.f32 %v748_v61, %v5833_v41  ;;  %v750_v63 = vpop.f32.mrb[59].mxu0  ;;  %1361 = vmatmul.mubr.bf16.gmra.mrb[52].mxu1 %v1021_v55  ;;  %v939_v2 = vmax.f32 %v745_v58, 0.0 }
 0x171   :  { %v751_v0 = vadd.f32 %v750_v63, %v5835_v42  ;;  %v940_v4 = vmax.f32 %v747_v60, 0.0 }
 0x172   :  { %v941_v3 = vmax.f32 %v749_v62, 0.0  ;;  %1706 = vmatmul.mubr.bf16.gmra.mrb[164].mxu0 %v1021_v55 }
 0x173   :  { %v942_v5 = vmax.f32 %v751_v0, 0.0 }
 0x174   :  { %v1023_v6 = vpack.c.bf16 %v941_v3, %v939_v2 }
 0x175   :  { %v1024_v7 = vpack.c.bf16 %v942_v5, %v940_v4  ;;  %v754_v8 = vpop.f32.mrb[60].mxu0 }
 0x176   :  { %v755_v1 = vadd.f32 %v754_v8, %v5833_v41  ;;  %v756_v9 = vpop.f32.mrb[61].mxu0 }
 0x177   :  { %v757_v10 = vadd.f32 %v756_v9, %v5835_v42  ;;  %v758_v11 = vpop.f32.mrb[62].mxu0  ;;  %4122 = vmatprep.mubr.msk.bf16.mxu1 %vm1135_vm2, %v1024_v7  ;;  %4182 = vmatprep.mubr.msk.bf16.mxu0 %vm1135_vm2, %v1024_v7 }
 0x178   :  { %v759_v12 = vadd.f32 %v758_v11, %v5833_v41  ;;  %v760_v13 = vpop.f32.mrb[63].mxu0  ;;  %1369 = vmatmul.mubr.bf16.gmra.mrb[56].mxu1 %v1023_v6  ;;  %v943_v15 = vmax.f32 %v755_v1, 0.0 }
 0x179   :  { %v761_v14 = vadd.f32 %v760_v13, %v5835_v42  ;;  %v944_v17 = vmax.f32 %v757_v10, 0.0 }
 0x17a   :  { %v945_v16 = vmax.f32 %v759_v12, 0.0  ;;  %1714 = vmatmul.mubr.bf16.gmra.mrb[168].mxu0 %v1023_v6 }
 0x17b   :  { %v946_v18 = vmax.f32 %v761_v14, 0.0 }
 0x17c   :  { %v1025_v19 = vpack.c.bf16 %v945_v16, %v943_v15 }
 0x17d   :  { %v1026_v20 = vpack.c.bf16 %v946_v18, %v944_v17  ;;  %v764_v21 = vpop.f32.mrb[64].mxu0 }
 0x17e   :  { %v765_v22 = vadd.f32 %v764_v21, %v5833_v41  ;;  %v766_v23 = vpop.f32.mrb[65].mxu0 }
 0x17f   :  { %v767_v25 = vadd.f32 %v766_v23, %v5835_v42  ;;  %v768_v26 = vpop.f32.mrb[66].mxu0  ;;  %4123 = vmatprep.mubr.msk.bf16.mxu1 %vm1135_vm2, %v1026_v20  ;;  %4183 = vmatprep.mubr.msk.bf16.mxu0 %vm1135_vm2, %v1026_v20 }
 0x180   :  { %v769_v27 = vadd.f32 %v768_v26, %v5833_v41  ;;  %v770_v28 = vpop.f32.mrb[67].mxu0  ;;  %1377 = vmatmul.mubr.bf16.gmra.mrb[60].mxu1 %v1025_v19  ;;  %v947_v30 = vmax.f32 %v765_v22, 0.0 }
 0x181   :  { %v771_v29 = vadd.f32 %v770_v28, %v5835_v42  ;;  %v948_v32 = vmax.f32 %v767_v25, 0.0 }
 0x182   :  { %v949_v31 = vmax.f32 %v769_v27, 0.0  ;;  %1722 = vmatmul.mubr.bf16.gmra.mrb[172].mxu0 %v1025_v19 }
 0x183   :  { %v950_v33 = vmax.f32 %v771_v29, 0.0 }
 0x184   :  { %v1027_v34 = vpack.c.bf16 %v949_v31, %v947_v30 }
 0x185   :  { %v1028_v36 = vpack.c.bf16 %v950_v33, %v948_v32  ;;  %v774_v37 = vpop.f32.mrb[68].mxu0 }
 0x186   :  { %v775_v38 = vadd.f32 %v774_v37, %v5833_v41  ;;  %v776_v39 = vpop.f32.mrb[69].mxu0 }
 0x187   :  { %v777_v40 = vadd.f32 %v776_v39, %v5835_v42  ;;  %v778_v43 = vpop.f32.mrb[70].mxu0  ;;  %4124 = vmatprep.mubr.msk.bf16.mxu1 %vm1135_vm2, %v1028_v36  ;;  %4184 = vmatprep.mubr.msk.bf16.mxu0 %vm1135_vm2, %v1028_v36 }
 0x188   :  { %v779_v44 = vadd.f32 %v778_v43, %v5833_v41  ;;  %v780_v45 = vpop.f32.mrb[71].mxu0  ;;  %1385 = vmatmul.mubr.bf16.gmra.mrb[64].mxu1 %v1027_v34  ;;  %v951_v48 = vmax.f32 %v775_v38, 0.0 }
 0x189   :  { %v781_v47 = vadd.f32 %v780_v45, %v5835_v42  ;;  %v952_v51 = vmax.f32 %v777_v40, 0.0 }
 0x18a   :  { %v953_v49 = vmax.f32 %v779_v44, 0.0  ;;  %1730 = vmatmul.mubr.bf16.gmra.mrb[176].mxu0 %v1027_v34 }
 0x18b   :  { %v954_v52 = vmax.f32 %v781_v47, 0.0 }
 0x18c   :  { %v1029_v53 = vpack.c.bf16 %v953_v49, %v951_v48 }
 0x18d   :  { %v1030_v54 = vpack.c.bf16 %v954_v52, %v952_v51  ;;  %v784_v55 = vpop.f32.mrb[72].mxu0 }
 0x18e   :  { %v785_v56 = vadd.f32 %v784_v55, %v5833_v41  ;;  %v786_v57 = vpop.f32.mrb[73].mxu0 }
 0x18f   :  { %v787_v58 = vadd.f32 %v786_v57, %v5835_v42  ;;  %v788_v59 = vpop.f32.mrb[74].mxu0  ;;  %4125 = vmatprep.mubr.msk.bf16.mxu1 %vm1135_vm2, %v1030_v54  ;;  %4185 = vmatprep.mubr.msk.bf16.mxu0 %vm1135_vm2, %v1030_v54 }
 0x190   :  { %v789_v60 = vadd.f32 %v788_v59, %v5833_v41  ;;  %v790_v61 = vpop.f32.mrb[75].mxu0  ;;  %1393 = vmatmul.mubr.bf16.gmra.mrb[68].mxu1 %v1029_v53  ;;  %v955_v63 = vmax.f32 %v785_v56, 0.0 }
 0x191   :  { %v791_v62 = vadd.f32 %v790_v61, %v5835_v42  ;;  %v956_v2 = vmax.f32 %v787_v58, 0.0 }
 0x192   :  { %v957_v0 = vmax.f32 %v789_v60, 0.0  ;;  %1738 = vmatmul.mubr.bf16.gmra.mrb[180].mxu0 %v1029_v53 }
 0x193   :  { %v958_v3 = vmax.f32 %v791_v62, 0.0 }
 0x194   :  { %v1031_v4 = vpack.c.bf16 %v957_v0, %v955_v63 }
 0x195   :  { %v1032_v5 = vpack.c.bf16 %v958_v3, %v956_v2  ;;  %v794_v6 = vpop.f32.mrb[76].mxu0 }
 0x196   :  { %v795_v7 = vadd.f32 %v794_v6, %v5833_v41  ;;  %v796_v8 = vpop.f32.mrb[77].mxu0 }
 0x197   :  { %v797_v1 = vadd.f32 %v796_v8, %v5835_v42  ;;  %v798_v9 = vpop.f32.mrb[78].mxu0  ;;  %4126 = vmatprep.mubr.msk.bf16.mxu1 %vm1135_vm2, %v1032_v5  ;;  %4186 = vmatprep.mubr.msk.bf16.mxu0 %vm1135_vm2, %v1032_v5 }
 0x198   :  { %v799_v10 = vadd.f32 %v798_v9, %v5833_v41  ;;  %v800_v11 = vpop.f32.mrb[79].mxu0  ;;  %1401 = vmatmul.mubr.bf16.gmra.mrb[72].mxu1 %v1031_v4  ;;  %v959_v13 = vmax.f32 %v795_v7, 0.0 }
 0x199   :  { %v801_v12 = vadd.f32 %v800_v11, %v5835_v42  ;;  %v960_v15 = vmax.f32 %v797_v1, 0.0 }
 0x19a   :  { %v961_v14 = vmax.f32 %v799_v10, 0.0  ;;  %1746 = vmatmul.mubr.bf16.gmra.mrb[184].mxu0 %v1031_v4 }
 0x19b   :  { %v962_v16 = vmax.f32 %v801_v12, 0.0 }
 0x19c   :  { %v1033_v17 = vpack.c.bf16 %v961_v14, %v959_v13 }
 0x19d   :  { %v1034_v18 = vpack.c.bf16 %v962_v16, %v960_v15  ;;  %v804_v19 = vpop.f32.mrb[80].mxu0 }
 0x19e   :  { %v805_v20 = vadd.f32 %v804_v19, %v5833_v41  ;;  %v806_v21 = vpop.f32.mrb[81].mxu0 }
 0x19f   :  { %v807_v22 = vadd.f32 %v806_v21, %v5835_v42  ;;  %v808_v23 = vpop.f32.mrb[82].mxu0  ;;  %4127 = vmatprep.mubr.msk.bf16.mxu1 %vm1135_vm2, %v1034_v18  ;;  %4187 = vmatprep.mubr.msk.bf16.mxu0 %vm1135_vm2, %v1034_v18 }
 0x1a0   :  { %v809_v24 = vadd.f32 %v808_v23, %v5833_v41  ;;  %v810_v25 = vpop.f32.mrb[83].mxu0  ;;  %1409 = vmatmul.mubr.bf16.gmra.mrb[76].mxu1 %v1033_v17  ;;  %v963_v27 = vmax.f32 %v805_v20, 0.0 }
 0x1a1   :  { %v811_v26 = vadd.f32 %v810_v25, %v5835_v42  ;;  %v964_v29 = vmax.f32 %v807_v22, 0.0 }
 0x1a2   :  { %v965_v28 = vmax.f32 %v809_v24, 0.0  ;;  %1754 = vmatmul.mubr.bf16.gmra.mrb[188].mxu0 %v1033_v17 }
 0x1a3   :  { %v966_v30 = vmax.f32 %v811_v26, 0.0 }
 0x1a4   :  { %v1035_v31 = vpack.c.bf16 %v965_v28, %v963_v27 }
 0x1a5   :  { %v1036_v32 = vpack.c.bf16 %v966_v30, %v964_v29  ;;  %v814_v33 = vpop.f32.mrb[84].mxu0 }
 0x1a6   :  { %v815_v34 = vadd.f32 %v814_v33, %v5833_v41  ;;  %v816_v35 = vpop.f32.mrb[85].mxu0 }
 0x1a7   :  { %v817_v36 = vadd.f32 %v816_v35, %v5835_v42  ;;  %v818_v37 = vpop.f32.mrb[86].mxu0  ;;  %4128 = vmatprep.mubr.msk.bf16.mxu1 %vm1135_vm2, %v1036_v32  ;;  %4188 = vmatprep.mubr.msk.bf16.mxu0 %vm1135_vm2, %v1036_v32 }
 0x1a8   :  { %v819_v38 = vadd.f32 %v818_v37, %v5833_v41  ;;  %v820_v39 = vpop.f32.mrb[87].mxu0  ;;  %1417 = vmatmul.mubr.bf16.gmra.mrb[80].mxu1 %v1035_v31  ;;  %v967_v43 = vmax.f32 %v815_v34, 0.0 }
 0x1a9   :  { %v821_v40 = vadd.f32 %v820_v39, %v5835_v42  ;;  %v968_v45 = vmax.f32 %v817_v36, 0.0 }
 0x1aa   :  { %v969_v44 = vmax.f32 %v819_v38, 0.0  ;;  %1762 = vmatmul.mubr.bf16.gmra.mrb[192].mxu0 %v1035_v31 }
 0x1ab   :  { %v970_v46 = vmax.f32 %v821_v40, 0.0 }
 0x1ac   :  { %v1037_v47 = vpack.c.bf16 %v969_v44, %v967_v43 }
 0x1ad   :  { %v1038_v48 = vpack.c.bf16 %v970_v46, %v968_v45  ;;  %v824_v49 = vpop.f32.mrb[88].mxu0 }
 0x1ae   :  { %v825_v50 = vadd.f32 %v824_v49, %v5833_v41  ;;  %v826_v51 = vpop.f32.mrb[89].mxu0 }
 0x1af   :  { %v827_v52 = vadd.f32 %v826_v51, %v5835_v42  ;;  %v828_v53 = vpop.f32.mrb[90].mxu0  ;;  %4129 = vmatprep.mubr.msk.bf16.mxu1 %vm1135_vm2, %v1038_v48  ;;  %4189 = vmatprep.mubr.msk.bf16.mxu0 %vm1135_vm2, %v1038_v48 }
 0x1b0   :  { %v829_v54 = vadd.f32 %v828_v53, %v5833_v41  ;;  %v830_v55 = vpop.f32.mrb[91].mxu0  ;;  %1425 = vmatmul.mubr.bf16.gmra.mrb[84].mxu1 %v1037_v47  ;;  %v971_v57 = vmax.f32 %v825_v50, 0.0 }
 0x1b1   :  { %v831_v56 = vadd.f32 %v830_v55, %v5835_v42  ;;  %v972_v59 = vmax.f32 %v827_v52, 0.0 }
 0x1b2   :  { %v973_v58 = vmax.f32 %v829_v54, 0.0  ;;  %1770 = vmatmul.mubr.bf16.gmra.mrb[196].mxu0 %v1037_v47 }
 0x1b3   :  { %v974_v60 = vmax.f32 %v831_v56, 0.0 }
 0x1b4   :  { %v1039_v61 = vpack.c.bf16 %v973_v58, %v971_v57 }
 0x1b5   :  { %v1040_v62 = vpack.c.bf16 %v974_v60, %v972_v59  ;;  %v834_v63 = vpop.f32.mrb[92].mxu0 }
 0x1b6   :  { %v835_v0 = vadd.f32 %v834_v63, %v5833_v41  ;;  %v836_v2 = vpop.f32.mrb[93].mxu0 }
 0x1b7   :  { %v837_v3 = vadd.f32 %v836_v2, %v5835_v42  ;;  %v838_v4 = vpop.f32.mrb[94].mxu0  ;;  %4130 = vmatprep.mubr.msk.bf16.mxu1 %vm1135_vm2, %v1040_v62  ;;  %4190 = vmatprep.mubr.msk.bf16.mxu0 %vm1135_vm2, %v1040_v62 }
 0x1b8   :  { %v839_v5 = vadd.f32 %v838_v4, %v5833_v41  ;;  %v840_v6 = vpop.f32.mrb[95].mxu0  ;;  %1433 = vmatmul.mubr.bf16.gmra.mrb[88].mxu1 %v1039_v61  ;;  %v975_v8 = vmax.f32 %v835_v0, 0.0 }
 0x1b9   :  { %v841_v7 = vadd.f32 %v840_v6, %v5835_v42  ;;  %v976_v9 = vmax.f32 %v837_v3, 0.0 }
 0x1ba   :  { %v977_v1 = vmax.f32 %v839_v5, 0.0  ;;  %1778 = vmatmul.mubr.bf16.gmra.mrb[200].mxu0 %v1039_v61 }
 0x1bb   :  { %v978_v10 = vmax.f32 %v841_v7, 0.0 }
 0x1bc   :  { %v1041_v11 = vpack.c.bf16 %v977_v1, %v975_v8 }
 0x1bd   :  { %v1042_v12 = vpack.c.bf16 %v978_v10, %v976_v9  ;;  %v844_v13 = vpop.f32.mrb[96].mxu0 }
 0x1be   :  { %v845_v14 = vadd.f32 %v844_v13, %v5833_v41  ;;  %v846_v15 = vpop.f32.mrb[97].mxu0 }
 0x1bf   :  { %v847_v16 = vadd.f32 %v846_v15, %v5835_v42  ;;  %v848_v17 = vpop.f32.mrb[98].mxu0  ;;  %4131 = vmatprep.mubr.msk.bf16.mxu1 %vm1135_vm2, %v1042_v12  ;;  %4191 = vmatprep.mubr.msk.bf16.mxu0 %vm1135_vm2, %v1042_v12 }
 0x1c0   :  { %v849_v18 = vadd.f32 %v848_v17, %v5833_v41  ;;  %v850_v19 = vpop.f32.mrb[99].mxu0  ;;  %1441 = vmatmul.mubr.bf16.gmra.mrb[92].mxu1 %v1041_v11  ;;  %v979_v21 = vmax.f32 %v845_v14, 0.0 }
 0x1c1   :  { %v851_v20 = vadd.f32 %v850_v19, %v5835_v42  ;;  %v980_v23 = vmax.f32 %v847_v16, 0.0 }
 0x1c2   :  { %v981_v22 = vmax.f32 %v849_v18, 0.0  ;;  %1786 = vmatmul.mubr.bf16.gmra.mrb[204].mxu0 %v1041_v11 }
 0x1c3   :  { %v982_v24 = vmax.f32 %v851_v20, 0.0 }
 0x1c4   :  { %v1043_v25 = vpack.c.bf16 %v981_v22, %v979_v21 }
 0x1c5   :  { %v1044_v26 = vpack.c.bf16 %v982_v24, %v980_v23  ;;  %v854_v27 = vpop.f32.mrb[100].mxu0 }
 0x1c6   :  { %v855_v28 = vadd.f32 %v854_v27, %v5833_v41  ;;  %v856_v29 = vpop.f32.mrb[101].mxu0 }
 0x1c7   :  { %v857_v30 = vadd.f32 %v856_v29, %v5835_v42  ;;  %v858_v31 = vpop.f32.mrb[102].mxu0  ;;  %4132 = vmatprep.mubr.msk.bf16.mxu1 %vm1135_vm2, %v1044_v26  ;;  %4192 = vmatprep.mubr.msk.bf16.mxu0 %vm1135_vm2, %v1044_v26 }
 0x1c8   :  { %v859_v32 = vadd.f32 %v858_v31, %v5833_v41  ;;  %v860_v33 = vpop.f32.mrb[103].mxu0  ;;  %1449 = vmatmul.mubr.bf16.gmra.mrb[96].mxu1 %v1043_v25  ;;  %v983_v35 = vmax.f32 %v855_v28, 0.0 }
 0x1c9   :  { %v861_v34 = vadd.f32 %v860_v33, %v5835_v42  ;;  %v984_v37 = vmax.f32 %v857_v30, 0.0 }
 0x1ca   :  { %v985_v36 = vmax.f32 %v859_v32, 0.0  ;;  %1794 = vmatmul.mubr.bf16.gmra.mrb[208].mxu0 %v1043_v25 }
 0x1cb   :  { %v986_v38 = vmax.f32 %v861_v34, 0.0 }
 0x1cc   :  { %v1045_v39 = vpack.c.bf16 %v985_v36, %v983_v35  ;;  %v5376_v35 = vld [vmem:[%s6605_s4] sm:$0xff]  }
 0x1cd   :  { %v1046_v40 = vpack.c.bf16 %v986_v38, %v984_v37  ;;  %v864_v43 = vpop.f32.mrb[104].mxu0  ;;  %4652 = vmatprep.subr.bf16.mxu1 %v5376_v35 }
 0x1ce   :  { %v865_v44 = vadd.f32 %v864_v43, %v5833_v41  ;;  %v866_v45 = vpop.f32.mrb[105].mxu0 }
 0x1cf   :  { %v867_v46 = vadd.f32 %v866_v45, %v5835_v42  ;;  %v868_v47 = vpop.f32.mrb[106].mxu0  ;;  %4133 = vmatprep.mubr.msk.bf16.mxu1 %vm1135_vm2, %v1046_v40  ;;  %4193 = vmatprep.mubr.msk.bf16.mxu0 %vm1135_vm2, %v1046_v40 }
 0x1d0   :  { %v869_v48 = vadd.f32 %v868_v47, %v5833_v41  ;;  %v870_v49 = vpop.f32.mrb[107].mxu0  ;;  %1457 = vmatmul.mubr.bf16.gmra.mrb[100].mxu1 %v1045_v39  ;;  %v987_v51 = vmax.f32 %v865_v44, 0.0 }
 0x1d1   :  { %v871_v50 = vadd.f32 %v870_v49, %v5835_v42  ;;  %v988_v53 = vmax.f32 %v867_v46, 0.0 }
 0x1d2   :  { %v989_v52 = vmax.f32 %v869_v48, 0.0  ;;  %1802 = vmatmul.mubr.bf16.gmra.mrb[212].mxu0 %v1045_v39 }
 0x1d3   :  { %v990_v54 = vmax.f32 %v871_v50, 0.0 }
 0x1d4   :  { %v1047_v55 = vpack.c.bf16 %v989_v52, %v987_v51 }
 0x1d5   :  { %v1048_v56 = vpack.c.bf16 %v990_v54, %v988_v53  ;;  %v874_v57 = vpop.f32.mrb[108].mxu0 }
 0x1d6   :  { %v875_v58 = vadd.f32 %v874_v57, %v5833_v41  ;;  %v876_v59 = vpop.f32.mrb[109].mxu0 }
 0x1d7   :  { %v877_v60 = vadd.f32 %v876_v59, %v5835_v42  ;;  %v878_v61 = vpop.f32.mrb[110].mxu0  ;;  %4134 = vmatprep.mubr.msk.bf16.mxu1 %vm1135_vm2, %v1048_v56  ;;  %4194 = vmatprep.mubr.msk.bf16.mxu0 %vm1135_vm2, %v1048_v56 }
 0x1d8   :  { %v879_v62 = vadd.f32 %v878_v61, %v5833_v41  ;;  %v880_v63 = vpop.f32.mrb[111].mxu0  ;;  %1465 = vmatmul.mubr.bf16.gmra.mrb[104].mxu1 %v1047_v55  ;;  %v991_v2 = vmax.f32 %v875_v58, 0.0 }
 0x1d9   :  { %v881_v0 = vadd.f32 %v880_v63, %v5835_v42  ;;  %v992_v4 = vmax.f32 %v877_v60, 0.0 }
 0x1da   :  { %v993_v3 = vmax.f32 %v879_v62, 0.0  ;;  %1810 = vmatmul.mubr.bf16.gmra.mrb[216].mxu0 %v1047_v55 }
 0x1db   :  { %v994_v5 = vmax.f32 %v881_v0, 0.0  ;;  %v1258_v6 = vpop.f32.mrb[0].mxu1 }
 0x1dc   :  { %v1049_v7 = vpack.c.bf16 %v993_v3, %v991_v2  ;;  %v1260_v8 = vpop.f32.mrb[1].mxu1 }
 0x1dd   :  { %v1050_v1 = vpack.c.bf16 %v994_v5, %v992_v4  ;;  %v1261_v9 = vpop.f32.mrb[2].mxu1  ;;  %v1603_v10 = vpop.f32.mrb[112].mxu0 }
 0x1de   :  { %v1826_v11 = vmax.f32 %v1258_v6, %v1603_v10  ;;  %v1263_v12 = vpop.f32.mrb[3].mxu1  ;;  %v1605_v13 = vpop.f32.mrb[113].mxu0 }
 0x1df   :  { %4135 = vmatprep.mubr.msk.bf16.mxu1 %vm1135_vm2, %v1050_v1  ;;  %v1606_v41 = vpop.f32.mrb[114].mxu0  ;;  %4195 = vmatprep.mubr.msk.bf16.mxu0 %vm1135_vm2, %v1050_v1 }
 0x1e0   :  { %v1827_v42 = vmax.f32 %v1261_v9, %v1606_v41  ;;  %1473 = vmatmul.mubr.bf16.gmra.mrb[108].mxu1 %v1049_v7  ;;  %v1608_v14 = vpop.f32.mrb[115].mxu0 }
 0x1e2   :  { %1818 = vmatmul.mubr.bf16.gmra.mrb[220].mxu0 %v1049_v7 }
 0x1e3   :  { %v1266_v15 = vpop.f32.mrb[4].mxu1 }
 0x1e4   :  { %v1268_v16 = vpop.f32.mrb[5].mxu1 }
 0x1e5   :  { %v1269_v17 = vpop.f32.mrb[6].mxu1  ;;  %v1611_v18 = vpop.f32.mrb[116].mxu0 }
 0x1e6   :  { %v1828_v19 = vmax.f32 %v1266_v15, %v1611_v18  ;;  %v1271_v20 = vpop.f32.mrb[7].mxu1  ;;  %v1613_v21 = vpop.f32.mrb[117].mxu0 }
 0x1e7   :  { %v1614_v22 = vpop.f32.mrb[118].mxu0 }
 0x1e8   :  { %v6029_v23 = vmax.f32 %v1826_v11, %v1828_v19  ;;  %v1829_v24 = vmax.f32 %v1269_v17, %v1614_v22  ;;  %v1616_v25 = vpop.f32.mrb[119].mxu0  ;;  %v5378_v22 = vld [vmem:[%s6605_s4 + $0x10] sm:$0xff]  }
 0x1ea   :  { %v6031_v26 = vmax.f32 %v1827_v42, %v1829_v24  ;;  %v5377_v42 = vld [vmem:[%s6605_s4 + $0x8] sm:$0xff]  }
 0x1eb   :  { %v1274_v27 = vpop.f32.mrb[8].mxu1 }
 0x1ec   :  { %v1884_v28 = vpack.c.bf16 %v6031_v26, %v6029_v23  ;;  %v1276_v29 = vpop.f32.mrb[9].mxu1 }
 0x1ed   :  { %v1277_v30 = vpop.f32.mrb[10].mxu1  ;;  %v1619_v31 = vpop.f32.mrb[120].mxu0 }
 0x1ee   :  { %v1830_v32 = vmax.f32 %v1274_v27, %v1619_v31  ;;  %v1279_v33 = vpop.f32.mrb[11].mxu1  ;;  %v1621_v34 = vpop.f32.mrb[121].mxu0  ;;  %v5379_v27 = vld [vmem:[%s6605_s4 + $0x18] sm:$0xff]  }
 0x1ef   :  { %v1622_v36 = vpop.f32.mrb[122].mxu0 }
 0x1f0   :  { %v1831_v37 = vmax.f32 %v1277_v30, %v1622_v36  ;;  %v1624_v38 = vpop.f32.mrb[123].mxu0 }
 0x1f1   :  { %v5380_v38 = vld [vmem:[%s6605_s4 + $0x20] sm:$0xff]  }
 0x1f3   :  { %v1282_v39 = vpop.f32.mrb[12].mxu1 }
 0x1f4   :  { %v1284_v40 = vpop.f32.mrb[13].mxu1 }
 0x1f5   :  { %v1285_v43 = vpop.f32.mrb[14].mxu1  ;;  %v1627_v44 = vpop.f32.mrb[124].mxu0 }
 0x1f6   :  { %v1832_v45 = vmax.f32 %v1282_v39, %v1627_v44  ;;  %v1287_v46 = vpop.f32.mrb[15].mxu1  ;;  %v1629_v47 = vpop.f32.mrb[125].mxu0 }
 0x1f7   :  { %v1630_v48 = vpop.f32.mrb[126].mxu0 }
 0x1f8   :  { %v1885_v49 = vmax.f32 %v1830_v32, %v1832_v45  ;;  %v1833_v50 = vmax.f32 %v1285_v43, %v1630_v48  ;;  %v1632_v51 = vpop.f32.mrb[127].mxu0  ;;  %v5381_v45 = vld [vmem:[%s6605_s4 + $0x28] ss:$0 sps:$4 sm:$0x33]  }
 0x1fa   :  { %v1886_v52 = vmax.f32 %v1831_v37, %v1833_v50 }
 0x1fb   :  { %v1290_v53 = vpop.f32.mrb[16].mxu1 }
 0x1fc   :  { %v6038_v54 = vpack.c.bf16 %v1886_v52, %v1885_v49  ;;  %v1292_v55 = vpop.f32.mrb[17].mxu1 }
 0x1fd   :  { %v1293_v56 = vpop.f32.mrb[18].mxu1  ;;  %v1635_v57 = vpop.f32.mrb[128].mxu0  ;;  %v2165_v55 = vsel %vm2011_vm3, %v5381_v45, 0 }
 0x1fe   :  { %v1834_v58 = vmax.f32 %v1290_v53, %v1635_v57  ;;  %v1295_v59 = vpop.f32.mrb[19].mxu1  ;;  %v1637_v60 = vpop.f32.mrb[129].mxu0  ;;  %4632 = vmatprep.mubr.msk.bf16.mxu1 %vm1980_vm4, %v6038_v54 }
 0x1ff   :  { %v1638_v61 = vpop.f32.mrb[130].mxu0 }
 0x200   :  { %v1835_v62 = vmax.f32 %v1293_v56, %v1638_v61  ;;  %v1640_v63 = vpop.f32.mrb[131].mxu0  ;;  %v6070_v56 = vld [vmem:[%s6605_s4 + $0x58] sm:$0xff]  }
 0x203   :  { %v1298_v0 = vpop.f32.mrb[20].mxu1 }
 0x204   :  { %v1300_v2 = vpop.f32.mrb[21].mxu1 }
 0x205   :  { %v1301_v3 = vpop.f32.mrb[22].mxu1  ;;  %v1643_v4 = vpop.f32.mrb[132].mxu0 }
 0x206   :  { %v1836_v5 = vmax.f32 %v1298_v0, %v1643_v4  ;;  %v1303_v6 = vpop.f32.mrb[23].mxu1  ;;  %v1645_v7 = vpop.f32.mrb[133].mxu0 }
 0x207   :  { %v1646_v8 = vpop.f32.mrb[134].mxu0 }
 0x208   :  { %v1888_v1 = vmax.f32 %v1834_v58, %v1836_v5  ;;  %v1837_v9 = vmax.f32 %v1301_v3, %v1646_v8  ;;  %v1648_v10 = vpop.f32.mrb[135].mxu0 }
 0x20a   :  { %v1889_v11 = vmax.f32 %v1835_v62, %v1837_v9 }
 0x20b   :  { %v1306_v12 = vpop.f32.mrb[24].mxu1 }
 0x20c   :  { %v6042_v13 = vpack.c.bf16 %v1889_v11, %v1888_v1  ;;  %v1308_v41 = vpop.f32.mrb[25].mxu1 }
 0x20d   :  { %v1309_v14 = vpop.f32.mrb[26].mxu1  ;;  %v1651_v15 = vpop.f32.mrb[136].mxu0 }
 0x20e   :  { %v1838_v16 = vmax.f32 %v1306_v12, %v1651_v15  ;;  %v1311_v17 = vpop.f32.mrb[27].mxu1  ;;  %v1653_v18 = vpop.f32.mrb[137].mxu0  ;;  %4633 = vmatmul.mubr.msk.bf16.vlgmr.msra.gmra.mrb[112].mxu1 %vm1980_vm4, %v6042_v13 }
 0x20f   :  { %v1654_v19 = vpop.f32.mrb[138].mxu0  ;;  %4653 = vmatpush3.bf16.msra.mxu1 %v5376_v35 }
 0x210   :  { %v1839_v20 = vmax.f32 %v1309_v14, %v1654_v19  ;;  %v1656_v21 = vpop.f32.mrb[139].mxu0  ;;  %4654 = vmatprep.subr.bf16.mxu1 %v5377_v42 }
 0x213   :  { %v1314_v24 = vpop.f32.mrb[28].mxu1  ;;  %4655 = vmatpush3.bf16.msra.mxu1 %v5377_v42 }
 0x214   :  { %v1316_v25 = vpop.f32.mrb[29].mxu1  ;;  %4656 = vmatprep.subr.bf16.mxu1 %v5378_v22 }
 0x215   :  { %v1317_v29 = vpop.f32.mrb[30].mxu1  ;;  %v1659_v30 = vpop.f32.mrb[140].mxu0 }
 0x216   :  { %v1840_v31 = vmax.f32 %v1314_v24, %v1659_v30  ;;  %v1319_v32 = vpop.f32.mrb[31].mxu1  ;;  %v1661_v33 = vpop.f32.mrb[141].mxu0 }
 0x217   :  { %v1662_v34 = vpop.f32.mrb[142].mxu0  ;;  %4657 = vmatpush3.bf16.msra.mxu1 %v5378_v22 }
 0x218   :  { %v1891_v35 = vmax.f32 %v1838_v16, %v1840_v31  ;;  %v1841_v36 = vmax.f32 %v1317_v29, %v1662_v34  ;;  %v1664_v37 = vpop.f32.mrb[143].mxu0  ;;  %4658 = vmatprep.subr.bf16.mxu1 %v5379_v27 }
 0x21a   :  { %v1892_v39 = vmax.f32 %v1839_v20, %v1841_v36 }
 0x21b   :  { %v1322_v40 = vpop.f32.mrb[32].mxu1  ;;  %4659 = vmatpush3.bf16.msra.mxu1 %v5379_v27 }
 0x21c   :  { %v6058_v43 = vpack.c.bf16 %v1892_v39, %v1891_v35  ;;  %v1324_v44 = vpop.f32.mrb[33].mxu1  ;;  %4660 = vmatprep.subr.bf16.mxu1 %v5380_v38 }
 0x21d   :  { %v1325_v46 = vpop.f32.mrb[34].mxu1  ;;  %v1667_v47 = vpop.f32.mrb[144].mxu0 }
 0x21e   :  { %v1842_v48 = vmax.f32 %v1322_v40, %v1667_v47  ;;  %v1327_v49 = vpop.f32.mrb[35].mxu1  ;;  %v1669_v50 = vpop.f32.mrb[145].mxu0  ;;  %4636 = vmatprep.mubr.msk.bf16.mxu1 %vm1980_vm4, %v6058_v43 }
 0x21f   :  { %v1670_v51 = vpop.f32.mrb[146].mxu0  ;;  %4661 = vmatpush3.bf16.msra.mxu1 %v5380_v38 }
 0x220   :  { %v1843_v52 = vmax.f32 %v1325_v46, %v1670_v51  ;;  %v1672_v53 = vpop.f32.mrb[147].mxu0  ;;  %5226 = vmatprep.subr.msk.bf16.mxu1 %vm2011_vm3, %v5381_v45 }
 0x223   :  { %v1330_v57 = vpop.f32.mrb[36].mxu1  ;;  %4663 = vmatpush3.bf16.msra.mxu1 %v2165_v55 }
 0x224   :  { %v1332_v58 = vpop.f32.mrb[37].mxu1  ;;  %4684 = vmatprep.subr.bf16.mxu1 %v6070_v56 }
 0x225   :  { %v1333_v59 = vpop.f32.mrb[38].mxu1  ;;  %v1675_v60 = vpop.f32.mrb[148].mxu0 }
 0x226   :  { %v1844_v61 = vmax.f32 %v1330_v57, %v1675_v60  ;;  %v1335_v62 = vpop.f32.mrb[39].mxu1  ;;  %v1677_v63 = vpop.f32.mrb[149].mxu0 }
 0x227   :  { %v1678_v0 = vpop.f32.mrb[150].mxu0 }
 0x228   :  { %v1894_v2 = vmax.f32 %v1842_v48, %v1844_v61  ;;  %v1845_v3 = vmax.f32 %v1333_v59, %v1678_v0  ;;  %v1680_v4 = vpop.f32.mrb[151].mxu0 }
 0x22a   :  { %v1895_v5 = vmax.f32 %v1843_v52, %v1845_v3 }
 0x22b   :  { %v1338_v6 = vpop.f32.mrb[40].mxu1 }
 0x22c   :  { %v6073_v7 = vpack.c.bf16 %v1895_v5, %v1894_v2  ;;  %v1340_v8 = vpop.f32.mrb[41].mxu1 }
 0x22d   :  { %v1341_v1 = vpop.f32.mrb[42].mxu1  ;;  %v1683_v9 = vpop.f32.mrb[152].mxu0 }
 0x22e   :  { %v1846_v10 = vmax.f32 %v1338_v6, %v1683_v9  ;;  %v1343_v11 = vpop.f32.mrb[43].mxu1  ;;  %v1685_v12 = vpop.f32.mrb[153].mxu0  ;;  %4637 = vmatmul.mubr.msk.bf16.gmra.mrb[116].mxu1 %vm1980_vm4, %v6073_v7 }
 0x22f   :  { %v1686_v41 = vpop.f32.mrb[154].mxu0 }
 0x230   :  { %v1847_v42 = vmax.f32 %v1341_v1, %v1686_v41  ;;  %v1688_v14 = vpop.f32.mrb[155].mxu0 }
 0x233   :  { %v1346_v15 = vpop.f32.mrb[44].mxu1 }
 0x234   :  { %v1348_v16 = vpop.f32.mrb[45].mxu1 }
 0x235   :  { %v1349_v17 = vpop.f32.mrb[46].mxu1  ;;  %v1691_v18 = vpop.f32.mrb[156].mxu0 }
 0x236   :  { %v1848_v19 = vmax.f32 %v1346_v15, %v1691_v18  ;;  %v1351_v20 = vpop.f32.mrb[47].mxu1  ;;  %v1693_v21 = vpop.f32.mrb[157].mxu0 }
 0x237   :  { %v1694_v22 = vpop.f32.mrb[158].mxu0 }
 0x238   :  { %v1897_v24 = vmax.f32 %v1846_v10, %v1848_v19  ;;  %v1849_v25 = vmax.f32 %v1349_v17, %v1694_v22  ;;  %v1696_v27 = vpop.f32.mrb[159].mxu0 }
 0x23a   :  { %v1898_v29 = vmax.f32 %v1847_v42, %v1849_v25 }
 0x23b   :  { %v1354_v30 = vpop.f32.mrb[48].mxu1 }
 0x23c   :  { %v6077_v31 = vpack.c.bf16 %v1898_v29, %v1897_v24  ;;  %v1356_v32 = vpop.f32.mrb[49].mxu1 }
 0x23d   :  { %v1357_v33 = vpop.f32.mrb[50].mxu1  ;;  %v1699_v34 = vpop.f32.mrb[160].mxu0 }
 0x23e   :  { %v1850_v35 = vmax.f32 %v1354_v30, %v1699_v34  ;;  %v1359_v36 = vpop.f32.mrb[51].mxu1  ;;  %v1701_v37 = vpop.f32.mrb[161].mxu0  ;;  %4640 = vmatprep.mubr.msk.bf16.mxu1 %vm1980_vm4, %v6077_v31 }
 0x23f   :  { %v1702_v38 = vpop.f32.mrb[162].mxu0 }
 0x240   :  { %v1851_v39 = vmax.f32 %v1357_v33, %v1702_v38  ;;  %v1704_v40 = vpop.f32.mrb[163].mxu0 }
 0x243   :  { %v1362_v44 = vpop.f32.mrb[52].mxu1 }
 0x244   :  { %v1364_v45 = vpop.f32.mrb[53].mxu1 }
 0x245   :  { %v1365_v46 = vpop.f32.mrb[54].mxu1  ;;  %v1707_v47 = vpop.f32.mrb[164].mxu0 }
 0x246   :  { %v1852_v48 = vmax.f32 %v1362_v44, %v1707_v47  ;;  %v1367_v49 = vpop.f32.mrb[55].mxu1  ;;  %v1709_v50 = vpop.f32.mrb[165].mxu0 }
 0x247   :  { %v1710_v51 = vpop.f32.mrb[166].mxu0 }
 0x248   :  { %v1900_v52 = vmax.f32 %v1850_v35, %v1852_v48  ;;  %v1853_v53 = vmax.f32 %v1365_v46, %v1710_v51  ;;  %v1712_v55 = vpop.f32.mrb[167].mxu0 }
 0x24a   :  { %v1901_v57 = vmax.f32 %v1851_v39, %v1853_v53 }
 0x24b   :  { %v1370_v58 = vpop.f32.mrb[56].mxu1 }
 0x24c   :  { %v6081_v59 = vpack.c.bf16 %v1901_v57, %v1900_v52  ;;  %v1372_v60 = vpop.f32.mrb[57].mxu1 }
 0x24d   :  { %v1373_v61 = vpop.f32.mrb[58].mxu1  ;;  %v1715_v62 = vpop.f32.mrb[168].mxu0 }
 0x24e   :  { %v1854_v63 = vmax.f32 %v1370_v58, %v1715_v62  ;;  %v1375_v0 = vpop.f32.mrb[59].mxu1  ;;  %v1717_v2 = vpop.f32.mrb[169].mxu0  ;;  %4641 = vmatmul.mubr.msk.bf16.gmra.mrb[120].mxu1 %vm1980_vm4, %v6081_v59 }
 0x24f   :  { %v1718_v3 = vpop.f32.mrb[170].mxu0 }
 0x250   :  { %v1855_v4 = vmax.f32 %v1373_v61, %v1718_v3  ;;  %v1720_v5 = vpop.f32.mrb[171].mxu0 }
 0x253   :  { %v1378_v6 = vpop.f32.mrb[60].mxu1 }
 0x254   :  { %v1380_v8 = vpop.f32.mrb[61].mxu1 }
 0x255   :  { %v1381_v1 = vpop.f32.mrb[62].mxu1  ;;  %v1723_v9 = vpop.f32.mrb[172].mxu0 }
 0x256   :  { %v1856_v10 = vmax.f32 %v1378_v6, %v1723_v9  ;;  %v1383_v11 = vpop.f32.mrb[63].mxu1  ;;  %v1725_v12 = vpop.f32.mrb[173].mxu0 }
 0x257   :  { %v1726_v41 = vpop.f32.mrb[174].mxu0 }
 0x258   :  { %v1903_v42 = vmax.f32 %v1854_v63, %v1856_v10  ;;  %v1857_v14 = vmax.f32 %v1381_v1, %v1726_v41  ;;  %v1728_v15 = vpop.f32.mrb[175].mxu0 }
 0x25a   :  { %v1904_v16 = vmax.f32 %v1855_v4, %v1857_v14 }
 0x25b   :  { %v1386_v17 = vpop.f32.mrb[64].mxu1 }
 0x25c   :  { %v6085_v18 = vpack.c.bf16 %v1904_v16, %v1903_v42  ;;  %v1388_v19 = vpop.f32.mrb[65].mxu1 }
 0x25d   :  { %v1389_v20 = vpop.f32.mrb[66].mxu1  ;;  %v1731_v21 = vpop.f32.mrb[176].mxu0 }
 0x25e   :  { %v1858_v22 = vmax.f32 %v1386_v17, %v1731_v21  ;;  %v1391_v24 = vpop.f32.mrb[67].mxu1  ;;  %v1733_v25 = vpop.f32.mrb[177].mxu0  ;;  %4644 = vmatprep.mubr.msk.bf16.mxu1 %vm1980_vm4, %v6085_v18 }
 0x25f   :  { %v1734_v27 = vpop.f32.mrb[178].mxu0 }
 0x260   :  { %v1859_v29 = vmax.f32 %v1389_v20, %v1734_v27  ;;  %v1736_v30 = vpop.f32.mrb[179].mxu0 }
 0x263   :  { %v1394_v32 = vpop.f32.mrb[68].mxu1 }
 0x264   :  { %v1396_v33 = vpop.f32.mrb[69].mxu1 }
 0x265   :  { %v1397_v34 = vpop.f32.mrb[70].mxu1  ;;  %v1739_v35 = vpop.f32.mrb[180].mxu0 }
 0x266   :  { %v1860_v36 = vmax.f32 %v1394_v32, %v1739_v35  ;;  %v1399_v37 = vpop.f32.mrb[71].mxu1  ;;  %v1741_v38 = vpop.f32.mrb[181].mxu0 }
 0x267   :  { %v1742_v39 = vpop.f32.mrb[182].mxu0 }
 0x268   :  { %v1906_v40 = vmax.f32 %v1858_v22, %v1860_v36  ;;  %v1861_v44 = vmax.f32 %v1397_v34, %v1742_v39  ;;  %v1744_v45 = vpop.f32.mrb[183].mxu0  ;;  %v5400_v36 = vld [vmem:[%s6606_s6 + $0x3c] sm:$0xff]  }
 0x269   :  { %4816 = vmatprep.subr.bf16.mxu0 %v5400_v36 }
 0x26a   :  { %v1907_v46 = vmax.f32 %v1859_v29, %v1861_v44  ;;  %4817 = vmatpush3.bf16.msra.mxu0 %v5400_v36 }
 0x26b   :  { %v1402_v47 = vpop.f32.mrb[72].mxu1 }
 0x26c   :  { %v6089_v48 = vpack.c.bf16 %v1907_v46, %v1906_v40  ;;  %v1404_v49 = vpop.f32.mrb[73].mxu1 }
 0x26d   :  { %v1405_v50 = vpop.f32.mrb[74].mxu1  ;;  %v1747_v51 = vpop.f32.mrb[184].mxu0 }
 0x26e   :  { %v1862_v52 = vmax.f32 %v1402_v47, %v1747_v51  ;;  %v1407_v53 = vpop.f32.mrb[75].mxu1  ;;  %v1749_v55 = vpop.f32.mrb[185].mxu0  ;;  %4645 = vmatmul.mubr.msk.bf16.gmra.mrb[124].mxu1 %vm1980_vm4, %v6089_v48 }
 0x26f   :  { %v1750_v57 = vpop.f32.mrb[186].mxu0 }
 0x270   :  { %v1863_v58 = vmax.f32 %v1405_v50, %v1750_v57  ;;  %v1752_v60 = vpop.f32.mrb[187].mxu0  ;;  %v5383_v57 = vld [vmem:[%s6605_s4 + $0x60] sm:$0xff]  }
 0x273   :  { %v1410_v61 = vpop.f32.mrb[76].mxu1 }
 0x274   :  { %v1412_v62 = vpop.f32.mrb[77].mxu1 }
 0x275   :  { %v1413_v63 = vpop.f32.mrb[78].mxu1  ;;  %v1755_v0 = vpop.f32.mrb[188].mxu0 }
 0x276   :  { %v1864_v2 = vmax.f32 %v1410_v61, %v1755_v0  ;;  %v1415_v3 = vpop.f32.mrb[79].mxu1  ;;  %v1757_v4 = vpop.f32.mrb[189].mxu0 }
 0x277   :  { %v1758_v5 = vpop.f32.mrb[190].mxu0 }
 0x278   :  { %v1909_v6 = vmax.f32 %v1862_v52, %v1864_v2  ;;  %v1865_v8 = vmax.f32 %v1413_v63, %v1758_v5  ;;  %v1760_v1 = vpop.f32.mrb[191].mxu0  ;;  %v5384_v2 = vld [vmem:[%s6605_s4 + $0x68] sm:$0xff]  }
 0x27a   :  { %v1910_v9 = vmax.f32 %v1863_v58, %v1865_v8 }
 0x27b   :  { %v1418_v10 = vpop.f32.mrb[80].mxu1 }
 0x27c   :  { %v6093_v11 = vpack.c.bf16 %v1910_v9, %v1909_v6  ;;  %v1420_v12 = vpop.f32.mrb[81].mxu1  ;;  %v5385_v6 = vld [vmem:[%s6605_s4 + $0x70] sm:$0xff]  }
 0x27d   :  { %v1421_v41 = vpop.f32.mrb[82].mxu1  ;;  %v1763_v42 = vpop.f32.mrb[192].mxu0 }
 0x27e   :  { %v1866_v14 = vmax.f32 %v1418_v10, %v1763_v42  ;;  %v1423_v15 = vpop.f32.mrb[83].mxu1  ;;  %v1765_v16 = vpop.f32.mrb[193].mxu0  ;;  %4648 = vmatprep.mubr.msk.bf16.mxu1 %vm1980_vm4, %v6093_v11 }
 0x27f   :  { %v1766_v17 = vpop.f32.mrb[194].mxu0 }
 0x280   :  { %v1867_v19 = vmax.f32 %v1421_v41, %v1766_v17  ;;  %v1768_v20 = vpop.f32.mrb[195].mxu0  ;;  %v5387_v17 = vld [vmem:[%s6605_s4 + $0x80] ss:$0 sps:$4 sm:$0x33]  }
 0x283   :  { %v1426_v21 = vpop.f32.mrb[84].mxu1 }
 0x284   :  { %v1428_v22 = vpop.f32.mrb[85].mxu1 }
 0x285   :  { %v1429_v24 = vpop.f32.mrb[86].mxu1  ;;  %v1771_v25 = vpop.f32.mrb[196].mxu0 }
 0x286   :  { %v1868_v27 = vmax.f32 %v1426_v21, %v1771_v25  ;;  %v1431_v29 = vpop.f32.mrb[87].mxu1  ;;  %v1773_v30 = vpop.f32.mrb[197].mxu0 }
 0x287   :  { %v1774_v32 = vpop.f32.mrb[198].mxu0 }
 0x288   :  { %v1912_v33 = vmax.f32 %v1866_v14, %v1868_v27  ;;  %v1869_v34 = vmax.f32 %v1429_v24, %v1774_v32  ;;  %v1776_v35 = vpop.f32.mrb[199].mxu0  ;;  %v5386_v14 = vld [vmem:[%s6605_s4 + $0x78] sm:$0xff]   ;;  %v5401_v27 = vld [vmem:[%s6606_s6 + $0x44] sm:$0xff]  }
 0x289   :  { %4818 = vmatprep.subr.bf16.mxu0 %v5401_v27 }
 0x28a   :  { %v1913_v37 = vmax.f32 %v1867_v19, %v1869_v34  ;;  %v5388_v34 = vld [vmem:[%s6605_s4 + $0x84] sm:$0xff]   ;;  %4819 = vmatpush3.bf16.msra.mxu0 %v5401_v27 }
 0x28b   :  { %v1434_v38 = vpop.f32.mrb[88].mxu1 }
 0x28c   :  { %v6100_v39 = vpack.c.bf16 %v1913_v37, %v1912_v33  ;;  %v1436_v40 = vpop.f32.mrb[89].mxu1  ;;  %v2329_v33 = vsel %vm2011_vm3, %v5387_v17, 0 }
 0x28d   :  { %v1437_v44 = vpop.f32.mrb[90].mxu1  ;;  %v1779_v45 = vpop.f32.mrb[200].mxu0 }
 0x28e   :  { %v1870_v46 = vmax.f32 %v1434_v38, %v1779_v45  ;;  %v1439_v47 = vpop.f32.mrb[91].mxu1  ;;  %v1781_v49 = vpop.f32.mrb[201].mxu0  ;;  %4649 = vmatmul.mubr.msk.bf16.gmra.mrb[128].mxu1 %vm1980_vm4, %v6100_v39 }
 0x28f   :  { %v1782_v50 = vpop.f32.mrb[202].mxu0  ;;  %4664 = vmatprep.mubr.msk.bf16.mxu1 %vm1980_vm4, %v1884_v28  ;;  %v5402_v49 = vld [vmem:[%s6606_s6 + $0x4c] sm:$0xff]  }
 0x290   :  { %v1871_v51 = vmax.f32 %v1437_v44, %v1782_v50  ;;  %v1784_v52 = vpop.f32.mrb[203].mxu0  ;;  %v5403_v50 = vld [vmem:[%s6606_s6 + $0x54] sm:$0xff]   ;;  %4820 = vmatprep.subr.bf16.mxu0 %v5402_v49 }
 0x291   :  { %4821 = vmatpush3.bf16.msra.mxu0 %v5402_v49 }
 0x292   :  { %4822 = vmatprep.subr.bf16.mxu0 %v5403_v50 }
 0x293   :  { %v1442_v53 = vpop.f32.mrb[92].mxu1 }
 0x294   :  { %v1444_v55 = vpop.f32.mrb[93].mxu1 }
 0x295   :  { %v1445_v58 = vpop.f32.mrb[94].mxu1  ;;  %v1787_v60 = vpop.f32.mrb[204].mxu0  ;;  %v5404_v55 = vld [vmem:[%s6606_s6 + $0x5c] sm:$0xff]   ;;  %4823 = vmatpush3.bf16.msra.mxu0 %v5403_v50 }
 0x296   :  { %v1872_v61 = vmax.f32 %v1442_v53, %v1787_v60  ;;  %v1447_v62 = vpop.f32.mrb[95].mxu1  ;;  %v1789_v63 = vpop.f32.mrb[205].mxu0  ;;  %4665 = vmatmul.mubr.msk.bf16.vlgmr.msra.gmra.mrb[112].mxu1 %vm1980_vm4, %v6038_v54  ;;  %4824 = vmatprep.subr.bf16.mxu0 %v5404_v55 }
 0x297   :  { %v1790_v0 = vpop.f32.mrb[206].mxu0  ;;  %4668 = vmatprep.mubr.msk.bf16.mxu1 %vm1980_vm4, %v6042_v13  ;;  %4685 = vmatpush3.bf16.msra.mxu1 %v6070_v56 }
 0x298   :  { %v1915_v23 = vmax.f32 %v1870_v46, %v1872_v61  ;;  %v1873_v26 = vmax.f32 %v1445_v58, %v1790_v0  ;;  %v1792_v28 = vpop.f32.mrb[207].mxu0  ;;  %4686 = vmatprep.subr.bf16.mxu1 %v5383_v57 }
 0x299   :  { %4825 = vmatpush3.bf16.msra.mxu0 %v5404_v55 }
 0x29a   :  { %v1916_v3 = vmax.f32 %v1871_v51, %v1873_v26 }
 0x29b   :  { %v1450_v4 = vpop.f32.mrb[96].mxu1  ;;  %4687 = vmatpush3.bf16.msra.mxu1 %v5383_v57 }
 0x29c   :  { %v6119_v5 = vpack.c.bf16 %v1916_v3, %v1915_v23  ;;  %v1452_v54 = vpop.f32.mrb[97].mxu1  ;;  %4688 = vmatprep.subr.bf16.mxu1 %v5384_v2  ;;  %v5405_v23 = vld [vmem:[%s6606_s6 + $0x64] sm:$0xff]  }
 0x29d   :  { %v1453_v56 = vpop.f32.mrb[98].mxu1  ;;  %v1795_v8 = vpop.f32.mrb[208].mxu0  ;;  %4826 = vmatprep.subr.bf16.mxu0 %v5405_v23  ;;  %v5406_v54 = vld [vmem:[%s6606_s6 + $0x6c] sm:$0xff]  }
 0x29e   :  { %v1874_v1 = vmax.f32 %v1450_v4, %v1795_v8  ;;  %v1455_v9 = vpop.f32.mrb[99].mxu1  ;;  %v1797_v10 = vpop.f32.mrb[209].mxu0  ;;  %4669 = vmatmul.mubr.msk.bf16.gmra.mrb[116].mxu1 %vm1980_vm4, %v6058_v43  ;;  %4827 = vmatpush3.bf16.msra.mxu0 %v5405_v23  ;;  %v5390_v8 = vld [vmem:[%s6605_s4 + $0x94] sm:$0xff]  }
 0x29f   :  { %v1798_v12 = vpop.f32.mrb[210].mxu0  ;;  %4672 = vmatprep.mubr.msk.bf16.mxu1 %vm1980_vm4, %v6073_v7  ;;  %4689 = vmatpush3.bf16.msra.mxu1 %v5384_v2  ;;  %v5391_v9 = vld [vmem:[%s6605_s4 + $0x9c] sm:$0xff]   ;;  %v5392_v10 = vld [vmem:[%s6605_s4 + $0xa4] sm:$0xff]  }
 0x2a0   :  { %v1875_v41 = vmax.f32 %v1453_v56, %v1798_v12  ;;  %v1800_v42 = vpop.f32.mrb[211].mxu0  ;;  %4690 = vmatprep.subr.bf16.mxu1 %v5385_v6  ;;  %v5389_v56 = vld [vmem:[%s6605_s4 + $0x8c] sm:$0xff]   ;;  %4828 = vmatprep.subr.bf16.mxu0 %v5406_v54 }
 0x2a1   :  { %v5393_v12 = vld [vmem:[%s6605_s4 + $0xac] ss:$0 sps:$4 sm:$0x33]   ;;  %v5394_v42 = vld [vmem:[%s6605_s4 + $0xb0] sm:$0xff]  }
 0x2a2   :  { %4829 = vmatpush3.bf16.msra.mxu0 %v5406_v54 }
 0x2a3   :  { %v1458_v15 = vpop.f32.mrb[100].mxu1  ;;  %4691 = vmatpush3.bf16.msra.mxu1 %v5385_v6 }
 0x2a4   :  { %v1460_v16 = vpop.f32.mrb[101].mxu1  ;;  %4692 = vmatprep.subr.bf16.mxu1 %v5386_v14 }
 0x2a5   :  { %v1461_v19 = vpop.f32.mrb[102].mxu1  ;;  %v1803_v20 = vpop.f32.mrb[212].mxu0  ;;  %v5398_v16 = vld [vmem:[%s6605_s4 + $0xd0] sm:$0xff]  }
 0x2a6   :  { %v1876_v21 = vmax.f32 %v1458_v15, %v1803_v20  ;;  %v1463_v22 = vpop.f32.mrb[103].mxu1  ;;  %v1805_v24 = vpop.f32.mrb[213].mxu0  ;;  %4673 = vmatmul.mubr.msk.bf16.gmra.mrb[120].mxu1 %vm1980_vm4, %v6077_v31  ;;  %v5396_v15 = vld [vmem:[%s6605_s4 + $0xc0] sm:$0xff]  }
 0x2a7   :  { %v1806_v25 = vpop.f32.mrb[214].mxu0  ;;  %4676 = vmatprep.mubr.msk.bf16.mxu1 %vm1980_vm4, %v6081_v59  ;;  %4693 = vmatpush3.bf16.msra.mxu1 %v5386_v14  ;;  %v5395_v14 = vld [vmem:[%s6605_s4 + $0xb8] sm:$0xff]   ;;  %v5407_v20 = vld [vmem:[%s6606_s6] sm:$0xff]   ;;  %v5409_v22 = vld [vmem:[%s6606_s6 + $0x10] sm:$0xff]  }
 0x2a8   :  { %v1918_v29 = vmax.f32 %v1874_v1, %v1876_v21  ;;  %v1877_v30 = vmax.f32 %v1461_v19, %v1806_v25  ;;  %v1808_v32 = vpop.f32.mrb[215].mxu0  ;;  %5227 = vmatprep.subr.msk.bf16.mxu1 %vm2011_vm3, %v5387_v17  ;;  %v5399_v17 = vld [vmem:[%s6605_s4 + $0xd8] ss:$0 sps:$4 sm:$0x33]   ;;  %v5408_v21 = vld [vmem:[%s6606_s6 + $0x8] sm:$0xff]  }
 0x2a9   :  { %v2697_v19 = vsel %vm2011_vm3, %v5399_v17, 0  ;;  %v6314_v25 = vld [vmem:[%s6608_s5] ss:$0 sm:$0xff] }
 0x2aa   :  { %v1919_v35 = vmax.f32 %v1875_v41, %v1877_v30  ;;  %v2513_v41 = vsel %vm2011_vm3, %v5393_v12, 0 }
 0x2ab   :  { %v1466_v36 = vpop.f32.mrb[104].mxu1  ;;  %4695 = vmatpush3.bf16.msra.mxu1 %v2329_v33 }
 0x2ac   :  { %v6146_v37 = vpack.c.bf16 %v1919_v35, %v1918_v29  ;;  %v1468_v38 = vpop.f32.mrb[105].mxu1  ;;  %4716 = vmatprep.subr.bf16.mxu1 %v5388_v34 }
 0x2ad   :  { %v1469_v40 = vpop.f32.mrb[106].mxu1  ;;  %v1811_v44 = vpop.f32.mrb[216].mxu0 }
 0x2ae   :  { %v1878_v45 = vmax.f32 %v1466_v36, %v1811_v44  ;;  %v1471_v46 = vpop.f32.mrb[107].mxu1  ;;  %v1813_v47 = vpop.f32.mrb[217].mxu0  ;;  %4677 = vmatmul.mubr.msk.bf16.gmra.mrb[124].mxu1 %vm1980_vm4, %v6085_v18 }
 0x2af   :  { %v1814_v51 = vpop.f32.mrb[218].mxu0  ;;  %4680 = vmatprep.mubr.msk.bf16.mxu1 %vm1980_vm4, %v6089_v48  ;;  %v3299_v46 = vld [vmem:[%s6607_s7 + $0x18] sm:$0xff] }
 0x2b0   :  { %v1879_v52 = vmax.f32 %v1469_v40, %v1814_v51  ;;  %v1816_v53 = vpop.f32.mrb[219].mxu0 }
 0x2b3   :  { %v1474_v57 = vpop.f32.mrb[108].mxu1 }
 0x2b4   :  { %v1476_v58 = vpop.f32.mrb[109].mxu1 }
 0x2b5   :  { %v1477_v60 = vpop.f32.mrb[110].mxu1  ;;  %v1819_v61 = vpop.f32.mrb[220].mxu0  ;;  %v3300_v58 = vld [vmem:[%s6607_s7 + $0x20] sm:$0xff] }
 0x2b6   :  { %v1880_v62 = vmax.f32 %v1474_v57, %v1819_v61  ;;  %v1479_v63 = vpop.f32.mrb[111].mxu1  ;;  %v1821_v0 = vpop.f32.mrb[221].mxu0  ;;  %4681 = vmatmul.mubr.msk.bf16.gmra.mrb[128].mxu1 %vm1980_vm4, %v6093_v11 }
 0x2b7   :  { %v1822_v26 = vpop.f32.mrb[222].mxu0  ;;  %4696 = vmatprep.mubr.msk.bf16.mxu1 %vm1980_vm4, %v6042_v13  ;;  %v5410_v13 = vld [vmem:[%s6606_s6 + $0x74] ss:$0 sps:$4 sm:$0xff]  }
 0x2b8   :  { %v6168_v28 = vmax.f32 %v1878_v45, %v1880_v62  ;;  %v1881_v2 = vmax.f32 %v1477_v60, %v1822_v26  ;;  %v1824_v3 = vpop.f32.mrb[223].mxu0  ;;  %5231 = vmatprep.subr.msk.bf16.mxu0 %vm1220_vm1, %v5410_v13  ;;  %v3158_v1 = vsel %vm1220_vm1, %v5410_v13, 0  ;;  %v3298_v45 = vld [vmem:[%s6607_s7 + $0x10] sm:$0xff]  ;;  %v3301_v60 = vld [vmem:[%s6607_s7 + $0x28] sm:$0xff] }
 0x2b9   :  { %4831 = vmatpush3.bf16.msra.mxu0 %v3158_v1  ;;  %v5003_v53 = vpack.c.bf16 %v3299_v46, %v3298_v45  ;;  %v5007_v26 = vpack.c.bf16 %v3301_v60, %v3300_v58  ;;  %v3302_v3 = vld [vmem:[%s6607_s7 + $0x30] sm:$0xff]  ;;  %v3788_v60 = vld [vmem:[%s6609_s9 + $0x18] sm:$0xff] }
 0x2ba   :  { %v6170_v4 = vmax.f32 %v1879_v52, %v1881_v2 }
 0x2bc   :  { %v1923_v6 = vpack.c.bf16 %v6170_v4, %v6168_v28  ;;  %v3303_v4 = vld [vmem:[%s6607_s7 + $0x38] sm:$0xf] }
 0x2bd   :  { %v5011_v1 = vpack.c.bf16 %v3303_v4, %v3302_v3  ;;  %v3794_v3 = vld [vmem:[%s6609_s9 + $0x48] sm:$0xff] }
 0x2be   :  { %4697 = vmatmul.mubr.msk.bf16.vlgmr.msra.gmra.mrb[112].mxu1 %vm1980_vm4, %v6058_v43 }
 0x2bf   :  { %4700 = vmatprep.mubr.msk.bf16.mxu1 %vm1980_vm4, %v6073_v7  ;;  %4717 = vmatpush3.bf16.msra.mxu1 %v5388_v34 }
 0x2c0   :  { %4718 = vmatprep.subr.bf16.mxu1 %v5389_v56 }
 0x2c3   :  { %4719 = vmatpush3.bf16.msra.mxu1 %v5389_v56 }
 0x2c4   :  { %4720 = vmatprep.subr.bf16.mxu1 %v5390_v8 }
 0x2c6   :  { %4701 = vmatmul.mubr.msk.bf16.gmra.mrb[116].mxu1 %vm1980_vm4, %v6077_v31 }
 0x2c7   :  { %4704 = vmatprep.mubr.msk.bf16.mxu1 %vm1980_vm4, %v6081_v59  ;;  %4721 = vmatpush3.bf16.msra.mxu1 %v5390_v8 }
 0x2c8   :  { %4722 = vmatprep.subr.bf16.mxu1 %v5391_v9 }
 0x2cb   :  { %4723 = vmatpush3.bf16.msra.mxu1 %v5391_v9 }
 0x2cc   :  { %4724 = vmatprep.subr.bf16.mxu1 %v5392_v10 }
 0x2ce   :  { %4705 = vmatmul.mubr.msk.bf16.gmra.mrb[120].mxu1 %vm1980_vm4, %v6085_v18 }
 0x2cf   :  { %4708 = vmatprep.mubr.msk.bf16.mxu1 %vm1980_vm4, %v6089_v48  ;;  %4725 = vmatpush3.bf16.msra.mxu1 %v5392_v10 }
 0x2d0   :  { %5228 = vmatprep.subr.msk.bf16.mxu1 %vm2011_vm3, %v5393_v12 }
 0x2d3   :  { %4727 = vmatpush3.bf16.msra.mxu1 %v2513_v41 }
 0x2d4   :  { %4748 = vmatprep.subr.bf16.mxu1 %v5394_v42 }
 0x2d6   :  { %4709 = vmatmul.mubr.msk.bf16.gmra.mrb[124].mxu1 %vm1980_vm4, %v6093_v11 }
 0x2d7   :  { %4712 = vmatprep.mubr.msk.bf16.mxu1 %vm1980_vm4, %v6100_v39 }
 0x2de   :  { %4713 = vmatmul.mubr.msk.bf16.gmra.mrb[128].mxu1 %vm1980_vm4, %v6119_v5 }
 0x2df   :  { %4728 = vmatprep.mubr.msk.bf16.mxu1 %vm1980_vm4, %v6058_v43  ;;  %v5397_v43 = vld [vmem:[%s6605_s4 + $0xc8] sm:$0xff]  }
 0x2e6   :  { %4729 = vmatmul.mubr.msk.bf16.vlgmr.msra.gmra.mrb[112].mxu1 %vm1980_vm4, %v6073_v7 }
 0x2e7   :  { %4732 = vmatprep.mubr.msk.bf16.mxu1 %vm1980_vm4, %v6077_v31  ;;  %4749 = vmatpush3.bf16.msra.mxu1 %v5394_v42 }
 0x2e8   :  { %4750 = vmatprep.subr.bf16.mxu1 %v5395_v14 }
 0x2eb   :  { %4751 = vmatpush3.bf16.msra.mxu1 %v5395_v14 }
 0x2ec   :  { %4752 = vmatprep.subr.bf16.mxu1 %v5396_v15 }
 0x2ee   :  { %4733 = vmatmul.mubr.msk.bf16.gmra.mrb[116].mxu1 %vm1980_vm4, %v6081_v59 }
 0x2ef   :  { %4736 = vmatprep.mubr.msk.bf16.mxu1 %vm1980_vm4, %v6085_v18  ;;  %4753 = vmatpush3.bf16.msra.mxu1 %v5396_v15 }
 0x2f0   :  { %4754 = vmatprep.subr.bf16.mxu1 %v5397_v43 }
 0x2f3   :  { %4755 = vmatpush3.bf16.msra.mxu1 %v5397_v43 }
 0x2f4   :  { %4756 = vmatprep.subr.bf16.mxu1 %v5398_v16 }
 0x2f6   :  { %4737 = vmatmul.mubr.msk.bf16.gmra.mrb[120].mxu1 %vm1980_vm4, %v6089_v48 }
 0x2f7   :  { %4740 = vmatprep.mubr.msk.bf16.mxu1 %vm1980_vm4, %v6093_v11  ;;  %4757 = vmatpush3.bf16.msra.mxu1 %v5398_v16 }
 0x2f8   :  { %5229 = vmatprep.subr.msk.bf16.mxu1 %vm2011_vm3, %v5399_v17 }
 0x2fb   :  { %4759 = vmatpush3.bf16.msra.mxu1 %v2697_v19 }
 0x2fc   :  { %4780 = vmatprep.subr.bf16.mxu1 %v5407_v20 }
 0x2fe   :  { %4741 = vmatmul.mubr.msk.bf16.gmra.mrb[124].mxu1 %vm1980_vm4, %v6100_v39 }
 0x2ff   :  { %4744 = vmatprep.mubr.msk.bf16.mxu1 %vm1980_vm4, %v6119_v5 }
 0x306   :  { %4745 = vmatmul.mubr.msk.bf16.gmra.mrb[128].mxu1 %vm1980_vm4, %v6146_v37 }
 0x307   :  { %4760 = vmatprep.mubr.msk.bf16.mxu1 %vm1980_vm4, %v6073_v7  ;;  %v5411_v7 = vld [vmem:[%s6606_s6 + $0x18] sm:$0xff]  }
 0x30e   :  { %4761 = vmatmul.mubr.msk.bf16.vlgmr.msra.gmra.mrb[112].mxu1 %vm1980_vm4, %v6077_v31  ;;  %v5412_v31 = vld [vmem:[%s6606_s6 + $0x20] sm:$0xff]  }
 0x30f   :  { %4764 = vmatprep.mubr.msk.bf16.mxu1 %vm1980_vm4, %v6081_v59  ;;  %4781 = vmatpush3.bf16.msra.mxu1 %v5407_v20  ;;  %v5413_v59 = vld [vmem:[%s6606_s6 + $0x28] sm:$0xff]  }
 0x310   :  { %4782 = vmatprep.subr.bf16.mxu1 %v5408_v21 }
 0x313   :  { %4783 = vmatpush3.bf16.msra.mxu1 %v5408_v21 }
 0x314   :  { %4784 = vmatprep.subr.bf16.mxu1 %v5409_v22 }
 0x316   :  { %4765 = vmatmul.mubr.msk.bf16.gmra.mrb[116].mxu1 %vm1980_vm4, %v6085_v18  ;;  %v5414_v18 = vld [vmem:[%s6606_s6 + $0x30] sm:$0xff]  }
 0x317   :  { %4768 = vmatprep.mubr.msk.bf16.mxu1 %vm1980_vm4, %v6089_v48  ;;  %4785 = vmatpush3.bf16.msra.mxu1 %v5409_v22  ;;  %v5415_v48 = vld [vmem:[%s6606_s6 + $0x38] ss:$0 sps:$4 sm:$0xff]  }
 0x318   :  { %4786 = vmatprep.subr.bf16.mxu1 %v5411_v7 }
 0x31b   :  { %4787 = vmatpush3.bf16.msra.mxu1 %v5411_v7 }
 0x31c   :  { %4788 = vmatprep.subr.bf16.mxu1 %v5412_v31 }
 0x31e   :  { %4769 = vmatmul.mubr.msk.bf16.gmra.mrb[120].mxu1 %vm1980_vm4, %v6093_v11  ;;  %v2981_v11 = vsel %vm1220_vm1, %v5415_v48, 0 }
 0x31f   :  { %4772 = vmatprep.mubr.msk.bf16.mxu1 %vm1980_vm4, %v6100_v39  ;;  %4789 = vmatpush3.bf16.msra.mxu1 %v5412_v31  ;;  %v3296_v39 = vld [vmem:[%s6607_s7] sm:$0xff] }
 0x320   :  { %4790 = vmatprep.subr.bf16.mxu1 %v5413_v59 }
 0x323   :  { %4791 = vmatpush3.bf16.msra.mxu1 %v5413_v59 }
 0x324   :  { %4792 = vmatprep.subr.bf16.mxu1 %v5414_v18 }
 0x326   :  { %4773 = vmatmul.mubr.msk.bf16.gmra.mrb[124].mxu1 %vm1980_vm4, %v6119_v5  ;;  %v3297_v5 = vld [vmem:[%s6607_s7 + $0x8] sm:$0xff] }
 0x327   :  { %4776 = vmatprep.mubr.msk.bf16.mxu1 %vm1980_vm4, %v6146_v37  ;;  %4793 = vmatpush3.bf16.msra.mxu1 %v5414_v18  ;;  %v4999_v24 = vpack.c.bf16 %v3297_v5, %v3296_v39 }
 0x328   :  { %5230 = vmatprep.subr.msk.bf16.mxu1 %vm1220_vm1, %v5415_v48 }
 0x32b   :  { %4795 = vmatpush3.bf16.msra.mxu1 %v2981_v11 }
 0x32c   :  { %5000 = vmatprep.subr.bf16.mxu1 %v4999_v24 }
 0x32e   :  { %4777 = vmatmul.mubr.msk.bf16.gmra.mrb[128].mxu1 %vm1980_vm4, %v1923_v6 }
 0x3e1   :  { %v4762_v27 = vpop.f32.mrb[112].mxu1 }
 0x3e2   :  { %v2841_v29 = vadd.f32 %v4762_v27, %v6314_v25  ;;  %v2733_v30 = vpop.f32.mrb[113].mxu1 }
 0x3e3   :  { %v2839_v32 = vadd.f32 %v6314_v25, %v2733_v30  ;;  %v4763_v33 = vpop.f32.mrb[114].mxu1 }
 0x3e4   :  { %v2842_v34 = vadd.f32 %v4763_v33, %v6314_v25  ;;  %v2736_v35 = vpop.f32.mrb[115].mxu1  ;;  %v2861_v37 = vmax.f32 %v2841_v29, 0.0 }
 0x3e5   :  { %v2840_v36 = vadd.f32 %v6314_v25, %v2736_v35  ;;  %v2859_v40 = vmax.f32 %v2839_v32, 0.0 }
 0x3e6   :  { %v2862_v38 = vmax.f32 %v2842_v34, 0.0 }
 0x3e7   :  { %v2860_v44 = vmax.f32 %v2840_v36, 0.0 }
 0x3e8   :  { %v2880_v47 = vpack.c.bf16 %v2862_v38, %v2861_v37 }
 0x3e9   :  { %v2879_v49 = vpack.c.bf16 %v2860_v44, %v2859_v40  ;;  %v4766_v50 = vpop.f32.mrb[116].mxu1 }
 0x3ea   :  { %v2845_v51 = vadd.f32 %v4766_v50, %v6314_v25  ;;  %v2749_v52 = vpop.f32.mrb[117].mxu1 }
 0x3eb   :  { %v2843_v55 = vadd.f32 %v6314_v25, %v2749_v52  ;;  %v4767_v57 = vpop.f32.mrb[118].mxu1  ;;  %4796 = vmatprep.mubr.msk.bf16.mxu1 %vm2949_vm5, %v2879_v49  ;;  %4832 = vmatprep.mubr.msk.bf16.mxu0 %vm2949_vm5, %v2879_v49 }
 0x3ec   :  { %v2846_v61 = vadd.f32 %v4767_v57, %v6314_v25  ;;  %v2752_v62 = vpop.f32.mrb[119].mxu1  ;;  %4797 = vmatmul.mubr.msk.bf16.vlgmr.msra.gmra.mrb[132].mxu1 %vm2949_vm5, %v2880_v47  ;;  %4833 = vmatmul.mubr.msk.bf16.vlgmr.msra.gmra.mrb[224].mxu0 %vm2949_vm5, %v2880_v47  ;;  %v2865_v0 = vmax.f32 %v2845_v51, 0.0  ;;  %v4376_v51 = vld [vmem:[%s6607_s7 + $0x40] sm:$0xff]  ;;  %v3787_v57 = vld [vmem:[%s6609_s9 + $0x10] sm:$0xff] }
 0x3ed   :  { %v2844_v63 = vadd.f32 %v6314_v25, %v2752_v62  ;;  %5002 = vmatpush3.bf16.msra.mxu1 %v4999_v24  ;;  %v2863_v28 = vmax.f32 %v2843_v55, 0.0  ;;  %v3786_v55 = vld [vmem:[%s6609_s9 + $0x8] sm:$0xff]  ;;  %v3789_v62 = vld [vmem:[%s6609_s9 + $0x20] sm:$0xff] }
 0x3ee   :  { %v2866_v23 = vmax.f32 %v2846_v61, 0.0  ;;  %5004 = vmatprep.subr.bf16.mxu1 %v5003_v53  ;;  %v5093_v61 = vpack.c.bf16 %v3788_v60, %v3787_v57 }
 0x3ef   :  { %v2864_v2 = vmax.f32 %v2844_v63, 0.0  ;;  %v3790_v63 = vld [vmem:[%s6609_s9 + $0x28] sm:$0xff] }
 0x3f0   :  { %v2882_v54 = vpack.c.bf16 %v2866_v23, %v2865_v0  ;;  %v5097_v0 = vpack.c.bf16 %v3790_v63, %v3789_v62  ;;  %v3791_v23 = vld [vmem:[%s6609_s9 + $0x30] sm:$0xff] }
 0x3f1   :  { %v2881_v6 = vpack.c.bf16 %v2864_v2, %v2863_v28  ;;  %v4770_v56 = vpop.f32.mrb[120].mxu1  ;;  %5006 = vmatpush3.bf16.msra.mxu1 %v5003_v53  ;;  %v3785_v53 = vld [vmem:[%s6609_s9] sm:$0xff] }
 0x3f2   :  { %v2849_v13 = vadd.f32 %v4770_v56, %v6314_v25  ;;  %v2765_v8 = vpop.f32.mrb[121].mxu1  ;;  %5008 = vmatprep.subr.bf16.mxu1 %v5007_v26  ;;  %v5089_v58 = vpack.c.bf16 %v3786_v55, %v3785_v53  ;;  %v3793_v2 = vld [vmem:[%s6609_s9 + $0x40] sm:$0xff] }
 0x3f3   :  { %v2847_v10 = vadd.f32 %v6314_v25, %v2765_v8  ;;  %v4771_v12 = vpop.f32.mrb[122].mxu1  ;;  %4800 = vmatprep.mubr.msk.bf16.mxu1 %vm2949_vm5, %v2881_v6  ;;  %4836 = vmatprep.mubr.msk.bf16.mxu0 %vm2949_vm5, %v2881_v6  ;;  %v5105_v4 = vpack.c.bf16 %v3794_v3, %v3793_v2  ;;  %v3796_v6 = vld [vmem:[%s6609_s9 + $0x58] sm:$0xff]  ;;  %v3798_v8 = vld [vmem:[%s6609_s9 + $0x68] sm:$0xff] }
 0x3f4   :  { %v2850_v41 = vadd.f32 %v4771_v12, %v6314_v25  ;;  %v2768_v42 = vpop.f32.mrb[123].mxu1  ;;  %4801 = vmatmul.mubr.msk.bf16.gmra.mrb[136].mxu1 %vm2949_vm5, %v2882_v54  ;;  %4837 = vmatmul.mubr.msk.bf16.gmra.mrb[228].mxu0 %vm2949_vm5, %v2882_v54  ;;  %v2869_v15 = vmax.f32 %v2849_v13, 0.0  ;;  %v3795_v54 = vld [vmem:[%s6609_s9 + $0x50] sm:$0xff]  ;;  %v3797_v13 = vld [vmem:[%s6609_s9 + $0x60] sm:$0xff] }
 0x3f5   :  { %v2848_v14 = vadd.f32 %v6314_v25, %v2768_v42  ;;  %5010 = vmatpush3.bf16.msra.mxu1 %v5007_v26  ;;  %v2867_v16 = vmax.f32 %v2847_v10, 0.0  ;;  %5090 = vmatprep.subr.bf16.mxu0 %v5089_v58  ;;  %v3792_v26 = vld [vmem:[%s6609_s9 + $0x38] sm:$0xff]  ;;  %v5109_v56 = vpack.c.bf16 %v3796_v6, %v3795_v54  ;;  %v4391_v54 = vld [vmem:[%s6607_s7 + $0xa0] sm:$0xff]  ;;  %v4392_v6 = vld [vmem:[%s6607_s7 + $0xa8] sm:$0xff] }
 0x3f6   :  { %v2870_v43 = vmax.f32 %v2850_v41, 0.0  ;;  %5013 = vmatprep.subr.msk.bf16.mxu1 %vm6348_vm7, %v5011_v1  ;;  %5092 = vmatpush3.bf16.msra.mxu0 %v5089_v58  ;;  %v5101_v28 = vpack.c.bf16 %v3792_v26, %v3791_v23  ;;  %v4389_v23 = vld [vmem:[%s6607_s7 + $0x90] sm:$0xff]  ;;  %v4390_v26 = vld [vmem:[%s6607_s7 + $0x98] sm:$0xff] }
 0x3f7   :  { %v2868_v17 = vmax.f32 %v2848_v14, 0.0  ;;  %5094 = vmatprep.subr.bf16.mxu0 %v5093_v61 }
 0x3f8   :  { %v2884_v19 = vpack.c.bf16 %v2870_v43, %v2869_v15 }
 0x3f9   :  { %v2883_v20 = vpack.c.bf16 %v2868_v17, %v2867_v16  ;;  %v4774_v21 = vpop.f32.mrb[124].mxu1  ;;  %5016 = vmatpush3.bf16.msk.msra.mxu1 %vm6348_vm7, %v5011_v1  ;;  %v5113_v1 = vpack.c.bf16 %v3798_v8, %v3797_v13 }
 0x3fa   :  { %v2853_v22 = vadd.f32 %v4774_v21, %v6314_v25  ;;  %v2781_v7 = vpop.f32.mrb[125].mxu1  ;;  %5096 = vmatpush3.bf16.msra.mxu0 %v5093_v61  ;;  %v4378_v21 = vld [vmem:[%s6607_s7 + $0x50] sm:$0xff] }
 0x3fb   :  { %v2851_v31 = vadd.f32 %v6314_v25, %v2781_v7  ;;  %v4775_v59 = vpop.f32.mrb[126].mxu1  ;;  %4804 = vmatprep.mubr.msk.bf16.mxu1 %vm2949_vm5, %v2883_v20  ;;  %4840 = vmatprep.mubr.msk.bf16.mxu0 %vm2949_vm5, %v2883_v20 }
 0x3fc   :  { %v2854_v18 = vadd.f32 %v4775_v59, %v6314_v25  ;;  %v2784_v48 = vpop.f32.mrb[127].mxu1  ;;  %4805 = vmatmul.mubr.msk.bf16.gmra.mrb[140].mxu1 %vm2949_vm5, %v2884_v19  ;;  %4841 = vmatmul.mubr.msk.bf16.gmra.mrb[232].mxu0 %vm2949_vm5, %v2884_v19  ;;  %v2873_v39 = vmax.f32 %v2853_v22, 0.0  ;;  %v4379_v22 = vld [vmem:[%s6607_s7 + $0x58] sm:$0xff] }
 0x3fd   :  { %v2852_v11 = vadd.f32 %v6314_v25, %v2784_v48  ;;  %v2871_v24 = vmax.f32 %v2851_v31, 0.0  ;;  %5098 = vmatprep.subr.bf16.mxu0 %v5097_v0  ;;  %v4380_v48 = vld [vmem:[%s6607_s7 + $0x60] sm:$0xff] }
 0x3fe   :  { %v2874_v5 = vmax.f32 %v2854_v18, 0.0  ;;  %5100 = vmatpush3.bf16.msra.mxu0 %v5097_v0  ;;  %v5021_v18 = vpack.c.bf16 %v4379_v22, %v4378_v21 }
 0x3ff   :  { %v2872_v27 = vmax.f32 %v2852_v11, 0.0  ;;  %5102 = vmatprep.subr.bf16.mxu0 %v5101_v28  ;;  %v4381_v11 = vld [vmem:[%s6607_s7 + $0x68] sm:$0xff] }
 0x400   :  { %v2886_v29 = vpack.c.bf16 %v2874_v5, %v2873_v39 }
 0x401   :  { %v2885_v30 = vpack.c.bf16 %v2872_v27, %v2871_v24  ;;  %v4778_v32 = vpop.f32.mrb[128].mxu1 }
 0x402   :  { %v2857_v33 = vadd.f32 %v4778_v32, %v6314_v25  ;;  %v2797_v34 = vpop.f32.mrb[129].mxu1  ;;  %5104 = vmatpush3.bf16.msra.mxu0 %v5101_v28 }
 0x403   :  { %v2855_v35 = vadd.f32 %v6314_v25, %v2797_v34  ;;  %v4779_v36 = vpop.f32.mrb[130].mxu1  ;;  %4808 = vmatprep.mubr.msk.bf16.mxu1 %vm2949_vm5, %v2885_v30  ;;  %4844 = vmatprep.mubr.msk.bf16.mxu0 %vm2949_vm5, %v2885_v30  ;;  %v5025_v34 = vpack.c.bf16 %v4381_v11, %v4380_v48 }
 0x404   :  { %v2858_v37 = vadd.f32 %v4779_v36, %v6314_v25  ;;  %v2800_v38 = vpop.f32.mrb[131].mxu1  ;;  %4809 = vmatmul.mubr.msk.bf16.gmra.mrb[144].mxu1 %vm2949_vm5, %v2886_v29  ;;  %4845 = vmatmul.mubr.msk.bf16.gmra.mrb[236].mxu0 %vm2949_vm5, %v2886_v29  ;;  %v2877_v44 = vmax.f32 %v2857_v33, 0.0 }
 0x405   :  { %v2856_v40 = vadd.f32 %v6314_v25, %v2800_v38  ;;  %v2875_v46 = vmax.f32 %v2855_v35, 0.0  ;;  %v4377_v25 = vld [vmem:[%s6607_s7 + $0x48] sm:$0xff]  ;;  %5106 = vmatprep.subr.bf16.mxu0 %v5105_v4  ;;  %v4382_v38 = vld [vmem:[%s6607_s7 + $0x70] sm:$0xff] }
 0x406   :  { %v2878_v45 = vmax.f32 %v2858_v37, 0.0  ;;  %v6389_v52 = vpack.c.bf16 %v4377_v25, %v4376_v51  ;;  %5108 = vmatpush3.bf16.msra.mxu0 %v5105_v4  ;;  %v5039_v4 = vpack.c.bf16 %v4390_v26, %v4389_v23  ;;  %v3799_v26 = vld [vmem:[%s6609_s9 + $0x70] sm:$0xff] }
 0x407   :  { %v2876_v47 = vmax.f32 %v2856_v40, 0.0  ;;  %5110 = vmatprep.subr.bf16.mxu0 %v5109_v56  ;;  %v4383_v40 = vld [vmem:[%s6607_s7 + $0x78] sm:$0xf] }
 0x408   :  { %v2888_v49 = vpack.c.bf16 %v2878_v45, %v2877_v44  ;;  %5018 = vmatprep.subr.bf16.mxu1 %v6389_v52 }
 0x409   :  { %v2887_v50 = vpack.c.bf16 %v2876_v47, %v2875_v46  ;;  %v5029_v47 = vpack.c.bf16 %v4383_v40, %v4382_v38 }
 0x40a   :  { %5112 = vmatpush3.bf16.msra.mxu0 %v5109_v56 }
 0x40b   :  { %4812 = vmatprep.mubr.msk.bf16.mxu1 %vm2949_vm5, %v2887_v50  ;;  %4848 = vmatprep.mubr.msk.bf16.mxu0 %vm2949_vm5, %v2887_v50  ;;  %v4388_v50 = vld [vmem:[%s6607_s7 + $0x88] sm:$0xff] }
 0x40c   :  { %4813 = vmatmul.mubr.msk.bf16.gmra.mrb[148].mxu1 %vm2949_vm5, %v2888_v49  ;;  %4849 = vmatmul.mubr.msk.bf16.gmra.mrb[240].mxu0 %vm2949_vm5, %v2888_v49  ;;  %v4387_v49 = vld [vmem:[%s6607_s7 + $0x80] sm:$0xff] }
 0x40d   :  { %5114 = vmatprep.subr.bf16.mxu0 %v5113_v1  ;;  %v5035_v61 = vpack.c.bf16 %v4388_v50, %v4387_v49  ;;  %v4404_v49 = vld [vmem:[%s6607_s7 + $0xf0] sm:$0xff]  ;;  %v4405_v50 = vld [vmem:[%s6607_s7 + $0xf8] sm:$0xf] }
 0x40e   :  { %5116 = vmatpush3.bf16.msra.mxu0 %v5113_v1 }
 0x40f   :  { %4975 = vmatprep.subr.mxu0 %v3799_v26 }
 0x412   :  { %4976 = vmatpush3.msra.mxu0 %v3799_v26 }
 0x4bf   :  { %v4798_v10 = vpop.f32.mrb[132].mxu1  ;;  %v4834_v12 = vpop.f32.mrb[224].mxu0 }
 0x4c0   :  { %v3275_v41 = vmax.f32 %v4798_v10, %v4834_v12  ;;  %v3017_v42 = vpop.f32.mrb[133].mxu1  ;;  %v3194_v14 = vpop.f32.mrb[225].mxu0 }
 0x4c1   :  { %v3273_v15 = vmax.f32 %v3017_v42, %v3194_v14  ;;  %v4799_v43 = vpop.f32.mrb[134].mxu1  ;;  %v4835_v16 = vpop.f32.mrb[226].mxu0  ;;  %v5043_v14 = vpack.c.bf16 %v4392_v6, %v4391_v54  ;;  %v3890_v6 = vld [vmem:[%s6610_s11 + $0x10] sm:$0xff] }
 0x4c2   :  { %v3276_v17 = vmax.f32 %v4799_v43, %v4835_v16  ;;  %v3020_v19 = vpop.f32.mrb[135].mxu1  ;;  %v3197_v20 = vpop.f32.mrb[227].mxu0 }
 0x4c3   :  { %v3294_v7 = vmax.f32 %v3273_v15, %v3275_v41  ;;  %v3274_v31 = vmax.f32 %v3020_v19, %v3197_v20  ;;  %v4394_v19 = vld [vmem:[%s6607_s7 + $0xb8] sm:$0xf] }
 0x4c5   :  { %v3295_v59 = vmax.f32 %v3274_v31, %v3276_v17  ;;  %4868 = vmatprep.mubr.msk.f32.mxu1 %vm3304_vm8, %v3294_v7  ;;  %v4393_v17 = vld [vmem:[%s6607_s7 + $0xb0] sm:$0xff]  ;;  %v4398_v31 = vld [vmem:[%s6607_s7 + $0xc0] sm:$0xff] }
 0x4c6   :  { %v5047_v7 = vpack.c.bf16 %v4394_v19, %v4393_v17 }
 0x4c7   :  { %v4802_v39 = vpop.f32.mrb[136].mxu1  ;;  %v4838_v5 = vpop.f32.mrb[228].mxu0  ;;  %4869 = vmatmul.mubr.msk.f32.vlgmr.msra.gmra.mrb[152].mxu1 %vm3304_vm8, %v3295_v59  ;;  %v4399_v59 = vld [vmem:[%s6607_s7 + $0xc8] sm:$0xff] }
 0x4c8   :  { %v3279_v24 = vmax.f32 %v4802_v39, %v4838_v5  ;;  %5020 = vmatpush3.bf16.msra.mxu1 %v6389_v52  ;;  %v3033_v27 = vpop.f32.mrb[137].mxu1  ;;  %v3210_v29 = vpop.f32.mrb[229].mxu0 }
 0x4c9   :  { %v3277_v30 = vmax.f32 %v3033_v27, %v3210_v29  ;;  %v4803_v32 = vpop.f32.mrb[138].mxu1  ;;  %v4839_v33 = vpop.f32.mrb[230].mxu0  ;;  %5022 = vmatprep.subr.bf16.mxu1 %v5021_v18 }
 0x4ca   :  { %v3280_v35 = vmax.f32 %v4803_v32, %v4839_v33  ;;  %v3036_v36 = vpop.f32.mrb[139].mxu1  ;;  %v3213_v37 = vpop.f32.mrb[231].mxu0 }
 0x4cb   :  { %v3397_v44 = vmax.f32 %v3277_v30, %v3279_v24  ;;  %v3278_v45 = vmax.f32 %v3036_v36, %v3213_v37  ;;  %v5053_v30 = vpack.c.bf16 %v4399_v59, %v4398_v31  ;;  %v4401_v36 = vld [vmem:[%s6607_s7 + $0xd8] sm:$0xff] }
 0x4cc   :  { %5024 = vmatpush3.bf16.msra.mxu1 %v5021_v18 }
 0x4cd   :  { %v3398_v46 = vmax.f32 %v3278_v45, %v3280_v35  ;;  %4887 = vmatprep.mubr.msk.f32.mxu1 %vm3304_vm8, %v3397_v44  ;;  %5026 = vmatprep.subr.bf16.mxu1 %v5025_v34  ;;  %v4400_v35 = vld [vmem:[%s6607_s7 + $0xd0] sm:$0xff]  ;;  %v4402_v45 = vld [vmem:[%s6607_s7 + $0xe0] sm:$0xff] }
 0x4ce   :  { %v5057_v44 = vpack.c.bf16 %v4401_v36, %v4400_v35 }
 0x4cf   :  { %v4806_v51 = vpop.f32.mrb[140].mxu1  ;;  %v4842_v25 = vpop.f32.mrb[232].mxu0 }
 0x4d0   :  { %v3283_v52 = vmax.f32 %v4806_v51, %v4842_v25  ;;  %5028 = vmatpush3.bf16.msra.mxu1 %v5025_v34  ;;  %v3049_v53 = vpop.f32.mrb[141].mxu1  ;;  %v3226_v55 = vpop.f32.mrb[233].mxu0  ;;  %v5065_v51 = vpack.c.bf16 %v4405_v50, %v4404_v49  ;;  %v4409_v25 = vld [vmem:[%s6607_s7 + $0x100] sm:$0xff] }
 0x4d1   :  { %v3281_v57 = vmax.f32 %v3049_v53, %v3226_v55  ;;  %v4807_v58 = vpop.f32.mrb[142].mxu1  ;;  %v4843_v60 = vpop.f32.mrb[234].mxu0  ;;  %5031 = vmatprep.subr.msk.bf16.mxu1 %vm6348_vm7, %v5029_v47  ;;  %v4411_v55 = vld [vmem:[%s6607_s7 + $0x110] sm:$0xff] }
 0x4d2   :  { %v3284_v62 = vmax.f32 %v4807_v58, %v4843_v60  ;;  %v3052_v63 = vpop.f32.mrb[143].mxu1  ;;  %v3229_v0 = vpop.f32.mrb[235].mxu0  ;;  %v4413_v60 = vld [vmem:[%s6607_s7 + $0x120] sm:$0xff] }
 0x4d3   :  { %v3494_v28 = vmax.f32 %v3281_v57, %v3283_v52  ;;  %v3282_v2 = vmax.f32 %v3052_v63, %v3229_v0  ;;  %v4410_v52 = vld [vmem:[%s6607_s7 + $0x108] sm:$0xff]  ;;  %v4412_v57 = vld [vmem:[%s6607_s7 + $0x118] sm:$0xff]  ;;  %v4415_v63 = vld [vmem:[%s6607_s7 + $0x130] sm:$0xff] }
 0x4d4   :  { %5034 = vmatpush3.bf16.msk.msra.mxu1 %vm6348_vm7, %v5029_v47  ;;  %v5071_v53 = vpack.c.bf16 %v4410_v52, %v4409_v25  ;;  %v5075_v58 = vpack.c.bf16 %v4412_v57, %v4411_v55  ;;  %v4416_v0 = vld [vmem:[%s6607_s7 + $0x138] sm:$0xf] }
 0x4d5   :  { %v3495_v3 = vmax.f32 %v3282_v2, %v3284_v62  ;;  %5036 = vmatprep.subr.bf16.mxu1 %v5035_v61  ;;  %v5083_v23 = vpack.c.bf16 %v4416_v0, %v4415_v63  ;;  %v3889_v2 = vld [vmem:[%s6610_s11 + $0x8] sm:$0xff] }
 0x4d7   :  { %4888 = vmatmul.mubr.msk.f32.vlgmr.msra.gmra.mrb[152].mxu1 %vm3304_vm8, %v3398_v46  ;;  %v4810_v56 = vpop.f32.mrb[144].mxu1  ;;  %v4846_v13 = vpop.f32.mrb[236].mxu0  ;;  %v4403_v46 = vld [vmem:[%s6607_s7 + $0xe8] sm:$0xff] }
 0x4d8   :  { %v3287_v8 = vmax.f32 %v4810_v56, %v4846_v13  ;;  %5038 = vmatpush3.bf16.msra.mxu1 %v5035_v61  ;;  %4906 = vmatprep.mubr.msk.f32.mxu1 %vm3304_vm8, %v3494_v28  ;;  %v3065_v1 = vpop.f32.mrb[145].mxu1  ;;  %v3242_v10 = vpop.f32.mrb[237].mxu0  ;;  %v5061_v47 = vpack.c.bf16 %v4403_v46, %v4402_v45  ;;  %v4414_v61 = vld [vmem:[%s6607_s7 + $0x128] sm:$0xff]  ;;  %v3888_v28 = vld [vmem:[%s6610_s11] sm:$0xff]  ;;  %v3891_v56 = vld [vmem:[%s6610_s11 + $0x18] sm:$0xff] }
 0x4d9   :  { %v3285_v12 = vmax.f32 %v3065_v1, %v3242_v10  ;;  %v4811_v41 = vpop.f32.mrb[146].mxu1  ;;  %v4847_v42 = vpop.f32.mrb[238].mxu0  ;;  %5040 = vmatprep.subr.bf16.mxu1 %v5039_v4  ;;  %v5079_v62 = vpack.c.bf16 %v4414_v61, %v4413_v60  ;;  %v5121_v10 = vpack.c.bf16 %v3891_v56, %v3890_v6 }
 0x4da   :  { %v3288_v15 = vmax.f32 %v4811_v41, %v4847_v42  ;;  %v3068_v43 = vpop.f32.mrb[147].mxu1  ;;  %v3245_v16 = vpop.f32.mrb[239].mxu0  ;;  %v3893_v41 = vld [vmem:[%s6610_s11 + $0x28] sm:$0xff] }
 0x4db   :  { %v3591_v20 = vmax.f32 %v3285_v12, %v3287_v8  ;;  %v3286_v21 = vmax.f32 %v3068_v43, %v3245_v16  ;;  %v3892_v12 = vld [vmem:[%s6610_s11 + $0x20] sm:$0xff] }
 0x4dc   :  { %5042 = vmatpush3.bf16.msra.mxu1 %v5039_v4  ;;  %v4375_v4 = vld [vmem:[%s6611_s8] ss:$0 sm:$0xff]  ;;  %v5125_v42 = vpack.c.bf16 %v3893_v41, %v3892_v12 }
 0x4dd   :  { %v3592_v22 = vmax.f32 %v3286_v21, %v3288_v15  ;;  %5044 = vmatprep.subr.bf16.mxu1 %v5043_v14  ;;  %v3895_v15 = vld [vmem:[%s6610_s11 + $0x38] sm:$0xf]  ;;  %v4420_v16 = vld [vmem:[%s6612_s10] ss:$0 sm:$0xff] }
 0x4df   :  { %v4814_v18 = vpop.f32.mrb[148].mxu1  ;;  %v4850_v48 = vpop.f32.mrb[240].mxu0 }
 0x4e0   :  { %v3291_v11 = vmax.f32 %v4814_v18, %v4850_v48  ;;  %5046 = vmatpush3.bf16.msra.mxu1 %v5043_v14  ;;  %v3081_v39 = vpop.f32.mrb[149].mxu1  ;;  %v3258_v5 = vpop.f32.mrb[241].mxu0  ;;  %v3894_v14 = vld [vmem:[%s6610_s11 + $0x30] sm:$0xff] }
 0x4e1   :  { %v3289_v24 = vmax.f32 %v3081_v39, %v3258_v5  ;;  %v4815_v27 = vpop.f32.mrb[150].mxu1  ;;  %v4851_v29 = vpop.f32.mrb[242].mxu0  ;;  %5049 = vmatprep.subr.msk.bf16.mxu1 %vm6348_vm7, %v5047_v7  ;;  %v5129_v43 = vpack.c.bf16 %v3895_v15, %v3894_v14 }
 0x4e2   :  { %v3292_v32 = vmax.f32 %v4815_v27, %v4851_v29  ;;  %v3084_v33 = vpop.f32.mrb[151].mxu1  ;;  %v3261_v34 = vpop.f32.mrb[243].mxu0 }
 0x4e3   :  { %v3688_v37 = vmax.f32 %v3289_v24, %v3291_v11  ;;  %v3290_v38 = vmax.f32 %v3084_v33, %v3261_v34 }
 0x4e4   :  { %5052 = vmatpush3.bf16.msk.msra.mxu1 %vm6348_vm7, %v5047_v7 }
 0x4e5   :  { %v3689_v40 = vmax.f32 %v3290_v38, %v3292_v32  ;;  %5054 = vmatprep.subr.bf16.mxu1 %v5053_v30 }
 0x4e7   :  { %4907 = vmatmul.mubr.msk.f32.vlgmr.msra.gmra.mrb[152].mxu1 %vm3304_vm8, %v3495_v3  ;;  %v5117_v3 = vpack.c.bf16 %v3889_v2, %v3888_v28 }
 0x4e8   :  { %5056 = vmatpush3.bf16.msra.mxu1 %v5053_v30  ;;  %4925 = vmatprep.mubr.msk.f32.mxu1 %vm3304_vm8, %v3591_v20 }
 0x4e9   :  { %5058 = vmatprep.subr.bf16.mxu1 %v5057_v44  ;;  %5118 = vmatprep.subr.bf16.mxu0 %v5117_v3 }
 0x4ec   :  { %5060 = vmatpush3.bf16.msra.mxu1 %v5057_v44 }
 0x4ed   :  { %5062 = vmatprep.subr.bf16.mxu1 %v5061_v47 }
 0x4f0   :  { %5064 = vmatpush3.bf16.msra.mxu1 %v5061_v47 }
 0x4f1   :  { %5067 = vmatprep.subr.msk.bf16.mxu1 %vm6348_vm7, %v5065_v51 }
 0x4f4   :  { %5070 = vmatpush3.bf16.msk.msra.mxu1 %vm6348_vm7, %v5065_v51 }
 0x4f5   :  { %5072 = vmatprep.subr.bf16.mxu1 %v5071_v53 }
 0x4f7   :  { %4926 = vmatmul.mubr.msk.f32.vlgmr.msra.gmra.mrb[152].mxu1 %vm3304_vm8, %v3592_v22  ;;  %v4423_v22 = vld [vmem:[%s6613_s12] ss:$0 sm:$0xff] }
 0x4f8   :  { %5074 = vmatpush3.bf16.msra.mxu1 %v5071_v53  ;;  %4944 = vmatprep.mubr.msk.f32.mxu1 %vm3304_vm8, %v3688_v37 }
 0x4f9   :  { %5076 = vmatprep.subr.bf16.mxu1 %v5075_v58 }
 0x4fc   :  { %5078 = vmatpush3.bf16.msra.mxu1 %v5075_v58 }
 0x4fd   :  { %5080 = vmatprep.subr.bf16.mxu1 %v5079_v62 }
 0x500   :  { %5082 = vmatpush3.bf16.msra.mxu1 %v5079_v62 }
 0x501   :  { %5085 = vmatprep.subr.msk.bf16.mxu1 %vm6348_vm7, %v5083_v23 }
 0x504   :  { %5088 = vmatpush3.bf16.msk.msra.mxu1 %vm6348_vm7, %v5083_v23 }
 0x507   :  { %4945 = vmatmul.mubr.msk.f32.vlgmr.msra.gmra.mrb[152].mxu1 %vm3304_vm8, %v3689_v40 }
 0x5da   :  { %v4946_v54 = vpop.f32.mrb[152].mxu1 }
 0x5db   :  { %v3774_v13 = vpop.f32.mrb[153].mxu1  ;;  %v5135_v1 = vadd.f32 %v4946_v54, %v4375_v4 }
 0x5dc   :  { %v5136_v8 = vadd.f32 %v4375_v4, %v3774_v13 }
 0x5de   :  { %4977 = vmatprep.mubr.msk.f32.mxu0 %vm2949_vm5, %v5136_v8 }
 0x5df   :  { %4978 = vmatmul.mubr.msk.f32.vlgmr.msra.gmra.mrb[244].mxu0 %vm2949_vm5, %v5135_v1 }
 0x5e0   :  { %5120 = vmatpush3.bf16.msra.mxu0 %v5117_v3 }
 0x5e1   :  { %5122 = vmatprep.subr.bf16.mxu0 %v5121_v10 }
 0x5e4   :  { %5124 = vmatpush3.bf16.msra.mxu0 %v5121_v10 }
 0x5e5   :  { %5126 = vmatprep.subr.bf16.mxu0 %v5125_v42 }
 0x5e8   :  { %5128 = vmatpush3.bf16.msra.mxu0 %v5125_v42 }
 0x5e9   :  { %5131 = vmatprep.subr.msk.bf16.mxu0 %vm6348_vm7, %v5129_v43 }
 0x5ec   :  { %5134 = vmatpush3.bf16.msk.msra.mxu0 %vm6348_vm7, %v5129_v43 }
 0x6b2   :  { %v4979_v17 = vpop.f32.mrb[244].mxu0 }
 0x6b3   :  { %v3879_v19 = vpop.f32.mrb[245].mxu0  ;;  %v3885_v21 = vadd.f32 %v4979_v17, %v4420_v16 }
 0x6b4   :  { %v3880_v20 = vadd.f32 %v4420_v16, %v3879_v19 }
 0x6b6   :  { %4996 = vmatprep.mubr.msk.f32.mxu0 %vm3304_vm8, %v3880_v20 }
 0x6b7   :  { %4997 = vmatmul.mubr.msk.f32.vlgmr.msra.gmra.mrb[246].mxu0 %vm3304_vm8, %v3885_v21 }
 0x78a   :  { %v4998_v7 = vpop.f32.mrb[246].mxu0 }
 0x78b   :  { %v3984_v31 = vadd.f32 %v4998_v7, %v4423_v22  ;;  %v3978_v9 = vpop.f32.mrb[247].mxu0 }
 0x78c   :  { %v3979_v59 = vadd.f32 %v4423_v22, %v3978_v9 }
 0x78d   :  { %3988 = vst [vmem:[%s6614_s13 + $0x8] sm:$0xff] %v3984_v31 }
 0x78e   :  { %3987 = vst [vmem:[%s6614_s13] sm:$0xff] %v3979_v59 }

</bundles_post_ra>
